<compile_context>
chip_gen: v7x
topology: tpu7x:2x2x1
jax: 0.10.0
libtpu: 0.0.40
codegen_flags: <defaults>
</compile_context>

<pallas_src>
import jax
import jax.numpy as jnp
from jax.experimental import pallas as pl
from jax.experimental.pallas import tpu as pltpu


IN_DIM = 100
IN_PAD = 128          # lane-aligned K for fc1 (zero-padded; mathematically identical)
H1, H2, H3 = 256, 512, 1024
OUT_DIM = 64 * 64     # 4096
TN = 512              # fc4 output tile streamed per grid step


def _mlp_kernel(x_ref,
                w1_ref, b1_ref,
                w2_ref, b2_ref,
                w3_ref, b3_ref,
                w4_ref, b4_ref,
                o_ref):
    # fc1..fc3 are tiny; recompute them for every fc4 output tile so each grid
    # step is fully independent (no scratch / pl.when init, "parallel" axis).
    h = jnp.dot(x_ref[...], w1_ref[...], preferred_element_type=jnp.float32)
    h = jnp.maximum(h + b1_ref[...], 0.0)

    h = jnp.dot(h.astype(jnp.bfloat16), w2_ref[...],
                preferred_element_type=jnp.float32)
    h = jnp.maximum(h + b2_ref[...], 0.0)

    h = jnp.dot(h.astype(jnp.bfloat16), w3_ref[...],
                preferred_element_type=jnp.float32)
    h = jnp.maximum(h + b3_ref[...], 0.0)

    # fc4: only the current (H3, TN) slice of w4 is resident.
    h = jnp.dot(h.astype(jnp.bfloat16), w4_ref[...],
                preferred_element_type=jnp.float32)
    o_ref[...] = (h + b4_ref[...]).astype(o_ref.dtype)


def simple_2d_generator(x, params):
    """x: (B, 100) float32 -> (B, 64, 64) float32. `params` from prepare_params()."""
    (w1, b1), (w2, b2), (w3, b3), (w4, b4) = params
    B = x.shape[0]

    # Zero-pad K 100 -> 128 (w1 already has zero rows there) and feed bf16 to
    # the MXU; accumulation stays f32 inside the kernel.
    x_p = jnp.pad(x, ((0, 0), (0, IN_PAD - x.shape[1]))).astype(jnp.bfloat16)

    def _resident(shape):
        # Same block every grid step -> DMA'd once, stays resident in VMEM.
        return pl.BlockSpec(shape, lambda j: (0, 0))

    out_flat = pl.pallas_call(
        _mlp_kernel,
        out_shape=jax.ShapeDtypeStruct((B, OUT_DIM), jnp.float32),
        grid_spec=pltpu.PrefetchScalarGridSpec(
            num_scalar_prefetch=0,
            grid=(OUT_DIM // TN,),
            in_specs=[
                _resident(x_p.shape),
                _resident(w1.shape), _resident(b1.shape),
                _resident(w2.shape), _resident(b2.shape),
                _resident(w3.shape), _resident(b3.shape),
                # w4 / b4 streamed one (H3, TN) / (1, TN) tile per grid step.
                pl.BlockSpec((H3, TN), lambda j: (0, j)),
                pl.BlockSpec((1, TN), lambda j: (0, j)),
            ],
            out_specs=pl.BlockSpec((B, TN), lambda j: (0, j)),
        ),
        compiler_params=pltpu.CompilerParams(
            dimension_semantics=("parallel",),
        ),
    )(x_p, w1, b1, w2, b2, w3, b3, w4, b4)

    # mirrors `x.view(-1, 64, 64)`
    return out_flat.reshape(-1, 64, 64)


def init_params(key):
    """nn.Linear-style init U(-1/sqrt(fan_in), 1/sqrt(fan_in)), weights stored
    as (in_features, out_features) (i.e. PyTorch weight.T)."""
    dims = [(IN_DIM, H1), (H1, H2), (H2, H3), (H3, OUT_DIM)]
    params = []
    for fan_in, fan_out in dims:
        key, kw, kb = jax.random.split(key, 3)
        bound = 1.0 / jnp.sqrt(jnp.float32(fan_in))
        w = jax.random.uniform(kw, (fan_in, fan_out), jnp.float32,
                               minval=-bound, maxval=bound)
        b = jax.random.uniform(kb, (1, fan_out), jnp.float32,
                               minval=-bound, maxval=bound)
        params.append((w, b))
    return params


def prepare_params(params):
    """Pad fc1's K dim 100->128 with zero rows and cast weights to bf16.

    Biases stay f32 and are added after the f32 matmul accumulation.
    """
    prepared = []
    for i, (w, b) in enumerate(params):
        if i == 0:
            w = jnp.pad(w, ((0, IN_PAD - IN_DIM), (0, 0)))
        prepared.append((w.astype(jnp.bfloat16), b))
    return prepared


def reference(x, prepared):
    """Pure-JAX reference following the exact same bf16-weight / f32-accumulate
    math as the kernel (semantics of the PyTorch forward, bf16 weight storage)."""
    (w1, b1), (w2, b2), (w3, b3), (w4, b4) = prepared
    h = jnp.pad(x, ((0, 0), (0, IN_PAD - x.shape[1]))).astype(jnp.bfloat16)
    h = jnp.maximum(jnp.dot(h, w1, preferred_element_type=jnp.float32) + b1, 0.0)
    h = jnp.maximum(jnp.dot(h.astype(jnp.bfloat16), w2,
                            preferred_element_type=jnp.float32) + b2, 0.0)
    h = jnp.maximum(jnp.dot(h.astype(jnp.bfloat16), w3,
                            preferred_element_type=jnp.float32) + b3, 0.0)
    h = jnp.dot(h.astype(jnp.bfloat16), w4,
                preferred_element_type=jnp.float32) + b4
    return h.reshape(-1, 64, 64)


if __name__ == "__main__":
    key = jax.random.PRNGKey(0)
    key, kx = jax.random.split(key)

    B = 8  # small batch
    x = jax.random.normal(kx, (B, IN_DIM), jnp.float32)
    params = prepare_params(init_params(key))

    out = jax.block_until_ready(simple_2d_generator(x, params))
    ref = jax.block_until_ready(reference(x, params))

    assert out.shape == (B, 64, 64), out.shape
    assert jnp.allclose(out, ref, atol=1e-2, rtol=1e-2), (
        float(jnp.max(jnp.abs(out - ref))))

    print("KERNEL_OK")
</pallas_src>

<mosaic_0001>
module attributes {stable_mosaic.version = 11 : i64} {
  func.func @_mlp_kernel(%arg0: i32, %arg1: memref<8x128xbf16, #tpu.memory_space<vmem>>, %arg2: memref<128x256xbf16, #tpu.memory_space<vmem>>, %arg3: memref<1x256xf32, #tpu.memory_space<vmem>>, %arg4: memref<256x512xbf16, #tpu.memory_space<vmem>>, %arg5: memref<1x512xf32, #tpu.memory_space<vmem>>, %arg6: memref<512x1024xbf16, #tpu.memory_space<vmem>>, %arg7: memref<1x1024xf32, #tpu.memory_space<vmem>>, %arg8: memref<1024x512xbf16, #tpu.memory_space<vmem>>, %arg9: memref<1x512xf32, #tpu.memory_space<vmem>>, %arg10: memref<8x512xf32, #tpu.memory_space<vmem>>) attributes {dimension_semantics = [#tpu.dimension_semantics<parallel>], iteration_bounds = array<i64: 8>, scalar_prefetch = 0 : i64, scratch_operands = 0 : i64, tpu.core_type = #tpu.core_type<tc>, window_params = [{pipeline_mode = #tpu.pipeline_mode<synchronous>, transform_indices = @transform_0, window_bounds = array<i64: 8, 128>}, {pipeline_mode = #tpu.pipeline_mode<synchronous>, transform_indices = @transform_1, window_bounds = array<i64: 128, 256>}, {pipeline_mode = #tpu.pipeline_mode<synchronous>, transform_indices = @transform_2, window_bounds = array<i64: 1, 256>}, {pipeline_mode = #tpu.pipeline_mode<synchronous>, transform_indices = @transform_3, window_bounds = array<i64: 256, 512>}, {pipeline_mode = #tpu.pipeline_mode<synchronous>, transform_indices = @transform_4, window_bounds = array<i64: 1, 512>}, {pipeline_mode = #tpu.pipeline_mode<synchronous>, transform_indices = @transform_5, window_bounds = array<i64: 512, 1024>}, {pipeline_mode = #tpu.pipeline_mode<synchronous>, transform_indices = @transform_6, window_bounds = array<i64: 1, 1024>}, {transform_indices = @transform_7, window_bounds = array<i64: 1024, 512>}, {transform_indices = @transform_8, window_bounds = array<i64: 1, 512>}, {transform_indices = @transform_9, window_bounds = array<i64: 8, 512>}]} {
    %c0 = arith.constant 0 : index
    %c0_0 = arith.constant 0 : index
    %0 = vector.load %arg1[%c0, %c0_0] : memref<8x128xbf16, #tpu.memory_space<vmem>>, vector<8x128xbf16>
    %c0_1 = arith.constant 0 : index
    %c0_2 = arith.constant 0 : index
    %1 = vector.load %arg2[%c0_1, %c0_2] : memref<128x256xbf16, #tpu.memory_space<vmem>>, vector<128x256xbf16>
    %cst = arith.constant dense<0.000000e+00> : vector<8x256xf32>
    %2 = tpu.matmul %0, %1, %cst {dimension_numbers = #tpu.dot_dimension_numbers<[1], [0], [0], [1], [0, 0, 1, 1], [], []>} : vector<8x128xbf16>, vector<128x256xbf16>, vector<8x256xf32> -> vector<8x256xf32>
    %c0_3 = arith.constant 0 : index
    %c0_4 = arith.constant 0 : index
    %3 = vector.load %arg3[%c0_3, %c0_4] : memref<1x256xf32, #tpu.memory_space<vmem>>, vector<1x256xf32>
    %4 = vector.broadcast %3 : vector<1x256xf32> to vector<8x256xf32>
    %5 = arith.addf %2, %4 : vector<8x256xf32>
    %cst_5 = arith.constant 0.000000e+00 : f32
    %6 = vector.broadcast %cst_5 : f32 to vector<8x256xf32>
    %7 = arith.maximumf %5, %6 : vector<8x256xf32>
    %8 = arith.truncf %7 : vector<8x256xf32> to vector<8x256xbf16>
    %c0_6 = arith.constant 0 : index
    %c0_7 = arith.constant 0 : index
    %9 = vector.load %arg4[%c0_6, %c0_7] : memref<256x512xbf16, #tpu.memory_space<vmem>>, vector<256x512xbf16>
    %cst_8 = arith.constant dense<0.000000e+00> : vector<8x512xf32>
    %10 = tpu.matmul %8, %9, %cst_8 {dimension_numbers = #tpu.dot_dimension_numbers<[1], [0], [0], [1], [0, 0, 1, 1], [], []>} : vector<8x256xbf16>, vector<256x512xbf16>, vector<8x512xf32> -> vector<8x512xf32>
    %c0_9 = arith.constant 0 : index
    %c0_10 = arith.constant 0 : index
    %11 = vector.load %arg5[%c0_9, %c0_10] : memref<1x512xf32, #tpu.memory_space<vmem>>, vector<1x512xf32>
    %12 = vector.broadcast %11 : vector<1x512xf32> to vector<8x512xf32>
    %13 = arith.addf %10, %12 : vector<8x512xf32>
    %cst_11 = arith.constant 0.000000e+00 : f32
    %14 = vector.broadcast %cst_11 : f32 to vector<8x512xf32>
    %15 = arith.maximumf %13, %14 : vector<8x512xf32>
    %16 = arith.truncf %15 : vector<8x512xf32> to vector<8x512xbf16>
    %c0_12 = arith.constant 0 : index
    %c0_13 = arith.constant 0 : index
    %17 = vector.load %arg6[%c0_12, %c0_13] : memref<512x1024xbf16, #tpu.memory_space<vmem>>, vector<512x1024xbf16>
    %cst_14 = arith.constant dense<0.000000e+00> : vector<8x1024xf32>
    %18 = tpu.matmul %16, %17, %cst_14 {dimension_numbers = #tpu.dot_dimension_numbers<[1], [0], [0], [1], [0, 0, 1, 1], [], []>} : vector<8x512xbf16>, vector<512x1024xbf16>, vector<8x1024xf32> -> vector<8x1024xf32>
    %c0_15 = arith.constant 0 : index
    %c0_16 = arith.constant 0 : index
    %19 = vector.load %arg7[%c0_15, %c0_16] : memref<1x1024xf32, #tpu.memory_space<vmem>>, vector<1x1024xf32>
    %20 = vector.broadcast %19 : vector<1x1024xf32> to vector<8x1024xf32>
    %21 = arith.addf %18, %20 : vector<8x1024xf32>
    %cst_17 = arith.constant 0.000000e+00 : f32
    %22 = vector.broadcast %cst_17 : f32 to vector<8x1024xf32>
    %23 = arith.maximumf %21, %22 : vector<8x1024xf32>
    %24 = arith.truncf %23 : vector<8x1024xf32> to vector<8x1024xbf16>
    %c0_18 = arith.constant 0 : index
    %c0_19 = arith.constant 0 : index
    %25 = vector.load %arg8[%c0_18, %c0_19] : memref<1024x512xbf16, #tpu.memory_space<vmem>>, vector<1024x512xbf16>
    %cst_20 = arith.constant dense<0.000000e+00> : vector<8x512xf32>
    %26 = tpu.matmul %24, %25, %cst_20 {dimension_numbers = #tpu.dot_dimension_numbers<[1], [0], [0], [1], [0, 0, 1, 1], [], []>} : vector<8x1024xbf16>, vector<1024x512xbf16>, vector<8x512xf32> -> vector<8x512xf32>
    %c0_21 = arith.constant 0 : index
    %c0_22 = arith.constant 0 : index
    %27 = vector.load %arg9[%c0_21, %c0_22] : memref<1x512xf32, #tpu.memory_space<vmem>>, vector<1x512xf32>
    %28 = vector.broadcast %27 : vector<1x512xf32> to vector<8x512xf32>
    %29 = arith.addf %26, %28 : vector<8x512xf32>
    %c0_23 = arith.constant 0 : index
    %c0_24 = arith.constant 0 : index
    %30 = vector.load %arg10[%c0_23, %c0_24] : memref<8x512xf32, #tpu.memory_space<vmem>>, vector<8x512xf32>
    tpu.vector_store %arg10[%c0_23, %c0_24], %29 {strides = array<i32>} : memref<8x512xf32, #tpu.memory_space<vmem>>, vector<8x512xf32>,
    return
  }
  func.func @transform_0(%arg0: i32) -> (i32, i32) {
    %c0_i32 = arith.constant 0 : i32
    %c0_i32_0 = arith.constant 0 : i32
    %c0_i32_1 = arith.constant 0 : i32
    return %c0_i32, %c0_i32_0 : i32, i32
  }
  func.func @transform_1(%arg0: i32) -> (i32, i32) {
    %c0_i32 = arith.constant 0 : i32
    %c0_i32_0 = arith.constant 0 : i32
    %c0_i32_1 = arith.constant 0 : i32
    return %c0_i32, %c0_i32_0 : i32, i32
  }
  func.func @transform_2(%arg0: i32) -> (i32, i32) {
    %c0_i32 = arith.constant 0 : i32
    %c0_i32_0 = arith.constant 0 : i32
    %c0_i32_1 = arith.constant 0 : i32
    return %c0_i32, %c0_i32_0 : i32, i32
  }
  func.func @transform_3(%arg0: i32) -> (i32, i32) {
    %c0_i32 = arith.constant 0 : i32
    %c0_i32_0 = arith.constant 0 : i32
    %c0_i32_1 = arith.constant 0 : i32
    return %c0_i32, %c0_i32_0 : i32, i32
  }
  func.func @transform_4(%arg0: i32) -> (i32, i32) {
    %c0_i32 = arith.constant 0 : i32
    %c0_i32_0 = arith.constant 0 : i32
    %c0_i32_1 = arith.constant 0 : i32
    return %c0_i32, %c0_i32_0 : i32, i32
  }
  func.func @transform_5(%arg0: i32) -> (i32, i32) {
    %c0_i32 = arith.constant 0 : i32
    %c0_i32_0 = arith.constant 0 : i32
    %c0_i32_1 = arith.constant 0 : i32
    return %c0_i32, %c0_i32_0 : i32, i32
  }
  func.func @transform_6(%arg0: i32) -> (i32, i32) {
    %c0_i32 = arith.constant 0 : i32
    %c0_i32_0 = arith.constant 0 : i32
    %c0_i32_1 = arith.constant 0 : i32
    return %c0_i32, %c0_i32_0 : i32, i32
  }
  func.func @transform_7(%arg0: i32) -> (i32, i32) {
    %c0_i32 = arith.constant 0 : i32
    %c0_i32_0 = arith.constant 0 : i32
    return %c0_i32, %arg0 : i32, i32
  }
  func.func @transform_8(%arg0: i32) -> (i32, i32) {
    %c0_i32 = arith.constant 0 : i32
    %c0_i32_0 = arith.constant 0 : i32
    return %c0_i32, %arg0 : i32, i32
  }
  func.func @transform_9(%arg0: i32) -> (i32, i32) {
    %c0_i32 = arith.constant 0 : i32
    %c0_i32_0 = arith.constant 0 : i32
    return %c0_i32, %arg0 : i32, i32
  }
}

</mosaic_0001>

<bundles_post_ra>
// kernel: tpu_custom_call.1
= control target key start
LH: loop header
LB: loop body
LE: loop exit
PB: predicated region body
PF: predicated region fallthrough
CT: control target
= control target key end

     0   :  { %s7565_s0 = inlined_call_operand.hbm [shape: bf16[8,128], index: 0, kind: input, shape index: {}]   ;;  %s7566_s1 = inlined_call_operand.hbm [shape: bf16[128,256], index: 1, kind: input, shape index: {}]   ;;  %s7567_s2 = inlined_call_operand.hbm [shape: f32[1,256], index: 2, kind: input, shape index: {}]   ;;  %s7568_s3 = inlined_call_operand.hbm [shape: bf16[256,512], index: 3, kind: input, shape index: {}]   ;;  %s7569_s4 = inlined_call_operand.hbm [shape: f32[1,512], index: 4, kind: input, shape index: {}]   ;;  %s7570_s5 = inlined_call_operand.hbm [shape: bf16[512,1024], index: 5, kind: input, shape index: {}]   ;;  %s7571_s6 = inlined_call_operand.hbm [shape: f32[1,1024], index: 6, kind: input, shape index: {}]   ;;  %s7572_s7 = inlined_call_operand.hbm [shape: bf16[1024,4096], index: 7, kind: input, shape index: {}]   ;;  %s7573_s8 = inlined_call_operand.hbm [shape: f32[1,4096], index: 8, kind: input, shape index: {}]   ;;  %s7574_s9 = inlined_call_operand.hbm [shape: f32[8,4096], index: 9, kind: output, shape index: {}]  }
   0x1   :  { %7592 = sst [smem:[#allocation28_spill]] %s7566_s1 }
   0x2   :  { %7593 = sst [smem:[#allocation29_spill]] %s7568_s3 }
   0x3   :  { %7594 = sst [smem:[#allocation30_spill]] %s7570_s5 }
   0x4   :  { %7595 = sst [smem:[#allocation31_spill]] %s7572_s7 }
   0x5   :  { %7596 = sst [smem:[#allocation32_spill]] %s7574_s9 }
   0x6   :  { %14 = vsyncpa [#allocation3], 0 }
   0x7   :  { %15 = vsyncpa [#allocation6], 0 }
   0x8   :  { %16 = vsyncpa [#allocation9], 0 }
   0x9   :  { %17 = vsyncpa [#allocation12], 0 }
   0xa   :  { %18 = vsyncpa [#allocation15], 0 }
   0xb   :  { %20 = vsyncpa [#allocation15 + $0x1], 0 }
   0xc   :  { %21 = vsyncpa [#allocation4], 0 }
   0xd   :  { %23 = vsyncpa [#allocation4 + $0x1], 0  ;;  %s6841_s30 = smov 0   ;;  %s6843_s10 = smov 0  }
   0xe   :  { %s6845_s11 = smov 0   ;;  %s6847_s12 = smov 0  }
   0xf LB: > { %7597 = sst [smem:[#allocation24_spill]] %s6759_s30  ;;  %s6773_s13 = smov [#allocation5]   ;;  %s6771_s12 = sphi %s6847_s12, %s7636_s12   ;;  %s6767_s11 = sphi %s6845_s11, %s7640_s11   ;;  %s6763_s10 = sphi %s6843_s10, %s7639_s10   ;;  %s6759_s30 = sphi %s6841_s30, %s7638_s30  }
  0x10   : > { %s282_s14 = sshll.u32 %s6773_s13, 4  ;;  %s6862_s15 = sadd.s32 4294967295, %s6771_s12   ;;  %s6867_s14 = int_to_ptr.vmem [resolvable:$true] %s282_s14 }
  0x11   : > { %p5121_p0 = scmp.ge.s32.totalorder %s6771_s12, 1  ;;  %p7576_p1 = scmp.eq.s32.totalorder %s6862_s15, 0 }
  0x12   : > { %p259_p2 = scmp.lt.s32.totalorder %s6771_s12, 9  ;;  %s6774_s17 = smov [#allocation8]  }
  0x13   : > { %s306_s18 = sshll.u32 %s6774_s17, 4  ;;  %s6775_s20 = smov [#allocation11]   ;;  %s6881_s18 = int_to_ptr.vmem [resolvable:$true] %s306_s18 }
  0x14   : > { %p6869_p3 = pnand %p5121_p0, %p259_p2  ;;  %s6883_s21 = sshll.u32 %s6775_s20, 4  ;;  %s331_s21 = int_to_ptr.vmem [resolvable:$true] %s6883_s21 }
  0x15   : > { %s7600_s1 = sld [smem:[#allocation28_spill]] }
  0x16   : > { %s7598_s16 = scalar_select %p6869_p3, 1, 0 }
  0x17   : > { %p5833_p4 = pneg %p6869_p3 }
  0x19   : > { %p6877_p5 = pnand %p5833_p4, %p7576_p1 }
  0x1b   : > { %s7599_s19 = scalar_select %p6877_p5, 1, 0 }
  0x1c   : > { %s6433_s24 = scalar_lea.hbm %s7600_s1, 2048  ;;  %p6893_p7 = pneg %p6877_p5 }
  0x1d   : > { %p6434_p6 = scmp.ne.s32.totalorder %s7600_s1, %s6433_s24  ;;  %p6440_p10 = scmp.lt.u32.totalorder %s6433_s24, %s7600_s1 }
  0x1f   : > { %p6436_p8 = pnand %p6893_p7, %p6434_p6 }
  0x21   : > { %p6437_p9 = pneg %p6436_p8 }
  0x23   : > { %p6442_p11 = pnand %p6440_p10, %p6437_p9 }
  0x25   : > { %6445 = shalt.err (!%p6442_p11)
}
  0x26   : > { %s6446_s13 = scalar_lea.vmem %s6867_s14, 2048  ;;  %p6454_p2 = scmp.lt.s32.totalorder %s6867_s14, %s6867_s14 }
  0x27   : > { %p6447_p12 = scmp.ne.s32.totalorder %s6867_s14, %s6446_s13  ;;  %p6455_p4 = scmp.lt.s32.totalorder %s6446_s13, %s6446_s13 }
  0x29   : > { %p6449_p13 = pnand %p6447_p12, %p6893_p7  ;;  %p6456_p6 = por %p6455_p4, %p6454_p2 }
  0x2b   : > { %p6450_p0 = pneg %p6449_p13 }
  0x2d   : > { %p6457_p8 = pnand %p6456_p6, %p6450_p0 }
  0x2f   : > { %6460 = shalt.err (!%p6457_p8)
}
  0x30   : > { %s6776_s17 = smov 128   ;;  %s6777_s20 = smov 8  }
  0x31   : > { %5839 = dma.hbm_to_vmem [thread:$0]  (!%p6877_p5), %s7600_s1, 2048, %s6867_s14, [#allocation6], %s6776_s17, %s6776_s17, %s6777_s20  }
  0x32   : > { %s7602_s3 = sld [smem:[#allocation29_spill]] }
  0x38   : > { %s6461_s26 = scalar_lea.hbm %s7602_s3, 8192 }
  0x39   : > { %p6462_p9 = scmp.ne.s32.totalorder %s7602_s3, %s6461_s26  ;;  %p6468_p12 = scmp.lt.u32.totalorder %s6461_s26, %s7602_s3 }
  0x3b   : > { %p6464_p10 = pnand %p6462_p9, %p6893_p7 }
  0x3d   : > { %p6465_p11 = pneg %p6464_p10 }
  0x3f   : > { %p6470_p13 = pnand %p6468_p12, %p6465_p11 }
  0x41   : > { %6473 = shalt.err (!%p6470_p13)
}
  0x42   : > { %s6474_s14 = scalar_lea.vmem %s6881_s18, 8192  ;;  %p6482_p6 = scmp.lt.s32.totalorder %s6881_s18, %s6881_s18 }
  0x43   : > { %p6475_p0 = scmp.ne.s32.totalorder %s6881_s18, %s6474_s14  ;;  %p6483_p8 = scmp.lt.s32.totalorder %s6474_s14, %s6474_s14 }
  0x45   : > { %p6477_p2 = pnand %p6475_p0, %p6893_p7  ;;  %p6484_p9 = por %p6483_p8, %p6482_p6 }
  0x47   : > { %p6478_p4 = pneg %p6477_p2 }
  0x49   : > { %p6485_p10 = pnand %p6484_p9, %p6478_p4 }
  0x4b   : > { %6488 = shalt.err (!%p6485_p10)
}
  0x4c   : > { %s7578_s17 = smov 256   ;;  %s7579_s9 = smov 16  }
  0x4d   : > { %5845 = dma.hbm_to_vmem [thread:$0]  (!%p6877_p5), %s7602_s3, 8192, %s6881_s18, [#allocation9], %s7578_s17, %s7578_s17, %s7579_s9  }
  0x4e   : > { %s7603_s5 = sld [smem:[#allocation30_spill]] }
  0x54   : > { %s6489_s25 = scalar_lea.hbm %s7603_s5, 32768 }
  0x55   : > { %p6490_p11 = scmp.ne.s32.totalorder %s7603_s5, %s6489_s25  ;;  %p6496_p0 = scmp.lt.u32.totalorder %s6489_s25, %s7603_s5 }
  0x57   : > { %p6492_p12 = pnand %p6490_p11, %p6893_p7 }
  0x59   : > { %p6493_p13 = pneg %p6492_p12 }
  0x5b   : > { %p6498_p2 = pnand %p6496_p0, %p6493_p13 }
  0x5d   : > { %6501 = shalt.err (!%p6498_p2)
}
  0x5e   : > { %s6502_s14 = scalar_lea.vmem %s331_s21, 32768  ;;  %p6510_p9 = scmp.lt.s32.totalorder %s331_s21, %s331_s21 }
  0x5f   : > { %p6503_p4 = scmp.ne.s32.totalorder %s331_s21, %s6502_s14  ;;  %p6511_p10 = scmp.lt.s32.totalorder %s6502_s14, %s6502_s14 }
  0x61   : > { %p6505_p6 = pnand %p6503_p4, %p6893_p7  ;;  %p6512_p1 = por %p6511_p10, %p6510_p9 }
  0x63   : > { %p6506_p8 = pneg %p6505_p6 }
  0x65   : > { %p6513_p3 = pnand %p6512_p1, %p6506_p8 }
  0x67   : > { %6516 = shalt.err (!%p6513_p3)
}
  0x68   : > { %s6780_s18 = smov 512   ;;  %s6781_s20 = smov 32  }
  0x69   : > { %5851 = dma.hbm_to_vmem [thread:$0]  (!%p6877_p5), %s7603_s5, 32768, %s331_s21, [#allocation12], %s6780_s18, %s6780_s18, %s6781_s20  }
  0x6a   : > { %s5120_s24 = sadd.s32 4294967294, %s6771_s12   ;;  %s6961_s25 = sadd.s32 1, %s6771_s12  }
  0x6b   : > { %7604 = sst [smem:[#allocation25_spill]] %s6961_s25  ;;  %s183_s26 = sadd.s32 1, %s6767_s11 }
  0x6c   : > { %s180_s28 = ssub.s32 %s6771_s12, %s6961_s25  ;;  %p190_p1 = scmp.ne.s32.totalorder %s6767_s11, %s6763_s10 }
  0x6d   : > { %p181_p3 = scmp.eq.s32.totalorder %s180_s28, 0  ;;  %p191_p11 = scmp.eq.s32.totalorder %s6771_s12, 0 }
  0x6e   : > { %p196_p12 = scmp.ne.s32.totalorder %s6763_s10, %s6759_s30  ;;  %p246_p13 = scmp.eq.s32.totalorder %s6862_s15, 7 }
  0x6f   : > { %s6973_s29 = scalar_select %p181_p3, %s6767_s11, %s183_s26  }
  0x70   : > { %p192_p0 = por %p191_p11, %p190_p1  ;;  %p7606_p2 = scmp.eq.s32.totalorder %s6862_s15, 0 }
  0x71   : > { %7605 = sst [smem:[#allocation26_spill]] %s6973_s29  ;;  %p6981_p6 = por %p246_p13, %p190_p1 }
  0x72   : > { %p6977_p4 = por %p7606_p2, %p196_p12  ;;  %p252_p8 = scmp.eq.s32.totalorder %s5120_s24, 7 }
  0x73   : > { %s7608_s13 = scalar_select %p6981_p6, 1, 0 }
  0x74   : > { %s7607_s21 = scalar_select %p6977_p4, 1, 0 }
  0x75   : > { %p5873_p9 = scmp.lt.s32.totalorder %s6771_s12, 8  ;;  %s355_s14 = sand.u32 1, %s6771_s12  }
  0x76   : > { %p6987_p10 = por %p252_p8, %p196_p12  ;;  %s7580_s20 = sand.u32 1, %s6767_s11  }
  0x77   : > { %s5744_s22 = sshll.u32 %s6771_s12, 8  ;;  %s5130_s23 = sshll.u32 %s7580_s20, 11 }
  0x78   : > { %s7609_s18 = scalar_select %p6987_p10, 1, 0 }
  0x79   : > { %s7611_s7 = sld [smem:[#allocation31_spill]]  ;;  %p7000_p1 = pnand %p5873_p9, %p192_p0 }
  0x7a   : > { %7610 = sst [smem:[#allocation27_spill]] %s7609_s18  ;;  %s359_s9 = scalar_lea.vmem [#allocation14], %s5130_s23 }
  0x7b   : > { %s7612_s24 = scalar_select %p7000_p1, 1, 0 }
  0x7c   : > { %s366_s1 = sshll.u32 %s359_s9, 4  ;;  %s7006_s20 = scalar_lea.sflag [#allocation15], %s355_s14  ;;  %s7004_s1 = int_to_ptr.vmem [resolvable:$true] %s366_s1 }
  0x7d   : > { %p7589_p11 = pneg %p7000_p1 }
  0x7f   : > { %s6998_s17 = scalar_lea.hbm %s7611_s7, %s5744_s22  ;;  %s6522_s28 = scalar_lea.hbm %s7611_s7, 262144 }
  0x80   : > { %s6517_s3 = scalar_lea.hbm %s6998_s17, 32768  ;;  %p6523_p0 = scmp.lt.u32.totalorder %s6998_s17, %s7611_s7 }
  0x81   : > { %p6518_p3 = scmp.ne.s32.totalorder %s6998_s17, %s6517_s3  ;;  %p6524_p2 = scmp.lt.u32.totalorder %s6522_s28, %s6517_s3 }
  0x82   : > { %p6526_p9 = scmp.lt.u32.totalorder %s6517_s3, %s6998_s17 }
  0x83   : > { %p6520_p12 = pnand %p7589_p11, %p6518_p3  ;;  %p6525_p8 = por %p6524_p2, %p6523_p0 }
  0x85   : > { %p6521_p13 = pneg %p6520_p12  ;;  %p6527_p10 = por %p6526_p9, %p6525_p8 }
  0x87   : > { %p6528_p6 = pnand %p6527_p10, %p6521_p13 }
  0x89   : > { %6531 = shalt.err (!%p6528_p6)
}
  0x8a   : > { %s6532_s9 = scalar_lea.vmem %s7004_s1, 32768  ;;  %s6782_s14 = smov [#allocation14]  }
  0x8b   : > { %p6533_p3 = scmp.ne.s32.totalorder %s7004_s1, %s6532_s9  ;;  %s6537_s23 = sshll.u32 %s6782_s14, 4  ;;  %s6538_s23 = int_to_ptr.vmem [resolvable:$false] %s6537_s23 }
  0x8c   : > { %s6539_s5 = scalar_lea.vmem %s6538_s23, 65536  ;;  %p6540_p5 = scmp.lt.s32.totalorder %s7004_s1, %s6538_s23 }
  0x8d   : > { %p6535_p12 = pnand %p6533_p3, %p7589_p11  ;;  %p6541_p0 = scmp.lt.s32.totalorder %s6539_s5, %s6532_s9 }
  0x8f   : > { %p6536_p4 = pneg %p6535_p12  ;;  %p6542_p2 = por %p6541_p0, %p6540_p5 }
  0x91   : > { %p6543_p8 = pnand %p6542_p2, %p6536_p4 }
  0x93   : > { %6546 = shalt.err (!%p6543_p8)
}
  0x94   : > { %s6783_s3 = smov 2048   ;;  %s7613_s29 = smov 16  }
  0x95   : > { %s7614_s22 = smov 256   ;;  %s6784_s26 = smov [#allocation2]  }
  0x96   : > { %5858 = dma.hbm_to_vmem [thread:$0]  (!%p7000_p1), %s6998_s17, 32768, %s7004_s1, %s7006_s20, %s6783_s3, %s7614_s22, %s7613_s29  }
  0x97   : > { %s272_s28 = sshll.u32 %s6784_s26, 4  ;;  %s6785_s14 = smov [#allocation7]   ;;  %s273_s28 = int_to_ptr.vmem [resolvable:$true] %s272_s28 }
  0x98   : > { %s296_s7 = sshll.u32 %s6785_s14, 4  ;;  %s6547_s5 = scalar_lea.hbm %s7565_s0, 64  ;;  %s7036_s7 = int_to_ptr.vmem [resolvable:$true] %s296_s7 }
  0x99   : > { %p6548_p5 = scmp.ne.s32.totalorder %s7565_s0, %s6547_s5  ;;  %p6554_p10 = scmp.lt.u32.totalorder %s6547_s5, %s7565_s0 }
  0x9b   : > { %p6550_p4 = pnand %p6548_p5, %p6893_p7 }
  0x9d   : > { %p6551_p6 = pneg %p6550_p4 }
  0x9f   : > { %p6556_p13 = pnand %p6554_p10, %p6551_p6 }
  0xa1   : > { %6559 = shalt.err (!%p6556_p13)
}
  0xa2   : > { %s6560_s17 = scalar_lea.vmem %s273_s28, 64  ;;  %p6568_p0 = scmp.lt.s32.totalorder %s273_s28, %s273_s28 }
  0xa3   : > { %p6561_p9 = scmp.ne.s32.totalorder %s273_s28, %s6560_s17  ;;  %p6569_p2 = scmp.lt.s32.totalorder %s6560_s17, %s6560_s17 }
  0xa5   : > { %p6563_p3 = pnand %p6561_p9, %p6893_p7  ;;  %p6570_p8 = por %p6569_p2, %p6568_p0 }
  0xa7   : > { %p6564_p12 = pneg %p6563_p3 }
  0xa9   : > { %p6571_p11 = pnand %p6570_p8, %p6564_p12 }
  0xab   : > { %6574 = shalt.err (!%p6571_p11)
}
  0xac   : > { %p7615_p5 = scmp.ne.s32.totalorder %s7599_s19, 0  ;;  %s6575_s29 = scalar_lea.hbm %s7567_s2, 32 }
  0xad   : > { %p6576_p4 = scmp.ne.s32.totalorder %s7567_s2, %s6575_s29  ;;  %p6582_p11 = scmp.lt.u32.totalorder %s6575_s29, %s7567_s2 }
  0xae   : > { %5836 = dma.hbm_to_vmem [thread:$0]  (!%p7615_p5), %s7565_s0, 64, %s273_s28, [#allocation3]  }
  0xaf   : > { %p6578_p6 = pnand %p6576_p4, %p6893_p7 }
  0xb1   : > { %p6579_p10 = pneg %p6578_p6 }
  0xb3   : > { %p6584_p13 = pnand %p6582_p11, %p6579_p10 }
  0xb5   : > { %6587 = shalt.err (!%p6584_p13)
}
  0xb6   : > { %s6588_s28 = scalar_lea.vmem %s7036_s7, 32  ;;  %p6596_p0 = scmp.lt.s32.totalorder %s7036_s7, %s7036_s7 }
  0xb7   : > { %p6589_p9 = scmp.ne.s32.totalorder %s7036_s7, %s6588_s28  ;;  %p6597_p2 = scmp.lt.s32.totalorder %s6588_s28, %s6588_s28 }
  0xb9   : > { %p6591_p3 = pnand %p6589_p9, %p6893_p7  ;;  %p6598_p8 = por %p6597_p2, %p6596_p0 }
  0xbb   : > { %p6592_p12 = pneg %p6591_p3 }
  0xbd   : > { %p6599_p4 = pnand %p6598_p8, %p6592_p12 }
  0xbf   : > { %6602 = shalt.err (!%p6599_p4)
}
  0xc0   : > { %5842 = dma.hbm_to_vmem [thread:$0]  (!%p7615_p5), %s7567_s2, 32, %s7036_s7, [#allocation6]  }
  0xc1   : > { %s6786_s1 = smov [#allocation10]   ;;  %s6787_s25 = smov [#allocation13]  }
  0xc2   : > { %s320_s17 = sshll.u32 %s6786_s1, 4  ;;  %s344_s18 = sshll.u32 %s6787_s25, 4  ;;  %s321_s17 = int_to_ptr.vmem [resolvable:$true] %s320_s17  ;;  %s7079_s18 = int_to_ptr.vmem [resolvable:$true] %s344_s18 }
  0xc3   : > { %s6603_s29 = scalar_lea.hbm %s7569_s4, 64 }
  0xc4   : > { %p6604_p6 = scmp.ne.s32.totalorder %s7569_s4, %s6603_s29  ;;  %p6610_p13 = scmp.lt.u32.totalorder %s6603_s29, %s7569_s4 }
  0xc6   : > { %p6606_p10 = pnand %p6604_p6, %p6893_p7 }
  0xc8   : > { %p6607_p11 = pneg %p6606_p10 }
  0xca   : > { %p6612_p9 = pnand %p6610_p13, %p6607_p11 }
  0xcc   : > { %6615 = shalt.err (!%p6612_p9)
}
  0xcd   : > { %s6616_s9 = scalar_lea.vmem %s321_s17, 64  ;;  %p6624_p2 = scmp.lt.s32.totalorder %s321_s17, %s321_s17 }
  0xce   : > { %p6617_p3 = scmp.ne.s32.totalorder %s321_s17, %s6616_s9  ;;  %p6625_p8 = scmp.lt.s32.totalorder %s6616_s9, %s6616_s9 }
  0xd0   : > { %p6619_p12 = pnand %p6617_p3, %p6893_p7  ;;  %p6626_p4 = por %p6625_p8, %p6624_p2 }
  0xd2   : > { %p6620_p0 = pneg %p6619_p12 }
  0xd4   : > { %p6627_p1 = pnand %p6626_p4, %p6620_p0 }
  0xd6   : > { %6630 = shalt.err (!%p6627_p1)
}
  0xd7   : > { %5848 = dma.hbm_to_vmem [thread:$0]  (!%p7615_p5), %s7569_s4, 64, %s321_s17, [#allocation9]  }
  0xd8   : > { %s6631_s25 = scalar_lea.hbm %s7571_s6, 128 }
  0xd9   : > { %p6632_p6 = scmp.ne.s32.totalorder %s7571_s6, %s6631_s25  ;;  %p6638_p1 = scmp.lt.u32.totalorder %s6631_s25, %s7571_s6 }
  0xdb   : > { %p6634_p10 = pnand %p6632_p6, %p6893_p7 }
  0xdd   : > { %p6635_p11 = pneg %p6634_p10 }
  0xdf   : > { %p6640_p13 = pnand %p6638_p1, %p6635_p11 }
  0xe1   : > { %6643 = shalt.err (!%p6640_p13)
}
  0xe2   : > { %s6644_s17 = scalar_lea.vmem %s7079_s18, 128  ;;  %p6652_p0 = scmp.lt.s32.totalorder %s7079_s18, %s7079_s18 }
  0xe3   : > { %p6645_p9 = scmp.ne.s32.totalorder %s7079_s18, %s6644_s17  ;;  %p6653_p2 = scmp.lt.s32.totalorder %s6644_s17, %s6644_s17 }
  0xe5   : > { %p6647_p3 = pnand %p6645_p9, %p6893_p7  ;;  %p6654_p8 = por %p6653_p2, %p6652_p0 }
  0xe7   : > { %p6648_p12 = pneg %p6647_p3 }
  0xe9   : > { %p6655_p4 = pnand %p6654_p8, %p6648_p12 }
  0xeb   : > { %6658 = shalt.err (!%p6655_p4)
}
  0xec   : > { %5854 = dma.hbm_to_vmem [thread:$0]  (!%p7615_p5), %s7571_s6, 128, %s7079_s18, [#allocation12]  }
  0xed   : > { %s7616_s7 = sand.u32 1, %s6767_s11   ;;  %s5745_s9 = sshll.u32 %s6771_s12, 6 }
  0xee   : > { %s5133_s27 = sshll.u32 %s7616_s7, 2  ;;  %s7128_s5 = scalar_lea.hbm %s7573_s8, %s5745_s9 }
  0xef   : > { %s380_s19 = scalar_lea.vmem [#allocation16], %s5133_s27  ;;  %s6659_s25 = scalar_lea.hbm %s7128_s5, 64 }
  0xf0   : > { %s388_s1 = sshll.u32 %s380_s19, 4  ;;  %p6660_p7 = scmp.ne.s32.totalorder %s7128_s5, %s6659_s25  ;;  %s389_s1 = int_to_ptr.vmem [resolvable:$true] %s388_s1 }
  0xf1   : > { %p7617_p6 = scmp.ne.s32.totalorder %s7612_s24, 0  ;;  %s6664_s3 = scalar_lea.hbm %s7573_s8, 512 }
  0xf2   : > { %p6665_p1 = scmp.lt.u32.totalorder %s7128_s5, %s7573_s8  ;;  %p6666_p13 = scmp.lt.u32.totalorder %s6664_s3, %s6659_s25 }
  0xf3   : > { %p7618_p10 = pneg %p7617_p6  ;;  %p6668_p3 = scmp.lt.u32.totalorder %s6659_s25, %s7128_s5 }
  0xf4   : > { %p6667_p9 = por %p6666_p13, %p6665_p1 }
  0xf5   : > { %p6662_p5 = pnand %p6660_p7, %p7618_p10 }
  0xf6   : > { %p6669_p12 = por %p6668_p3, %p6667_p9 }
  0xf7   : > { %p6663_p11 = pneg %p6662_p5 }
  0xf9   : > { %p6670_p0 = pnand %p6669_p12, %p6663_p11 }
  0xfb   : > { %6673 = shalt.err (!%p6670_p0)
}
  0xfc   : > { %s6674_s17 = scalar_lea.vmem %s389_s1, 64  ;;  %p7619_p8 = pmov %p7618_p10 }
  0xfd   : > { %p6675_p2 = scmp.ne.s32.totalorder %s389_s1, %s6674_s17  ;;  %s6788_s26 = smov [#allocation16]  }
  0xfe   : > { %s6679_s14 = sshll.u32 %s6788_s26, 4  ;;  %s6680_s14 = int_to_ptr.vmem [resolvable:$false] %s6679_s14 }
  0xff   : > { %p6677_p4 = pnand %p6675_p2, %p7619_p8  ;;  %s6681_s7 = scalar_lea.vmem %s6680_s14, 128 }
 0x100   : > { %p6682_p10 = scmp.lt.s32.totalorder %s389_s1, %s6680_s14  ;;  %p6683_p5 = scmp.lt.s32.totalorder %s6681_s7, %s6674_s17 }
 0x101   : > { %p6678_p7 = pneg %p6677_p4 }
 0x102   : > { %p6684_p1 = por %p6683_p5, %p6682_p10 }
 0x104   : > { %p6685_p13 = pnand %p6684_p1, %p6678_p7 }
 0x106   : > { %6688 = shalt.err (!%p6685_p13)
}
 0x107   : > { %5861 = dma.hbm_to_vmem [thread:$0]  (!%p7617_p6), %s7128_s5, 64, %s389_s1, %s7006_s20  }
 0x108   : > { %p7620_p11 = scmp.ne.s32.totalorder %s7598_s16, 0 }
 0x109   : > { %p7621_p9 = scmp.eq.s32.totalorder (!%p7620_p11), %s6862_s15, 0 }
 0x10a   : > { %397 = sbr.rel (%p7620_p11) target bundleno = 1467 (0x5bb), region = 56 }
 0x111   : > { %6734 = dma.done.wait (%p7621_p9), [#allocation3], 64   ;;  %p7622_p3 = pmov %p7621_p9 }
 0x113   : > { %6736 = vsyncadd (%p7622_p3), [#allocation3], 4294967232  ;;  %p7623_p12 = pmov %p7622_p3 }
 0x114   : > { %p7624_p0 = pmov %p7622_p3 }
 0x115   : > { %6738 = dma.done.wait (%p7623_p12), [#allocation6], 2080  }
 0x116   : > { %6740 = vsyncadd (%p7624_p0), [#allocation6], 4294965216  ;;  %p7625_p2 = pmov %p7624_p0 }
 0x117   : > { %p7626_p6 = pmov %p7624_p0 }
 0x118   : > { %6742 = dma.done.wait (%p7625_p2), [#allocation9], 8256  }
 0x119   : > { %6744 = vsyncadd (%p7626_p6), [#allocation9], 4294959040  ;;  %p7627_p8 = pmov %p7624_p0 }
 0x11a   : > { %p7628_p4 = pmov %p7624_p0 }
 0x11b   : > { %6746 = dma.done.wait (%p7627_p8), [#allocation12], 32896  }
 0x11c   : > { %6748 = vsyncadd (%p7628_p4), [#allocation12], 4294934400  ;;  %s427_s16 = sand.u32 1, %s6862_s15   ;;  %s7170_s20 = sand.u32 1, %s6763_s10  }
 0x11d   : > { %s5144_s24 = sshll.u32 %s7170_s20, 11  ;;  %s428_s27 = scalar_lea.sflag [#allocation15], %s427_s16 }
 0x11e   : > { %s7173_s9 = scalar_lea.vmem [#allocation14], %s5144_s24  ;;  %p7629_p7 = scmp.ne.s32.totalorder %s7607_s21, 0 }
 0x120   : > { %6750 = dma.done.wait (%p7629_p7), %s428_s27, 32832  }
 0x121   : > { %6752 = vsyncadd (%p7629_p7), %s428_s27, 4294934464  ;;  %v6789_v0 = vmov 0   ;;  %v5929_v1 = vld [vmem:[#allocation5 + $0x4] ss:$8 sps:$4 sm:$0xff]   ;;  %v5931_v2 = vld [vmem:[#allocation5] ss:$8 sps:$4 sm:$0xff]  }
 0x122   : > { %625 = vmatprep.mubr.bf16.mxu0 %v6789_v0  ;;  %593 = vmatprep.subr.bf16.mxu0 %v5929_v1  ;;  %v5932_v3 = vld [vmem:[#allocation5 + $0x14] ss:$8 sps:$4 sm:$0xff]   ;;  %v5934_v4 = vld [vmem:[#allocation5 + $0x10] ss:$8 sps:$4 sm:$0xff]   ;;  %v5935_v5 = vld [vmem:[#allocation5 + $0x24] ss:$8 sps:$4 sm:$0xff]  }
 0x123   : > { %594 = vmatpush1.bf16.msra.mxu0 %v5931_v2  ;;  %v5937_v6 = vld [vmem:[#allocation5 + $0x20] ss:$8 sps:$4 sm:$0xff]   ;;  %v5938_v7 = vld [vmem:[#allocation5 + $0x34] ss:$8 sps:$4 sm:$0xff]   ;;  %v5940_v8 = vld [vmem:[#allocation5 + $0x30] ss:$8 sps:$4 sm:$0xff]  }
 0x124   : > { %595 = vmatprep.subr.bf16.mxu0 %v5932_v3  ;;  %v5953_v9 = vld [vmem:[#allocation8 + $0x4] ss:$16 sps:$4 sm:$0xff]   ;;  %v5958_v11 = vld [vmem:[#allocation8] ss:$16 sps:$4 sm:$0xff]   ;;  %v5957_v26 = vld [vmem:[#allocation8 + $0xc] ss:$16 sps:$4 sm:$0xff]  }
 0x125   : > { %v5941_v10 = vld [vmem:[#allocation5 + $0x44] ss:$8 sps:$4 sm:$0xff]   ;;  %1044 = vmatprep.subr.bf16.mxu1 %v5953_v9  ;;  %v5943_v13 = vld [vmem:[#allocation5 + $0x40] ss:$8 sps:$4 sm:$0xff]   ;;  %v5944_v14 = vld [vmem:[#allocation5 + $0x54] ss:$8 sps:$4 sm:$0xff]  }
 0x126   : > { %v5959_v12 = vld [vmem:[#allocation8 + $0x24] ss:$16 sps:$4 sm:$0xff]   ;;  %1045 = vmatpush1.bf16.msra.mxu1 %v5958_v11  ;;  %v5964_v15 = vld [vmem:[#allocation8 + $0x20] ss:$16 sps:$4 sm:$0xff]   ;;  %v484_v29 = vld [vmem:[#allocation2] sm:$0xf] }
 0x127   : > { %596 = vmatpush1.bf16.msra.mxu0 %v5934_v4  ;;  %1046 = vmatprep.subr.bf16.mxu1 %v5959_v12  ;;  %v5965_v16 = vld [vmem:[#allocation8 + $0x44] ss:$16 sps:$4 sm:$0xff]   ;;  %v5970_v19 = vld [vmem:[#allocation8 + $0x40] ss:$16 sps:$4 sm:$0xff]   ;;  %v5955_v30 = vld [vmem:[#allocation8 + $0x8] ss:$16 sps:$4 sm:$0xff]  }
 0x128   : > { %597 = vmatprep.subr.bf16.mxu0 %v5935_v5  ;;  %v5946_v17 = vld [vmem:[#allocation5 + $0x50] ss:$8 sps:$4 sm:$0xff]   ;;  %v5947_v18 = vld [vmem:[#allocation5 + $0x64] ss:$8 sps:$4 sm:$0xff]   ;;  %v5949_v21 = vld [vmem:[#allocation5 + $0x60] ss:$8 sps:$4 sm:$0xff]  }
 0x129   : > { %v5971_v20 = vld [vmem:[#allocation8 + $0x64] ss:$16 sps:$4 sm:$0xff]   ;;  %v5976_v23 = vld [vmem:[#allocation8 + $0x60] ss:$16 sps:$4 sm:$0xff]   ;;  %v5963_v31 = vld [vmem:[#allocation8 + $0x2c] ss:$16 sps:$4 sm:$0xff]  }
 0x12a   : > { %1047 = vmatpush1.bf16.msra.mxu1 %v5964_v15  ;;  %v5950_v22 = vld [vmem:[#allocation5 + $0x74] ss:$8 sps:$4 sm:$0xff]   ;;  %v5952_v25 = vld [vmem:[#allocation5 + $0x70] ss:$8 sps:$4 sm:$0xff]   ;;  %s5145_s21 = sshll.u32 %s7170_s20, 2  ;;  %s5146_s28 = sshll.u32 %s7170_s20, 5 }
 0x12b   : > { %598 = vmatpush1.bf16.msra.mxu0 %v5937_v6  ;;  %1048 = vmatprep.subr.bf16.mxu1 %v5965_v16  ;;  %v5977_v24 = vld [vmem:[#allocation8 + $0x84] ss:$16 sps:$4 sm:$0xff]   ;;  %v5982_v27 = vld [vmem:[#allocation8 + $0x80] ss:$16 sps:$4 sm:$0xff]   ;;  %v5961_v34 = vld [vmem:[#allocation8 + $0x28] ss:$16 sps:$4 sm:$0xff]  }
 0x12c   : > { %599 = vmatprep.subr.bf16.mxu0 %v5938_v7  ;;  %v5983_v28 = vld [vmem:[#allocation8 + $0xa4] ss:$16 sps:$4 sm:$0xff]   ;;  %v5988_v32 = vld [vmem:[#allocation8 + $0xa0] ss:$16 sps:$4 sm:$0xff]   ;;  %v5969_v35 = vld [vmem:[#allocation8 + $0x4c] ss:$16 sps:$4 sm:$0xff]  }
 0x12d   : > { %v5989_v33 = vld [vmem:[#allocation8 + $0xc4] ss:$16 sps:$4 sm:$0xff]   ;;  %v5994_v36 = vld [vmem:[#allocation8 + $0xc0] ss:$16 sps:$4 sm:$0xff]   ;;  %v5967_v38 = vld [vmem:[#allocation8 + $0x48] ss:$16 sps:$4 sm:$0xff]  }
 0x12e   : > { %1049 = vmatpush1.bf16.msra.mxu1 %v5970_v19  ;;  %v5995_v37 = vld [vmem:[#allocation8 + $0xe4] ss:$16 sps:$4 sm:$0xff]   ;;  %v5975_v39 = vld [vmem:[#allocation8 + $0x6c] ss:$16 sps:$4 sm:$0xff]   ;;  %v6000_v40 = vld [vmem:[#allocation8 + $0xe0] ss:$16 sps:$4 sm:$0xff]  }
 0x12f   : > { %600 = vmatpush1.bf16.msra.mxu0 %v5940_v8  ;;  %1050 = vmatprep.subr.bf16.mxu1 %v5971_v20  ;;  %v6001_v41 = vld [vmem:[#allocation8 + $0x104] ss:$16 sps:$4 sm:$0xff]   ;;  %v5973_v42 = vld [vmem:[#allocation8 + $0x68] ss:$16 sps:$4 sm:$0xff]   ;;  %v5981_v43 = vld [vmem:[#allocation8 + $0x8c] ss:$16 sps:$4 sm:$0xff]  }
 0x130   : > { %601 = vmatprep.subr.bf16.mxu0 %v5941_v10  ;;  %v6006_v44 = vld [vmem:[#allocation8 + $0x100] ss:$16 sps:$4 sm:$0xff]   ;;  %v6007_v45 = vld [vmem:[#allocation8 + $0x124] ss:$16 sps:$4 sm:$0xff]   ;;  %v5979_v46 = vld [vmem:[#allocation8 + $0x88] ss:$16 sps:$4 sm:$0xff]  }
 0x131   : > { %v6012_v47 = vld [vmem:[#allocation8 + $0x120] ss:$16 sps:$4 sm:$0xff]   ;;  %v5987_v48 = vld [vmem:[#allocation8 + $0xac] ss:$16 sps:$4 sm:$0xff]   ;;  %v6013_v49 = vld [vmem:[#allocation8 + $0x144] ss:$16 sps:$4 sm:$0xff]  }
 0x132   : > { %1051 = vmatpush1.bf16.msra.mxu1 %v5976_v23  ;;  %v5985_v50 = vld [vmem:[#allocation8 + $0xa8] ss:$16 sps:$4 sm:$0xff]   ;;  %v6018_v51 = vld [vmem:[#allocation8 + $0x140] ss:$16 sps:$4 sm:$0xff]   ;;  %v5993_v52 = vld [vmem:[#allocation8 + $0xcc] ss:$16 sps:$4 sm:$0xff]  }
 0x133   : > { %602 = vmatpush1.bf16.msra.mxu0 %v5943_v13  ;;  %1052 = vmatprep.subr.bf16.mxu1 %v5977_v24  ;;  %v6019_v53 = vld [vmem:[#allocation8 + $0x164] ss:$16 sps:$4 sm:$0xff]   ;;  %v5991_v54 = vld [vmem:[#allocation8 + $0xc8] ss:$16 sps:$4 sm:$0xff]   ;;  %v6024_v55 = vld [vmem:[#allocation8 + $0x160] ss:$16 sps:$4 sm:$0xff]  }
 0x134   : > { %603 = vmatprep.subr.bf16.mxu0 %v5944_v14  ;;  %v5999_v56 = vld [vmem:[#allocation8 + $0xec] ss:$16 sps:$4 sm:$0xff]   ;;  %v6025_v57 = vld [vmem:[#allocation8 + $0x184] ss:$16 sps:$4 sm:$0xff]   ;;  %v5997_v58 = vld [vmem:[#allocation8 + $0xe8] ss:$16 sps:$4 sm:$0xff]  }
 0x135   : > { %v6030_v59 = vld [vmem:[#allocation8 + $0x180] ss:$16 sps:$4 sm:$0xff]   ;;  %v6005_v60 = vld [vmem:[#allocation8 + $0x10c] ss:$16 sps:$4 sm:$0xff]   ;;  %v6031_v61 = vld [vmem:[#allocation8 + $0x1a4] ss:$16 sps:$4 sm:$0xff]  }
 0x136   : > { %1053 = vmatpush1.bf16.msra.mxu1 %v5982_v27  ;;  %v6003_v62 = vld [vmem:[#allocation8 + $0x108] ss:$16 sps:$4 sm:$0xff]   ;;  %v6036_v63 = vld [vmem:[#allocation8 + $0x1a0] ss:$16 sps:$4 sm:$0xff]   ;;  %v6011_v0 = vld [vmem:[#allocation8 + $0x12c] ss:$16 sps:$4 sm:$0xff]  }
 0x137   : > { %604 = vmatpush1.bf16.msra.mxu0 %v5946_v17  ;;  %1054 = vmatprep.subr.bf16.mxu1 %v5983_v28  ;;  %v6009_v1 = vld [vmem:[#allocation8 + $0x128] ss:$16 sps:$4 sm:$0xff]   ;;  %v6017_v2 = vld [vmem:[#allocation8 + $0x14c] ss:$16 sps:$4 sm:$0xff]   ;;  %v6037_v10 = vld [vmem:[#allocation8 + $0x1c4] ss:$16 sps:$4 sm:$0xff]  }
 0x138   : > { %605 = vmatprep.subr.bf16.mxu0 %v5947_v18  ;;  %v6015_v3 = vld [vmem:[#allocation8 + $0x148] ss:$16 sps:$4 sm:$0xff]   ;;  %v6023_v4 = vld [vmem:[#allocation8 + $0x16c] ss:$16 sps:$4 sm:$0xff]   ;;  %v6042_v13 = vld [vmem:[#allocation8 + $0x1c0] ss:$16 sps:$4 sm:$0xff]  }
 0x139   : > { %v6021_v5 = vld [vmem:[#allocation8 + $0x168] ss:$16 sps:$4 sm:$0xff]   ;;  %v6029_v6 = vld [vmem:[#allocation8 + $0x18c] ss:$16 sps:$4 sm:$0xff]   ;;  %v6043_v14 = vld [vmem:[#allocation8 + $0x1e4] ss:$16 sps:$4 sm:$0xff]  }
 0x13a   : > { %1055 = vmatpush1.bf16.msra.mxu1 %v5988_v32  ;;  %v6027_v7 = vld [vmem:[#allocation8 + $0x188] ss:$16 sps:$4 sm:$0xff]   ;;  %v6035_v8 = vld [vmem:[#allocation8 + $0x1ac] ss:$16 sps:$4 sm:$0xff]   ;;  %v6048_v17 = vld [vmem:[#allocation8 + $0x1e0] ss:$16 sps:$4 sm:$0xff]  }
 0x13b   : > { %606 = vmatpush1.bf16.msra.mxu0 %v5949_v21  ;;  %1056 = vmatprep.subr.bf16.mxu1 %v5989_v33  ;;  %v6033_v9 = vld [vmem:[#allocation8 + $0x1a8] ss:$16 sps:$4 sm:$0xff]   ;;  %v6041_v11 = vld [vmem:[#allocation8 + $0x1cc] ss:$16 sps:$4 sm:$0xff]   ;;  %s440_s23 = scalar_lea.vmem [#allocation16], %s5145_s21  ;;  %s5746_s5 = sshll.u32 %s6862_s15, 9 }
 0x13c   : > { %607 = vmatprep.subr.bf16.mxu0 %v5950_v22  ;;  %v6039_v12 = vld [vmem:[#allocation8 + $0x1c8] ss:$16 sps:$4 sm:$0xff]   ;;  %v6047_v15 = vld [vmem:[#allocation8 + $0x1ec] ss:$16 sps:$4 sm:$0xff]   ;;  %s479_s19 = scalar_lea.vmem [#allocation17], %s5146_s28  ;;  %s7630_s30 = sld [smem:[#allocation32_spill]] }
 0x13d   : > { %v6045_v16 = vld [vmem:[#allocation8 + $0x1e8] ss:$16 sps:$4 sm:$0xff]   ;;  %v1135_v20 = vld [vmem:[#allocation11 + $0x8] sm:$0xff]  ;;  %s4961_s1 = sshll.u32 %s479_s19, 4  ;;  %s4947_s15 = scalar_lea.sflag [#allocation4], %s7170_s20  ;;  %s7524_s1 = int_to_ptr.vmem [resolvable:$true] %s4961_s1 }
 0x13e   : > { %1057 = vmatpush1.bf16.msra.mxu1 %v5994_v36  ;;  %v1134_v18 = vld [vmem:[#allocation11] sm:$0xff]  ;;  %v1139_v23 = vld [vmem:[#allocation11 + $0x28] sm:$0xff]  ;;  %s6689_s22 = scalar_lea.vmem %s7524_s1, 512  ;;  %p7632_p5 = scmp.ne.s32.totalorder %s7608_s13, 0 }
 0x13f   : > { %608 = vmatpush1.bf16.msra.mxu0 %v5952_v25  ;;  %1058 = vmatprep.subr.bf16.mxu1 %v5995_v37  ;;  %v1138_v19 = vld [vmem:[#allocation11 + $0x20] sm:$0xff]  ;;  %v5229_v24 = vcombine.low %v1135_v20, %v1139_v23  ;;  %v5230_v25 = vcombine.high %v1135_v20, %v1139_v23  ;;  %v1187_v20 = vld [vmem:[#allocation11 + $0x1a8] sm:$0xff]  ;;  %p6690_p10 = scmp.ne.s32.totalorder %s7524_s1, %s6689_s22  ;;  %s6790_s17 = smov [#allocation17]  }
 0x140   : > { %1085 = vmatprep.subr.bf16.mxu0 %v5957_v26  ;;  %v5227_v21 = vcombine.low %v1134_v18, %v1138_v19  ;;  %v5228_v22 = vcombine.high %v1134_v18, %v1138_v19  ;;  %v503_v26 = vlaneseq  ;;  %v1186_v18 = vld [vmem:[#allocation11 + $0x1a0] sm:$0xff]  ;;  %v1183_v19 = vld [vmem:[#allocation11 + $0x188] sm:$0xff]  ;;  %s6693_s26 = sshll.u32 %s6790_s17, 4  ;;  %s6694_s26 = int_to_ptr.vmem [resolvable:$false] %s6693_s26 }
 0x141   : > { %p6691_p1 = pnand %p6690_p10, %p7632_p5  ;;  %s6695_s14 = scalar_lea.vmem %s6694_s26, 1024 }
 0x142   : > { %626 = vmatmul.mubr.bf16.vlgmr.msra.gmra.mrb[0].mxu0 %v484_v29  ;;  %1059 = vmatpush1.bf16.msra.mxu1 %v6000_v40  ;;  %v7179_v27 = vshrl.u32 %v503_v26, 7  ;;  %v501_v29 = vld [vmem:[#allocation7] sm:$0x3]  ;;  %v1142_v40 = vld [vmem:[#allocation11 + $0x40] sm:$0xff]  ;;  %s7631_s3 = smov %s7630_s30  ;;  %s7522_s29 = scalar_lea.hbm %s7630_s30, %s5746_s5 }
 0x143   : > { %1086 = vmatpush1.bf16.msra.mxu0 %v5955_v30  ;;  %1060 = vmatprep.subr.bf16.mxu1 %v6001_v41  ;;  %v1194_v26 = vld [vmem:[#allocation11 + $0x1e0] sm:$0xff]  ;;  %p6692_p13 = pneg %p6691_p1  ;;  %p6696_p11 = scmp.lt.s32.totalorder %s7524_s1, %s6694_s26 }
 0x144   : > { %1087 = vmatprep.subr.bf16.mxu0 %v5963_v31  ;;  %v7182_v28 = vsub.s32 0, %v7179_v27  ;;  %v7185_v30 = vsub.s32 1, %v7179_v27  ;;  %p6697_p9 = scmp.lt.s32.totalorder %s6695_s14, %s6689_s22 }
 0x146   : > { %1061 = vmatpush1.bf16.msra.mxu1 %v6006_v44  ;;  %v506_v31 = vrot.slane %v501_v29, %v7182_v28  ;;  %v510_v32 = vrot.slane %v501_v29, %v7185_v30  ;;  %v1147_v44 = vld [vmem:[#allocation11 + $0x68] sm:$0xff]  ;;  %p6698_p3 = por %p6697_p9, %p6696_p11 }
 0x147   : > { %1088 = vmatpush1.bf16.msra.mxu0 %v5961_v34  ;;  %1062 = vmatprep.subr.bf16.mxu1 %v6007_v45  ;;  %v1191_v29 = vld [vmem:[#allocation11 + $0x1c8] sm:$0xff] }
 0x148   : > { %1089 = vmatprep.subr.bf16.mxu0 %v5969_v35  ;;  %p6699_p12 = pnand %p6698_p3, %p6692_p13 }
 0x14a   : > { %1063 = vmatpush1.bf16.msra.mxu1 %v6012_v47 }
 0x14b   : > { %1090 = vmatpush1.bf16.msra.mxu0 %v5967_v38  ;;  %1064 = vmatprep.subr.bf16.mxu1 %v6013_v49  ;;  %v1150_v49 = vld [vmem:[#allocation11 + $0x80] sm:$0xff] }
 0x14c   : > { %1091 = vmatprep.subr.bf16.mxu0 %v5975_v39 }
 0x14e   : > { %1065 = vmatpush1.bf16.msra.mxu1 %v6018_v51  ;;  %v1151_v51 = vld [vmem:[#allocation11 + $0x88] sm:$0xff] }
 0x14f   : > { %1092 = vmatpush1.bf16.msra.mxu0 %v5973_v42  ;;  %1066 = vmatprep.subr.bf16.mxu1 %v6019_v53  ;;  %v1146_v42 = vld [vmem:[#allocation11 + $0x60] sm:$0xff] }
 0x150   : > { %1093 = vmatprep.subr.bf16.mxu0 %v5981_v43  ;;  %v1143_v43 = vld [vmem:[#allocation11 + $0x48] sm:$0xff]  ;;  %v5236_v47 = vcombine.high %v1142_v40, %v1146_v42  ;;  %v5235_v53 = vcombine.low %v1142_v40, %v1146_v42 }
 0x152   : > { %1067 = vmatpush1.bf16.msra.mxu1 %v6024_v55 }
 0x153   : > { %1094 = vmatpush1.bf16.msra.mxu0 %v5979_v46  ;;  %1068 = vmatprep.subr.bf16.mxu1 %v6025_v57  ;;  %v1158_v57 = vld [vmem:[#allocation11 + $0xc0] sm:$0xff] }
 0x154   : > { %1095 = vmatprep.subr.bf16.mxu0 %v5987_v48  ;;  %v5238_v48 = vcombine.high %v1143_v43, %v1147_v44 }
 0x156   : > { %1069 = vmatpush1.bf16.msra.mxu1 %v6030_v59  ;;  %v1159_v59 = vld [vmem:[#allocation11 + $0xc8] sm:$0xff] }
 0x157   : > { %1096 = vmatpush1.bf16.msra.mxu0 %v5985_v50  ;;  %1070 = vmatprep.subr.bf16.mxu1 %v6031_v61  ;;  %v1154_v50 = vld [vmem:[#allocation11 + $0xa0] sm:$0xff] }
 0x158   : > { %1097 = vmatprep.subr.bf16.mxu0 %v5993_v52  ;;  %v1155_v52 = vld [vmem:[#allocation11 + $0xa8] sm:$0xff]  ;;  %v5244_v55 = vcombine.high %v1150_v49, %v1154_v50  ;;  %v5243_v61 = vcombine.low %v1150_v49, %v1154_v50 }
 0x15a   : > { %1071 = vmatpush1.bf16.msra.mxu1 %v6036_v63 }
 0x15b   : > { %1098 = vmatpush1.bf16.msra.mxu0 %v5991_v54  ;;  %1072 = vmatprep.subr.bf16.mxu1 %v6037_v10  ;;  %v5237_v54 = vcombine.low %v1143_v43, %v1147_v44  ;;  %v1178_v10 = vld [vmem:[#allocation11 + $0x160] sm:$0xff] }
 0x15c   : > { %1099 = vmatprep.subr.bf16.mxu0 %v5999_v56  ;;  %v5246_v56 = vcombine.high %v1151_v51, %v1155_v52  ;;  %v1206_v44 = vld [vmem:[#allocation11 + $0x240] sm:$0xff] }
 0x15e   : > { %1073 = vmatpush1.bf16.msra.mxu1 %v6042_v13 }
 0x15f   : > { %1100 = vmatpush1.bf16.msra.mxu0 %v5997_v58  ;;  %1074 = vmatprep.subr.bf16.mxu1 %v6043_v14  ;;  %v1162_v58 = vld [vmem:[#allocation11 + $0xe0] sm:$0xff] }
 0x160   : > { %1101 = vmatprep.subr.bf16.mxu0 %v6005_v60  ;;  %v1163_v60 = vld [vmem:[#allocation11 + $0xe8] sm:$0xff]  ;;  %v5252_v63 = vcombine.high %v1158_v57, %v1162_v58 }
 0x162   : > { %1075 = vmatpush1.bf16.msra.mxu1 %v6048_v17  ;;  %v1182_v17 = vld [vmem:[#allocation11 + $0x180] sm:$0xff] }
 0x163   : > { %1102 = vmatpush1.bf16.msra.mxu0 %v6003_v62  ;;  %2712 = vmatprep.subr.bf16.mxu1 %v5228_v22  ;;  %v5245_v62 = vcombine.low %v1151_v51, %v1155_v52  ;;  %v5276_v23 = vcombine.high %v1182_v17, %v1186_v18  ;;  %v1214_v52 = vld [vmem:[#allocation11 + $0x280] sm:$0xff] }
 0x164   : > { %1103 = vmatprep.subr.bf16.mxu0 %v6011_v0  ;;  %v5254_v0 = vcombine.high %v1159_v59, %v1163_v60 }
 0x167   : > { %1104 = vmatpush1.bf16.msra.mxu0 %v6009_v1  ;;  %v1166_v1 = vld [vmem:[#allocation11 + $0x100] sm:$0xff] }
 0x168   : > { %1105 = vmatprep.subr.bf16.mxu0 %v6017_v2  ;;  %v1170_v2 = vld [vmem:[#allocation11 + $0x120] sm:$0xff] }
 0x169   : > { %v5259_v13 = vcombine.low %v1166_v1, %v1170_v2 }
 0x16b   : > { %1106 = vmatpush1.bf16.msra.mxu0 %v6015_v3  ;;  %v1167_v3 = vld [vmem:[#allocation11 + $0x108] sm:$0xff] }
 0x16c   : > { %1107 = vmatprep.subr.bf16.mxu0 %v6023_v4  ;;  %v1171_v4 = vld [vmem:[#allocation11 + $0x128] sm:$0xff] }
 0x16d   : > { %v5261_v14 = vcombine.low %v1167_v3, %v1171_v4 }
 0x16f   : > { %1108 = vmatpush1.bf16.msra.mxu0 %v6021_v5  ;;  %v5251_v5 = vcombine.low %v1158_v57, %v1162_v58 }
 0x170   : > { %1109 = vmatprep.subr.bf16.mxu0 %v6029_v6  ;;  %v5253_v6 = vcombine.low %v1159_v59, %v1163_v60  ;;  %v1222_v60 = vld [vmem:[#allocation11 + $0x2c0] sm:$0xff] }
 0x173   : > { %1110 = vmatpush1.bf16.msra.mxu0 %v6027_v7  ;;  %v5260_v7 = vcombine.high %v1166_v1, %v1170_v2 }
 0x174   : > { %1111 = vmatprep.subr.bf16.mxu0 %v6035_v8  ;;  %v5262_v8 = vcombine.high %v1167_v3, %v1171_v4  ;;  %v1230_v4 = vld [vmem:[#allocation11 + $0x300] sm:$0xff] }
 0x177   : > { %1112 = vmatpush1.bf16.msra.mxu0 %v6033_v9  ;;  %v1174_v9 = vld [vmem:[#allocation11 + $0x140] sm:$0xff] }
 0x178   : > { %1113 = vmatprep.subr.bf16.mxu0 %v6041_v11  ;;  %v1175_v11 = vld [vmem:[#allocation11 + $0x148] sm:$0xff] }
 0x17b   : > { %1114 = vmatpush1.bf16.msra.mxu0 %v6039_v12  ;;  %v1179_v12 = vld [vmem:[#allocation11 + $0x168] sm:$0xff] }
 0x17c   : > { %1115 = vmatprep.subr.bf16.mxu0 %v6047_v15  ;;  %v5268_v15 = vcombine.high %v1174_v9, %v1178_v10  ;;  %v5269_v22 = vcombine.low %v1175_v11, %v1179_v12 }
 0x17f   : > { %1116 = vmatpush1.bf16.msra.mxu0 %v6045_v16  ;;  %v5270_v16 = vcombine.high %v1175_v11, %v1179_v12  ;;  %v1238_v12 = vld [vmem:[#allocation11 + $0x340] sm:$0xff] }
 0x180   : > { %2794 = vmatprep.subr.bf16.mxu0 %v5230_v25  ;;  %v1190_v25 = vld [vmem:[#allocation11 + $0x1c0] sm:$0xff] }
 0x181   : > { %v5283_v40 = vcombine.low %v1190_v25, %v1194_v26 }
 0x215   : > { %v627_v33 = vpop.f32.mrb[0].mxu0 }
 0x216   : > { %v628_v34 = vadd.f32 %v627_v33, %v506_v31  ;;  %v629_v35 = vpop.f32.mrb[1].mxu0  ;;  %v1195_v31 = vld [vmem:[#allocation11 + $0x1e8] sm:$0xff]  ;;  %v5277_v33 = vcombine.low %v1183_v19, %v1187_v20 }
 0x217   : > { %v630_v36 = vadd.f32 %v629_v35, %v510_v32  ;;  %v631_v37 = vpop.f32.mrb[2].mxu0  ;;  %v5275_v32 = vcombine.low %v1182_v17, %v1186_v18  ;;  %v5286_v35 = vcombine.high %v1191_v29, %v1195_v31 }
 0x218   : > { %v634_v38 = vmax.f32 %v628_v34, 0.0  ;;  %v632_v39 = vpop.f32.mrb[3].mxu0  ;;  %v5284_v34 = vcombine.high %v1190_v25, %v1194_v26  ;;  %v1202_v37 = vld [vmem:[#allocation11 + $0x220] sm:$0xff]  ;;  %v1251_v26 = vld [vmem:[#allocation11 + $0x3a8] sm:$0xff] }
 0x219   : > { %v635_v41 = vmax.f32 %v630_v36, 0.0  ;;  %v1198_v36 = vld [vmem:[#allocation11 + $0x200] sm:$0xff]  ;;  %v1203_v39 = vld [vmem:[#allocation11 + $0x228] sm:$0xff] }
 0x21a   : > { %v636_v46 = vpack.c.bf16 %v634_v38, %v634_v38  ;;  %v1199_v38 = vld [vmem:[#allocation11 + $0x208] sm:$0xff]  ;;  %v5292_v42 = vcombine.high %v1198_v36, %v1202_v37 }
 0x21b   : > { %v637_v45 = vpack.c.bf16 %v635_v41, %v635_v41  ;;  %v5285_v41 = vcombine.low %v1191_v29, %v1195_v31  ;;  %v5294_v43 = vcombine.high %v1199_v38, %v1203_v39  ;;  %v5293_v49 = vcombine.low %v1199_v38, %v1203_v39 }
 0x21d   : > { %1076 = vmatprep.mubr.bf16.mxu1 %v637_v45  ;;  %1117 = vmatprep.mubr.bf16.mxu0 %v637_v45  ;;  %v1210_v45 = vld [vmem:[#allocation11 + $0x260] sm:$0xff] }
 0x21e   : > { %1077 = vmatmul.mubr.bf16.vlgmr.msra.gmra.mrb[0].mxu1 %v636_v46  ;;  %1118 = vmatmul.mubr.bf16.vlgmr.msra.gmra.mrb[4].mxu0 %v636_v46  ;;  %v1207_v46 = vld [vmem:[#allocation11 + $0x248] sm:$0xff]  ;;  %v5300_v50 = vcombine.high %v1206_v44, %v1210_v45 }
 0x21f   : > { %2713 = vmatpush1.bf16.msra.mxu1 %v5227_v21  ;;  %2795 = vmatpush1.bf16.msra.mxu0 %v5229_v24  ;;  %v5267_v21 = vcombine.low %v1174_v9, %v1178_v10  ;;  %v5278_v24 = vcombine.high %v1183_v19, %v1187_v20 }
 0x220   : > { %2714 = vmatprep.subr.bf16.mxu1 %v5236_v47  ;;  %2796 = vmatprep.subr.bf16.mxu0 %v5238_v48  ;;  %v1211_v47 = vld [vmem:[#allocation11 + $0x268] sm:$0xff]  ;;  %v5291_v48 = vcombine.low %v1198_v36, %v1202_v37 }
 0x221   : > { %v5302_v51 = vcombine.high %v1207_v46, %v1211_v47  ;;  %v5301_v57 = vcombine.low %v1207_v46, %v1211_v47  ;;  %v1259_v37 = vld [vmem:[#allocation11 + $0x3e8] sm:$0xff] }
 0x223   : > { %2715 = vmatpush1.bf16.msra.mxu1 %v5235_v53  ;;  %2797 = vmatpush1.bf16.msra.mxu0 %v5237_v54  ;;  %v1218_v53 = vld [vmem:[#allocation11 + $0x2a0] sm:$0xff]  ;;  %v1215_v54 = vld [vmem:[#allocation11 + $0x288] sm:$0xff] }
 0x224   : > { %2716 = vmatprep.subr.bf16.mxu1 %v5244_v55  ;;  %2798 = vmatprep.subr.bf16.mxu0 %v5246_v56  ;;  %v1219_v55 = vld [vmem:[#allocation11 + $0x2a8] sm:$0xff]  ;;  %v5299_v56 = vcombine.low %v1206_v44, %v1210_v45  ;;  %v5308_v58 = vcombine.high %v1214_v52, %v1218_v53 }
 0x225   : > { %v5310_v59 = vcombine.high %v1215_v54, %v1219_v55  ;;  %v5309_v1 = vcombine.low %v1215_v54, %v1219_v55  ;;  %v1267_v45 = vld [vmem:[#allocation11 + $0x428] sm:$0xff] }
 0x227   : > { %2717 = vmatpush1.bf16.msra.mxu1 %v5243_v61  ;;  %2799 = vmatpush1.bf16.msra.mxu0 %v5245_v62  ;;  %v1226_v61 = vld [vmem:[#allocation11 + $0x2e0] sm:$0xff]  ;;  %v1223_v62 = vld [vmem:[#allocation11 + $0x2c8] sm:$0xff] }
 0x228   : > { %2718 = vmatprep.subr.bf16.mxu1 %v5252_v63  ;;  %2800 = vmatprep.subr.bf16.mxu0 %v5254_v0  ;;  %v1227_v63 = vld [vmem:[#allocation11 + $0x2e8] sm:$0xff]  ;;  %v5307_v0 = vcombine.low %v1214_v52, %v1218_v53  ;;  %v5316_v2 = vcombine.high %v1222_v60, %v1226_v61 }
 0x229   : > { %v5318_v3 = vcombine.high %v1223_v62, %v1227_v63  ;;  %v5317_v9 = vcombine.low %v1223_v62, %v1227_v63 }
 0x22b   : > { %2719 = vmatpush1.bf16.msra.mxu1 %v5251_v5  ;;  %2801 = vmatpush1.bf16.msra.mxu0 %v5253_v6  ;;  %v1234_v5 = vld [vmem:[#allocation11 + $0x320] sm:$0xff]  ;;  %v1231_v6 = vld [vmem:[#allocation11 + $0x308] sm:$0xff] }
 0x22c   : > { %2720 = vmatprep.subr.bf16.mxu1 %v5260_v7  ;;  %2802 = vmatprep.subr.bf16.mxu0 %v5262_v8  ;;  %v1235_v7 = vld [vmem:[#allocation11 + $0x328] sm:$0xff]  ;;  %v5315_v8 = vcombine.low %v1222_v60, %v1226_v61  ;;  %v5324_v10 = vcombine.high %v1230_v4, %v1234_v5 }
 0x22d   : > { %v5326_v11 = vcombine.high %v1231_v6, %v1235_v7  ;;  %v5325_v17 = vcombine.low %v1231_v6, %v1235_v7  ;;  %v1271_v6 = vld [vmem:[#allocation11 + $0x448] sm:$0xff] }
 0x22e   : > { %v1275_v7 = vld [vmem:[#allocation11 + $0x468] sm:$0xff] }
 0x22f   : > { %2721 = vmatpush1.bf16.msra.mxu1 %v5259_v13  ;;  %2803 = vmatpush1.bf16.msra.mxu0 %v5261_v14  ;;  %v1242_v13 = vld [vmem:[#allocation11 + $0x360] sm:$0xff]  ;;  %v1239_v14 = vld [vmem:[#allocation11 + $0x348] sm:$0xff] }
 0x230   : > { %2722 = vmatprep.subr.bf16.mxu1 %v5268_v15  ;;  %2804 = vmatprep.subr.bf16.mxu0 %v5270_v16  ;;  %v1243_v15 = vld [vmem:[#allocation11 + $0x368] sm:$0xff]  ;;  %v5323_v16 = vcombine.low %v1230_v4, %v1234_v5  ;;  %v5332_v18 = vcombine.high %v1238_v12, %v1242_v13  ;;  %v5331_v20 = vcombine.low %v1238_v12, %v1242_v13  ;;  %v1274_v5 = vld [vmem:[#allocation11 + $0x460] sm:$0xff] }
 0x231   : > { %v5334_v19 = vcombine.high %v1239_v14, %v1243_v15  ;;  %v5366_v12 = vcombine.high %v1271_v6, %v1275_v7  ;;  %v1282_v13 = vld [vmem:[#allocation11 + $0x4a0] sm:$0xff] }
 0x233   : > { %2723 = vmatpush1.bf16.msra.mxu1 %v5267_v21  ;;  %2805 = vmatpush1.bf16.msra.mxu0 %v5269_v22  ;;  %v5333_v21 = vcombine.low %v1239_v14, %v1243_v15  ;;  %v1246_v22 = vld [vmem:[#allocation11 + $0x380] sm:$0xff]  ;;  %v1279_v14 = vld [vmem:[#allocation11 + $0x488] sm:$0xff] }
 0x234   : > { %2724 = vmatprep.subr.bf16.mxu1 %v5276_v23  ;;  %2806 = vmatprep.subr.bf16.mxu0 %v5278_v24  ;;  %v1250_v23 = vld [vmem:[#allocation11 + $0x3a0] sm:$0xff]  ;;  %v1247_v24 = vld [vmem:[#allocation11 + $0x388] sm:$0xff] }
 0x235   : > { %v5340_v25 = vcombine.high %v1246_v22, %v1250_v23  ;;  %v5339_v29 = vcombine.low %v1246_v22, %v1250_v23  ;;  %v5341_v31 = vcombine.low %v1247_v24, %v1251_v26  ;;  %v1283_v15 = vld [vmem:[#allocation11 + $0x4a8] sm:$0xff]  ;;  %v1290_v22 = vld [vmem:[#allocation11 + $0x4e0] sm:$0xff] }
 0x236   : > { %v1287_v23 = vld [vmem:[#allocation11 + $0x4c8] sm:$0xff] }
 0x237   : > { %2725 = vmatpush1.bf16.msra.mxu1 %v5275_v32  ;;  %2807 = vmatpush1.bf16.msra.mxu0 %v5277_v33  ;;  %v5342_v32 = vcombine.high %v1247_v24, %v1251_v26  ;;  %v1254_v33 = vld [vmem:[#allocation11 + $0x3c0] sm:$0xff]  ;;  %v1291_v24 = vld [vmem:[#allocation11 + $0x4e8] sm:$0xff]  ;;  %v5373_v26 = vcombine.low %v1279_v14, %v1283_v15 }
 0x238   : > { %2726 = vmatprep.subr.bf16.mxu1 %v5284_v34  ;;  %2808 = vmatprep.subr.bf16.mxu0 %v5286_v35  ;;  %v1258_v34 = vld [vmem:[#allocation11 + $0x3e0] sm:$0xff]  ;;  %v1255_v35 = vld [vmem:[#allocation11 + $0x3c8] sm:$0xff] }
 0x239   : > { %v5348_v36 = vcombine.high %v1254_v33, %v1258_v34  ;;  %v5347_v38 = vcombine.low %v1254_v33, %v1258_v34  ;;  %v5349_v39 = vcombine.low %v1255_v35, %v1259_v37  ;;  %v1298_v33 = vld [vmem:[#allocation11 + $0x520] sm:$0xff]  ;;  %v1295_v34 = vld [vmem:[#allocation11 + $0x508] sm:$0xff] }
 0x23b   : > { %2727 = vmatpush1.bf16.msra.mxu1 %v5283_v40  ;;  %2809 = vmatpush1.bf16.msra.mxu0 %v5285_v41  ;;  %v5350_v40 = vcombine.high %v1255_v35, %v1259_v37  ;;  %v1262_v41 = vld [vmem:[#allocation11 + $0x400] sm:$0xff]  ;;  %v1299_v35 = vld [vmem:[#allocation11 + $0x528] sm:$0xff]  ;;  %v5381_v37 = vcombine.low %v1287_v23, %v1291_v24 }
 0x23c   : > { %2728 = vmatprep.subr.bf16.mxu1 %v5292_v42  ;;  %2810 = vmatprep.subr.bf16.mxu0 %v5294_v43  ;;  %v1266_v42 = vld [vmem:[#allocation11 + $0x420] sm:$0xff]  ;;  %v1263_v43 = vld [vmem:[#allocation11 + $0x408] sm:$0xff] }
 0x23d   : > { %v5356_v44 = vcombine.high %v1262_v41, %v1266_v42  ;;  %v5355_v46 = vcombine.low %v1262_v41, %v1266_v42  ;;  %v5357_v47 = vcombine.low %v1263_v43, %v1267_v45  ;;  %v1306_v41 = vld [vmem:[#allocation11 + $0x560] sm:$0xff]  ;;  %v1303_v42 = vld [vmem:[#allocation11 + $0x548] sm:$0xff] }
 0x23f   : > { %2729 = vmatpush1.bf16.msra.mxu1 %v5291_v48  ;;  %2811 = vmatpush1.bf16.msra.mxu0 %v5293_v49  ;;  %v5358_v48 = vcombine.high %v1263_v43, %v1267_v45  ;;  %v7189_v49 = vld [vmem:[#allocation10] sm:$0xf]  ;;  %v1307_v43 = vld [vmem:[#allocation11 + $0x568] sm:$0xff]  ;;  %v5389_v45 = vcombine.low %v1295_v34, %v1299_v35 }
 0x240   : > { %2730 = vmatprep.subr.bf16.mxu1 %v5300_v50  ;;  %2812 = vmatprep.subr.bf16.mxu0 %v5302_v51  ;;  %v7192_v50 = vsub.s32 3, %v7179_v27  ;;  %v707_v51 = vrot.slane %v7189_v49, %v7182_v28  ;;  %v711_v52 = vrot.slane %v7189_v49, %v7185_v30 }
 0x242   : > { %v719_v53 = vrot.slane %v7189_v49, %v7192_v50 }
 0x243   : > { %2731 = vmatpush1.bf16.msra.mxu1 %v5299_v56  ;;  %2813 = vmatpush1.bf16.msra.mxu0 %v5301_v57 }
 0x244   : > { %2732 = vmatprep.subr.bf16.mxu1 %v5308_v58  ;;  %2814 = vmatprep.subr.bf16.mxu0 %v5310_v59 }
 0x247   : > { %2733 = vmatpush1.bf16.msra.mxu1 %v5307_v0  ;;  %2815 = vmatpush1.bf16.msra.mxu0 %v5309_v1 }
 0x248   : > { %2734 = vmatprep.subr.bf16.mxu1 %v5316_v2  ;;  %2816 = vmatprep.subr.bf16.mxu0 %v5318_v3  ;;  %v1270_v3 = vld [vmem:[#allocation11 + $0x440] sm:$0xff] }
 0x24b   : > { %2735 = vmatpush1.bf16.msra.mxu1 %v5315_v8  ;;  %2817 = vmatpush1.bf16.msra.mxu0 %v5317_v9 }
 0x24c   : > { %2736 = vmatprep.subr.bf16.mxu1 %v5324_v10  ;;  %2818 = vmatprep.subr.bf16.mxu0 %v5326_v11  ;;  %v1278_v10 = vld [vmem:[#allocation11 + $0x480] sm:$0xff]  ;;  %v5364_v11 = vcombine.high %v1270_v3, %v1274_v5 }
 0x24f   : > { %2737 = vmatpush1.bf16.msra.mxu1 %v5323_v16  ;;  %2819 = vmatpush1.bf16.msra.mxu0 %v5325_v17  ;;  %v5363_v17 = vcombine.low %v1270_v3, %v1274_v5  ;;  %v1326_v3 = vld [vmem:[#allocation11 + $0x600] sm:$0xff]  ;;  %v1327_v5 = vld [vmem:[#allocation11 + $0x608] sm:$0xff] }
 0x250   : > { %2738 = vmatprep.subr.bf16.mxu1 %v5332_v18  ;;  %2820 = vmatprep.subr.bf16.mxu0 %v5334_v19  ;;  %v5365_v18 = vcombine.low %v1271_v6, %v1275_v7  ;;  %v5372_v19 = vcombine.high %v1278_v10, %v1282_v13  ;;  %v1331_v6 = vld [vmem:[#allocation11 + $0x628] sm:$0xff] }
 0x253   : > { %2739 = vmatpush1.bf16.msra.mxu1 %v5331_v20  ;;  %2821 = vmatpush1.bf16.msra.mxu0 %v5333_v21  ;;  %v5374_v20 = vcombine.high %v1279_v14, %v1283_v15  ;;  %v1286_v21 = vld [vmem:[#allocation11 + $0x4c0] sm:$0xff]  ;;  %v1335_v15 = vld [vmem:[#allocation11 + $0x648] sm:$0xff] }
 0x254   : > { %2740 = vmatprep.subr.bf16.mxu1 %v5340_v25  ;;  %2822 = vmatprep.subr.bf16.mxu0 %v5342_v32  ;;  %v5371_v25 = vcombine.low %v1278_v10, %v1282_v13  ;;  %v1294_v32 = vld [vmem:[#allocation11 + $0x500] sm:$0xff] }
 0x255   : > { %v1334_v13 = vld [vmem:[#allocation11 + $0x640] sm:$0xff] }
 0x256   : > { %v1338_v14 = vld [vmem:[#allocation11 + $0x660] sm:$0xff] }
 0x257   : > { %2741 = vmatpush1.bf16.msra.mxu1 %v5339_v29  ;;  %2823 = vmatpush1.bf16.msra.mxu0 %v5341_v31  ;;  %v5380_v29 = vcombine.high %v1286_v21, %v1290_v22  ;;  %v5382_v31 = vcombine.high %v1287_v23, %v1291_v24  ;;  %v1346_v23 = vld [vmem:[#allocation11 + $0x6a0] sm:$0xff]  ;;  %v1343_v24 = vld [vmem:[#allocation11 + $0x688] sm:$0xff] }
 0x258   : > { %2742 = vmatprep.subr.bf16.mxu1 %v5348_v36  ;;  %2824 = vmatprep.subr.bf16.mxu0 %v5350_v40  ;;  %v5379_v36 = vcombine.low %v1286_v21, %v1290_v22  ;;  %v1302_v40 = vld [vmem:[#allocation11 + $0x540] sm:$0xff] }
 0x259   : > { %v1342_v22 = vld [vmem:[#allocation11 + $0x680] sm:$0xff] }
 0x25b   : > { %2743 = vmatpush1.bf16.msra.mxu1 %v5347_v38  ;;  %2825 = vmatpush1.bf16.msra.mxu0 %v5349_v39  ;;  %v5388_v38 = vcombine.high %v1294_v32, %v1298_v33  ;;  %v5390_v39 = vcombine.high %v1295_v34, %v1299_v35  ;;  %v1354_v34 = vld [vmem:[#allocation11 + $0x6e0] sm:$0xff]  ;;  %v1351_v35 = vld [vmem:[#allocation11 + $0x6c8] sm:$0xff] }
 0x25c   : > { %2753 = vmatprep.subr.bf16.mxu1 %v5356_v44  ;;  %2835 = vmatprep.subr.bf16.mxu0 %v5358_v48  ;;  %v5387_v44 = vcombine.low %v1294_v32, %v1298_v33  ;;  %v1310_v48 = vld [vmem:[#allocation11 + $0x580] sm:$0xff] }
 0x25d   : > { %v1350_v33 = vld [vmem:[#allocation11 + $0x6c0] sm:$0xff] }
 0x2f1   : > { %v1078_v54 = vpop.f32.mrb[0].mxu1  ;;  %v7200_v55 = vpop.f32.mrb[4].mxu0 }
 0x2f2   : > { %v1079_v56 = vadd.f32 %v1078_v54, %v707_v51  ;;  %v1080_v57 = vpop.f32.mrb[1].mxu1  ;;  %v1121_v58 = vpop.f32.mrb[5].mxu0  ;;  %v1314_v51 = vld [vmem:[#allocation11 + $0x5a0] sm:$0xff]  ;;  %v5395_v54 = vcombine.low %v1302_v40, %v1306_v41 }
 0x2f3   : > { %v1081_v59 = vadd.f32 %v1080_v57, %v711_v52  ;;  %v1122_v60 = vadd.f32 %v1121_v58, %v719_v53  ;;  %v1082_v61 = vpop.f32.mrb[2].mxu1  ;;  %v1123_v62 = vpop.f32.mrb[6].mxu0  ;;  %v1311_v52 = vld [vmem:[#allocation11 + $0x588] sm:$0xff]  ;;  %v5404_v57 = vcombine.high %v1310_v48, %v1314_v51 }
 0x2f4   : > { %v1126_v63 = vmax.f32 %v1079_v56, 0.0  ;;  %v1083_v0 = vpop.f32.mrb[3].mxu1  ;;  %v1124_v1 = vpop.f32.mrb[7].mxu0  ;;  %v1315_v53 = vld [vmem:[#allocation11 + $0x5a8] sm:$0xff]  ;;  %v5397_v56 = vcombine.low %v1303_v42, %v1307_v43 }
 0x2f5   : > { %v1127_v2 = vmax.f32 %v1081_v59, 0.0  ;;  %v1129_v4 = vmax.f32 %v1122_v60, 0.0  ;;  %v5406_v58 = vcombine.high %v1311_v52, %v1315_v53  ;;  %v1318_v59 = vld [vmem:[#allocation11 + $0x5c0] sm:$0xff]  ;;  %v1319_v61 = vld [vmem:[#allocation11 + $0x5c8] sm:$0xff]  ;;  %v5405_v0 = vcombine.low %v1311_v52, %v1315_v53 }
 0x2f6   : > { %v7204_v9 = vpack.c.bf16 %v1126_v63, %v1126_v63  ;;  %v1322_v60 = vld [vmem:[#allocation11 + $0x5e0] sm:$0xff]  ;;  %v1323_v62 = vld [vmem:[#allocation11 + $0x5e8] sm:$0xff]  ;;  %v5403_v63 = vcombine.low %v1310_v48, %v1314_v51 }
 0x2f7   : > { %v7202_v8 = vpack.c.bf16 %v1127_v2, %v1127_v2  ;;  %v7208_v16 = vpack.c.bf16 %v1129_v4, %v1129_v4  ;;  %v5412_v1 = vcombine.high %v1318_v59, %v1322_v60  ;;  %v5414_v2 = vcombine.high %v1319_v61, %v1323_v62  ;;  %v1330_v4 = vld [vmem:[#allocation11 + $0x620] sm:$0xff]  ;;  %v1367_v53 = vld [vmem:[#allocation11 + $0x748] sm:$0xff] }
 0x2f8   : > { %v5411_v7 = vcombine.low %v1318_v59, %v1322_v60  ;;  %v5413_v10 = vcombine.low %v1319_v61, %v1323_v62  ;;  %v1366_v51 = vld [vmem:[#allocation11 + $0x740] sm:$0xff] }
 0x2f9   : > { %2744 = vmatprep.mubr.bf16.mxu1 %v7202_v8  ;;  %2826 = vmatprep.mubr.bf16.mxu0 %v7202_v8  ;;  %v1370_v52 = vld [vmem:[#allocation11 + $0x760] sm:$0xff] }
 0x2fa   : > { %2745 = vmatmul.mubr.bf16.vlgmr.msra.gmra.mrb[4].mxu1 %v7204_v9  ;;  %2827 = vmatmul.mubr.bf16.vlgmr.msra.gmra.mrb[8].mxu0 %v7204_v9  ;;  %v5460_v59 = vcombine.high %v1366_v51, %v1370_v52  ;;  %v1374_v61 = vld [vmem:[#allocation11 + $0x780] sm:$0xff] }
 0x2fb   : > { %2754 = vmatpush1.bf16.msra.mxu1 %v5355_v46  ;;  %2836 = vmatpush1.bf16.msra.mxu0 %v5357_v47  ;;  %v5396_v46 = vcombine.high %v1302_v40, %v1306_v41  ;;  %v5398_v47 = vcombine.high %v1303_v42, %v1307_v43  ;;  %v1358_v41 = vld [vmem:[#allocation11 + $0x700] sm:$0xff]  ;;  %v1359_v43 = vld [vmem:[#allocation11 + $0x708] sm:$0xff] }
 0x2fc   : > { %2785 = vmatprep.mubr.bf16.mxu1 %v7208_v16  ;;  %2867 = vmatprep.mubr.bf16.mxu0 %v7208_v16  ;;  %v1362_v42 = vld [vmem:[#allocation11 + $0x720] sm:$0xff] }
 0x2fd   : > { %2755 = vmatprep.subr.bf16.mxu1 %v5364_v11  ;;  %2837 = vmatprep.subr.bf16.mxu0 %v5366_v12  ;;  %v5420_v11 = vcombine.high %v1326_v3, %v1330_v4  ;;  %v5422_v12 = vcombine.high %v1327_v5, %v1331_v6  ;;  %v1378_v62 = vld [vmem:[#allocation11 + $0x7a0] sm:$0xff] }
 0x2ff   : > { %2756 = vmatpush1.bf16.msra.mxu1 %v5363_v17  ;;  %2838 = vmatpush1.bf16.msra.mxu0 %v5365_v18  ;;  %v1339_v17 = vld [vmem:[#allocation11 + $0x668] sm:$0xff]  ;;  %v5419_v18 = vcombine.low %v1326_v3, %v1330_v4  ;;  %v5468_v4 = vcombine.high %v1374_v61, %v1378_v62 }
 0x300   : > { %2757 = vmatprep.subr.bf16.mxu1 %v5372_v19  ;;  %2839 = vmatprep.subr.bf16.mxu0 %v5374_v20  ;;  %v5421_v19 = vcombine.low %v1327_v5, %v1331_v6  ;;  %v5428_v20 = vcombine.high %v1334_v13, %v1338_v14  ;;  %v5430_v21 = vcombine.high %v1335_v15, %v1339_v17  ;;  %v1382_v6 = vld [vmem:[#allocation11 + $0x7c0] sm:$0xff] }
 0x303   : > { %2758 = vmatpush1.bf16.msra.mxu1 %v5371_v25  ;;  %2840 = vmatpush1.bf16.msra.mxu0 %v5373_v26  ;;  %v1347_v25 = vld [vmem:[#allocation11 + $0x6a8] sm:$0xff]  ;;  %v5427_v26 = vcombine.low %v1334_v13, %v1338_v14 }
 0x304   : > { %2759 = vmatprep.subr.bf16.mxu1 %v5380_v29  ;;  %2841 = vmatprep.subr.bf16.mxu0 %v5382_v31  ;;  %v5429_v29 = vcombine.low %v1335_v15, %v1339_v17  ;;  %v5436_v31 = vcombine.high %v1342_v22, %v1346_v23  ;;  %v5438_v32 = vcombine.high %v1343_v24, %v1347_v25 }
 0x307   : > { %2760 = vmatpush1.bf16.msra.mxu1 %v5379_v36  ;;  %2842 = vmatpush1.bf16.msra.mxu0 %v5381_v37  ;;  %v1355_v36 = vld [vmem:[#allocation11 + $0x6e8] sm:$0xff]  ;;  %v5435_v37 = vcombine.low %v1342_v22, %v1346_v23 }
 0x308   : > { %2761 = vmatprep.subr.bf16.mxu1 %v5388_v38  ;;  %2843 = vmatprep.subr.bf16.mxu0 %v5390_v39  ;;  %v5437_v38 = vcombine.low %v1343_v24, %v1347_v25  ;;  %v5444_v39 = vcombine.high %v1350_v33, %v1354_v34  ;;  %v5446_v40 = vcombine.high %v1351_v35, %v1355_v36 }
 0x30b   : > { %2762 = vmatpush1.bf16.msra.mxu1 %v5387_v44  ;;  %2844 = vmatpush1.bf16.msra.mxu0 %v5389_v45  ;;  %v1363_v44 = vld [vmem:[#allocation11 + $0x728] sm:$0xff]  ;;  %v5443_v45 = vcombine.low %v1350_v33, %v1354_v34 }
 0x30c   : > { %2763 = vmatprep.subr.bf16.mxu1 %v5396_v46  ;;  %2845 = vmatprep.subr.bf16.mxu0 %v5398_v47  ;;  %v5445_v46 = vcombine.low %v1351_v35, %v1355_v36  ;;  %v5452_v47 = vcombine.high %v1358_v41, %v1362_v42  ;;  %v5454_v48 = vcombine.high %v1359_v43, %v1363_v44 }
 0x30f   : > { %2764 = vmatpush1.bf16.msra.mxu1 %v5395_v54  ;;  %2846 = vmatpush1.bf16.msra.mxu0 %v5397_v56  ;;  %v1371_v54 = vld [vmem:[#allocation11 + $0x768] sm:$0xff]  ;;  %v5451_v56 = vcombine.low %v1358_v41, %v1362_v42 }
 0x310   : > { %2765 = vmatprep.subr.bf16.mxu1 %v5404_v57  ;;  %2847 = vmatprep.subr.bf16.mxu0 %v5406_v58  ;;  %v5453_v57 = vcombine.low %v1359_v43, %v1363_v44  ;;  %v7215_v58 = vsub.s32 2, %v7179_v27  ;;  %v5462_v60 = vcombine.high %v1367_v53, %v1371_v54 }
 0x312   : > { %v715_v3 = vrot.slane %v7189_v49, %v7215_v58  ;;  %v1140_v49 = vld [vmem:[#allocation11 + $0x30] sm:$0xff] }
 0x313   : > { %2766 = vmatpush1.bf16.msra.mxu1 %v5403_v63  ;;  %2848 = vmatpush1.bf16.msra.mxu0 %v5405_v0  ;;  %v1375_v63 = vld [vmem:[#allocation11 + $0x788] sm:$0xff] }
 0x314   : > { %2767 = vmatprep.subr.bf16.mxu1 %v5412_v1  ;;  %2849 = vmatprep.subr.bf16.mxu0 %v5414_v2  ;;  %v1379_v0 = vld [vmem:[#allocation11 + $0x7a8] sm:$0xff]  ;;  %v5459_v1 = vcombine.low %v1366_v51, %v1370_v52  ;;  %v5461_v2 = vcombine.low %v1367_v53, %v1371_v54  ;;  %v1120_v14 = vadd.f32 %v7200_v55, %v715_v3  ;;  %v1145_v55 = vld [vmem:[#allocation11 + $0x58] sm:$0xff] }
 0x315   : > { %v5470_v5 = vcombine.high %v1375_v63, %v1379_v0  ;;  %v5469_v13 = vcombine.low %v1375_v63, %v1379_v0  ;;  %v1176_v0 = vld [vmem:[#allocation11 + $0x150] sm:$0xff]  ;;  %v1181_v3 = vld [vmem:[#allocation11 + $0x178] sm:$0xff] }
 0x316   : > { %v1128_v23 = vmax.f32 %v1120_v14, 0.0 }
 0x317   : > { %2768 = vmatpush1.bf16.msra.mxu1 %v5411_v7  ;;  %2850 = vmatpush1.bf16.msra.mxu0 %v5413_v10  ;;  %v1386_v7 = vld [vmem:[#allocation11 + $0x7e0] sm:$0xff]  ;;  %v1383_v10 = vld [vmem:[#allocation11 + $0x7c8] sm:$0xff] }
 0x318   : > { %2769 = vmatprep.subr.bf16.mxu1 %v5420_v11  ;;  %2851 = vmatprep.subr.bf16.mxu0 %v5422_v12  ;;  %v1387_v11 = vld [vmem:[#allocation11 + $0x7e8] sm:$0xff]  ;;  %v5467_v12 = vcombine.low %v1374_v61, %v1378_v62  ;;  %v5476_v15 = vcombine.high %v1382_v6, %v1386_v7  ;;  %v7220_v33 = vpack.c.bf16 %v1128_v23, %v1128_v23 }
 0x319   : > { %v5478_v17 = vcombine.high %v1383_v10, %v1387_v11  ;;  %v5477_v22 = vcombine.low %v1383_v10, %v1387_v11  ;;  %v1184_v10 = vld [vmem:[#allocation11 + $0x190] sm:$0xff] }
 0x31a   : > { %v1188_v11 = vld [vmem:[#allocation11 + $0x1b0] sm:$0xff] }
 0x31b   : > { %2770 = vmatpush1.bf16.msra.mxu1 %v5419_v18  ;;  %2852 = vmatpush1.bf16.msra.mxu0 %v5421_v19  ;;  %v1136_v18 = vld [vmem:[#allocation11 + $0x10] sm:$0xff]  ;;  %v1137_v19 = vld [vmem:[#allocation11 + $0x18] sm:$0xff] }
 0x31c   : > { %2771 = vmatprep.subr.bf16.mxu1 %v5428_v20  ;;  %2853 = vmatprep.subr.bf16.mxu0 %v5430_v21  ;;  %v1141_v20 = vld [vmem:[#allocation11 + $0x38] sm:$0xff]  ;;  %v5475_v21 = vcombine.low %v1382_v6, %v1386_v7  ;;  %v5232_v24 = vcombine.high %v1136_v18, %v1140_v49 }
 0x31d   : > { %v5234_v25 = vcombine.high %v1137_v19, %v1141_v20  ;;  %v5233_v34 = vcombine.low %v1137_v19, %v1141_v20  ;;  %v1196_v19 = vld [vmem:[#allocation11 + $0x1f0] sm:$0xff]  ;;  %v1193_v20 = vld [vmem:[#allocation11 + $0x1d8] sm:$0xff] }
 0x31f   : > { %2772 = vmatpush1.bf16.msra.mxu1 %v5427_v26  ;;  %2854 = vmatpush1.bf16.msra.mxu0 %v5429_v29  ;;  %v1144_v26 = vld [vmem:[#allocation11 + $0x50] sm:$0xff] }
 0x320   : > { %2773 = vmatprep.subr.bf16.mxu1 %v5436_v31  ;;  %2855 = vmatprep.subr.bf16.mxu0 %v5438_v32  ;;  %v1148_v29 = vld [vmem:[#allocation11 + $0x70] sm:$0xff]  ;;  %v1149_v31 = vld [vmem:[#allocation11 + $0x78] sm:$0xff]  ;;  %v5231_v32 = vcombine.low %v1136_v18, %v1140_v49 }
 0x321   : > { %v5240_v35 = vcombine.high %v1144_v26, %v1148_v29  ;;  %v5242_v36 = vcombine.high %v1145_v55, %v1149_v31  ;;  %v5239_v41 = vcombine.low %v1144_v26, %v1148_v29  ;;  %v5241_v42 = vcombine.low %v1145_v55, %v1149_v31  ;;  %v1192_v49 = vld [vmem:[#allocation11 + $0x1d0] sm:$0xff]  ;;  %v1201_v55 = vld [vmem:[#allocation11 + $0x218] sm:$0xff] }
 0x322   : > { %v1200_v26 = vld [vmem:[#allocation11 + $0x210] sm:$0xff]  ;;  %v1205_v31 = vld [vmem:[#allocation11 + $0x238] sm:$0xff] }
 0x323   : > { %2774 = vmatpush1.bf16.msra.mxu1 %v5435_v37  ;;  %2856 = vmatpush1.bf16.msra.mxu0 %v5437_v38  ;;  %v1152_v37 = vld [vmem:[#allocation11 + $0x90] sm:$0xff] }
 0x324   : > { %2775 = vmatprep.subr.bf16.mxu1 %v5444_v39  ;;  %2857 = vmatprep.subr.bf16.mxu0 %v5446_v40  ;;  %v1156_v38 = vld [vmem:[#allocation11 + $0xb0] sm:$0xff]  ;;  %v1153_v39 = vld [vmem:[#allocation11 + $0x98] sm:$0xff] }
 0x325   : > { %v1157_v40 = vld [vmem:[#allocation11 + $0xb8] sm:$0xff]  ;;  %v5248_v43 = vcombine.high %v1152_v37, %v1156_v38  ;;  %v5247_v51 = vcombine.low %v1152_v37, %v1156_v38  ;;  %v1204_v29 = vld [vmem:[#allocation11 + $0x230] sm:$0xff] }
 0x326   : > { %v5250_v44 = vcombine.high %v1153_v39, %v1157_v40  ;;  %v5249_v52 = vcombine.low %v1153_v39, %v1157_v40  ;;  %v1208_v37 = vld [vmem:[#allocation11 + $0x250] sm:$0xff]  ;;  %v1209_v39 = vld [vmem:[#allocation11 + $0x258] sm:$0xff] }
 0x327   : > { %2776 = vmatpush1.bf16.msra.mxu1 %v5443_v45  ;;  %2858 = vmatpush1.bf16.msra.mxu0 %v5445_v46  ;;  %v1160_v45 = vld [vmem:[#allocation11 + $0xd0] sm:$0xff]  ;;  %v1213_v40 = vld [vmem:[#allocation11 + $0x278] sm:$0xff] }
 0x328   : > { %2777 = vmatprep.subr.bf16.mxu1 %v5452_v47  ;;  %2859 = vmatprep.subr.bf16.mxu0 %v5454_v48  ;;  %v1164_v46 = vld [vmem:[#allocation11 + $0xf0] sm:$0xff]  ;;  %v1161_v47 = vld [vmem:[#allocation11 + $0xd8] sm:$0xff] }
 0x329   : > { %v1165_v48 = vld [vmem:[#allocation11 + $0xf8] sm:$0xff]  ;;  %v5256_v53 = vcombine.high %v1160_v45, %v1164_v46  ;;  %v1212_v38 = vld [vmem:[#allocation11 + $0x270] sm:$0xff] }
 0x32a   : > { %v5258_v54 = vcombine.high %v1161_v47, %v1165_v48  ;;  %v5257_v61 = vcombine.low %v1161_v47, %v1165_v48  ;;  %v1217_v47 = vld [vmem:[#allocation11 + $0x298] sm:$0xff] }
 0x32b   : > { %2778 = vmatpush1.bf16.msra.mxu1 %v5451_v56  ;;  %2860 = vmatpush1.bf16.msra.mxu0 %v5453_v57  ;;  %v1168_v56 = vld [vmem:[#allocation11 + $0x110] sm:$0xff]  ;;  %v1221_v48 = vld [vmem:[#allocation11 + $0x2b8] sm:$0xff] }
 0x32c   : > { %2779 = vmatprep.subr.bf16.mxu1 %v5460_v59  ;;  %2861 = vmatprep.subr.bf16.mxu0 %v5462_v60  ;;  %v1172_v57 = vld [vmem:[#allocation11 + $0x130] sm:$0xff]  ;;  %v1173_v59 = vld [vmem:[#allocation11 + $0x138] sm:$0xff]  ;;  %v5255_v60 = vcombine.low %v1160_v45, %v1164_v46 }
 0x32d   : > { %v5264_v62 = vcombine.high %v1168_v56, %v1172_v57  ;;  %v1216_v45 = vld [vmem:[#allocation11 + $0x290] sm:$0xff] }
 0x32e   : > { %v1220_v46 = vld [vmem:[#allocation11 + $0x2b0] sm:$0xff] }
 0x32f   : > { %2780 = vmatpush1.bf16.msra.mxu1 %v5459_v1  ;;  %2862 = vmatpush1.bf16.msra.mxu0 %v5461_v2  ;;  %v1180_v1 = vld [vmem:[#allocation11 + $0x170] sm:$0xff]  ;;  %v1177_v2 = vld [vmem:[#allocation11 + $0x158] sm:$0xff] }
 0x330   : > { %2781 = vmatprep.subr.bf16.mxu1 %v5468_v4  ;;  %2863 = vmatprep.subr.bf16.mxu0 %v5470_v5  ;;  %v5263_v4 = vcombine.low %v1168_v56, %v1172_v57  ;;  %v5272_v6 = vcombine.high %v1176_v0, %v1180_v1  ;;  %v5274_v7 = vcombine.high %v1177_v2, %v1181_v3  ;;  %v1224_v56 = vld [vmem:[#allocation11 + $0x2d0] sm:$0xff] }
 0x331   : > { %v5271_v14 = vcombine.low %v1176_v0, %v1180_v1  ;;  %v1228_v57 = vld [vmem:[#allocation11 + $0x2f0] sm:$0xff] }
 0x332   : > { %v1232_v0 = vld [vmem:[#allocation11 + $0x310] sm:$0xff] }
 0x333   : > { %2782 = vmatpush1.bf16.msra.mxu1 %v5467_v12  ;;  %2864 = vmatpush1.bf16.msra.mxu0 %v5469_v13  ;;  %v1185_v12 = vld [vmem:[#allocation11 + $0x198] sm:$0xff]  ;;  %v1236_v1 = vld [vmem:[#allocation11 + $0x330] sm:$0xff] }
 0x334   : > { %2783 = vmatprep.subr.bf16.mxu1 %v5476_v15  ;;  %2865 = vmatprep.subr.bf16.mxu0 %v5478_v17  ;;  %v1189_v13 = vld [vmem:[#allocation11 + $0x1b8] sm:$0xff]  ;;  %v5273_v15 = vcombine.low %v1177_v2, %v1181_v3  ;;  %v5280_v17 = vcombine.high %v1184_v10, %v1188_v11 }
 0x335   : > { %v5282_v18 = vcombine.high %v1185_v12, %v1189_v13  ;;  %v5281_v23 = vcombine.low %v1185_v12, %v1189_v13  ;;  %v1233_v2 = vld [vmem:[#allocation11 + $0x318] sm:$0xff] }
 0x336   : > { %v1237_v3 = vld [vmem:[#allocation11 + $0x338] sm:$0xff] }
 0x337   : > { %2784 = vmatpush1.bf16.msra.mxu1 %v5475_v21  ;;  %2866 = vmatpush1.bf16.msra.mxu0 %v5477_v22  ;;  %v1197_v21 = vld [vmem:[#allocation11 + $0x1f8] sm:$0xff]  ;;  %v5279_v22 = vcombine.low %v1184_v10, %v1188_v11  ;;  %v1240_v10 = vld [vmem:[#allocation11 + $0x350] sm:$0xff] }
 0x338   : > { %2876 = vmatprep.subr.bf16.mxu1 %v5232_v24  ;;  %2958 = vmatprep.subr.bf16.mxu0 %v5234_v25  ;;  %v5288_v24 = vcombine.high %v1192_v49, %v1196_v19  ;;  %v5290_v25 = vcombine.high %v1193_v20, %v1197_v21  ;;  %v1244_v11 = vld [vmem:[#allocation11 + $0x370] sm:$0xff]  ;;  %v1241_v12 = vld [vmem:[#allocation11 + $0x358] sm:$0xff] }
 0x339   : > { %v1245_v13 = vld [vmem:[#allocation11 + $0x378] sm:$0xff] }
 0x33a   : > { %2786 = vmatmul.mubr.bf16.vlgmr.msra.gmra.mrb[4].mxu1 %v7220_v33  ;;  %2868 = vmatmul.mubr.bf16.vlgmr.msra.gmra.mrb[8].mxu0 %v7220_v33 }
 0x33b   : > { %2877 = vmatpush1.bf16.msra.mxu1 %v5231_v32  ;;  %2908 = vmatprep.mubr.bf16.mxu1 %v7202_v8  ;;  %v5287_v32 = vcombine.low %v1192_v49, %v1196_v19  ;;  %v1248_v49 = vld [vmem:[#allocation11 + $0x390] sm:$0xff] }
 0x33c   : > { %2959 = vmatpush1.bf16.msra.mxu0 %v5233_v34  ;;  %2990 = vmatprep.mubr.bf16.mxu0 %v7202_v8  ;;  %v1169_v8 = vld [vmem:[#allocation11 + $0x118] sm:$0xff]  ;;  %v5289_v34 = vcombine.low %v1193_v20, %v1197_v21  ;;  %v1252_v19 = vld [vmem:[#allocation11 + $0x3b0] sm:$0xff] }
 0x33d   : > { %2878 = vmatprep.subr.bf16.mxu1 %v5240_v35  ;;  %2960 = vmatprep.subr.bf16.mxu0 %v5242_v36  ;;  %v5266_v63 = vcombine.high %v1169_v8, %v1173_v59  ;;  %v5265_v5 = vcombine.low %v1169_v8, %v1173_v59  ;;  %v5296_v35 = vcombine.high %v1200_v26, %v1204_v29  ;;  %v1225_v8 = vld [vmem:[#allocation11 + $0x2d8] sm:$0xff] }
 0x33e   : > { %v5298_v36 = vcombine.high %v1201_v55, %v1205_v31  ;;  %v1229_v59 = vld [vmem:[#allocation11 + $0x2f8] sm:$0xff] }
 0x33f   : > { %2879 = vmatpush1.bf16.msra.mxu1 %v5239_v41  ;;  %v5295_v41 = vcombine.low %v1200_v26, %v1204_v29  ;;  %v1249_v20 = vld [vmem:[#allocation11 + $0x398] sm:$0xff]  ;;  %v1256_v26 = vld [vmem:[#allocation11 + $0x3d0] sm:$0xff] }
 0x340   : > { %2961 = vmatpush1.bf16.msra.mxu0 %v5241_v42  ;;  %2880 = vmatprep.subr.bf16.mxu1 %v5248_v43  ;;  %v5297_v42 = vcombine.low %v1201_v55, %v1205_v31  ;;  %v5304_v43 = vcombine.high %v1208_v37, %v1212_v38  ;;  %v1253_v21 = vld [vmem:[#allocation11 + $0x3b8] sm:$0xff]  ;;  %v1260_v29 = vld [vmem:[#allocation11 + $0x3f0] sm:$0xff] }
 0x341   : > { %2962 = vmatprep.subr.bf16.mxu0 %v5250_v44  ;;  %v5306_v44 = vcombine.high %v1209_v39, %v1213_v40  ;;  %v1257_v55 = vld [vmem:[#allocation11 + $0x3d8] sm:$0xff] }
 0x342   : > { %v1261_v31 = vld [vmem:[#allocation11 + $0x3f8] sm:$0xff] }
 0x343   : > { %2881 = vmatpush1.bf16.msra.mxu1 %v5247_v51  ;;  %v5303_v51 = vcombine.low %v1208_v37, %v1212_v38  ;;  %v1264_v37 = vld [vmem:[#allocation11 + $0x410] sm:$0xff] }
 0x344   : > { %2963 = vmatpush1.bf16.msra.mxu0 %v5249_v52  ;;  %2882 = vmatprep.subr.bf16.mxu1 %v5256_v53  ;;  %v5305_v52 = vcombine.low %v1209_v39, %v1213_v40  ;;  %v5312_v53 = vcombine.high %v1216_v45, %v1220_v46  ;;  %v1268_v38 = vld [vmem:[#allocation11 + $0x430] sm:$0xff]  ;;  %v1265_v39 = vld [vmem:[#allocation11 + $0x418] sm:$0xff] }
 0x345   : > { %2964 = vmatprep.subr.bf16.mxu0 %v5258_v54  ;;  %v5314_v54 = vcombine.high %v1217_v47, %v1221_v48  ;;  %v1269_v40 = vld [vmem:[#allocation11 + $0x438] sm:$0xff] }
 0x347   : > { %2883 = vmatpush1.bf16.msra.mxu1 %v5255_v60  ;;  %v5311_v60 = vcombine.low %v1216_v45, %v1220_v46  ;;  %v1272_v45 = vld [vmem:[#allocation11 + $0x450] sm:$0xff] }
 0x348   : > { %2965 = vmatpush1.bf16.msra.mxu0 %v5257_v61  ;;  %2884 = vmatprep.subr.bf16.mxu1 %v5264_v62  ;;  %v5313_v61 = vcombine.low %v1217_v47, %v1221_v48  ;;  %v5320_v62 = vcombine.high %v1224_v56, %v1228_v57  ;;  %v1276_v46 = vld [vmem:[#allocation11 + $0x470] sm:$0xff]  ;;  %v5359_v47 = vcombine.low %v1264_v37, %v1268_v38  ;;  %v1273_v48 = vld [vmem:[#allocation11 + $0x458] sm:$0xff] }
 0x349   : > { %2966 = vmatprep.subr.bf16.mxu0 %v5266_v63  ;;  %v5322_v63 = vcombine.high %v1225_v8, %v1229_v59 }
 0x34b   : > { %2885 = vmatpush1.bf16.msra.mxu1 %v5263_v4  ;;  %v5319_v4 = vcombine.low %v1224_v56, %v1228_v57  ;;  %v1284_v56 = vld [vmem:[#allocation11 + $0x4b0] sm:$0xff] }
 0x34c   : > { %2967 = vmatpush1.bf16.msra.mxu0 %v5265_v5  ;;  %2886 = vmatprep.subr.bf16.mxu1 %v5272_v6  ;;  %v5321_v5 = vcombine.low %v1225_v8, %v1229_v59  ;;  %v5328_v6 = vcombine.high %v1232_v0, %v1236_v1  ;;  %v1281_v8 = vld [vmem:[#allocation11 + $0x498] sm:$0xff] }
 0x34d   : > { %2968 = vmatprep.subr.bf16.mxu0 %v5274_v7  ;;  %v5330_v7 = vcombine.high %v1233_v2, %v1237_v3  ;;  %v1285_v59 = vld [vmem:[#allocation11 + $0x4b8] sm:$0xff] }
 0x34f   : > { %2887 = vmatpush1.bf16.msra.mxu1 %v5271_v14  ;;  %v5327_v14 = vcombine.low %v1232_v0, %v1236_v1  ;;  %v1288_v0 = vld [vmem:[#allocation11 + $0x4d0] sm:$0xff] }
 0x350   : > { %2969 = vmatpush1.bf16.msra.mxu0 %v5273_v15  ;;  %2888 = vmatprep.subr.bf16.mxu1 %v5280_v17  ;;  %v5329_v15 = vcombine.low %v1233_v2, %v1237_v3  ;;  %v5336_v17 = vcombine.high %v1240_v10, %v1244_v11  ;;  %v1292_v1 = vld [vmem:[#allocation11 + $0x4f0] sm:$0xff]  ;;  %v1289_v2 = vld [vmem:[#allocation11 + $0x4d8] sm:$0xff] }
 0x351   : > { %2970 = vmatprep.subr.bf16.mxu0 %v5282_v18  ;;  %v5338_v18 = vcombine.high %v1241_v12, %v1245_v13  ;;  %v1293_v3 = vld [vmem:[#allocation11 + $0x4f8] sm:$0xff] }
 0x353   : > { %2889 = vmatpush1.bf16.msra.mxu1 %v5279_v22  ;;  %v5335_v22 = vcombine.low %v1240_v10, %v1244_v11  ;;  %v1300_v10 = vld [vmem:[#allocation11 + $0x530] sm:$0xff]  ;;  %v1297_v11 = vld [vmem:[#allocation11 + $0x518] sm:$0xff] }
 0x354   : > { %2971 = vmatpush1.bf16.msra.mxu0 %v5281_v23  ;;  %2890 = vmatprep.subr.bf16.mxu1 %v5288_v24  ;;  %v5337_v23 = vcombine.low %v1241_v12, %v1245_v13  ;;  %v5344_v24 = vcombine.high %v1248_v49, %v1252_v19  ;;  %v1301_v12 = vld [vmem:[#allocation11 + $0x538] sm:$0xff]  ;;  %v5385_v13 = vcombine.low %v1289_v2, %v1293_v3 }
 0x355   : > { %2972 = vmatprep.subr.bf16.mxu0 %v5290_v25  ;;  %v5346_v25 = vcombine.high %v1249_v20, %v1253_v21 }
 0x357   : > { %2891 = vmatpush1.bf16.msra.mxu1 %v5287_v32  ;;  %v5343_v32 = vcombine.low %v1248_v49, %v1252_v19  ;;  %v1305_v49 = vld [vmem:[#allocation11 + $0x558] sm:$0xff] }
 0x358   : > { %2973 = vmatpush1.bf16.msra.mxu0 %v5289_v34  ;;  %2892 = vmatprep.subr.bf16.mxu1 %v5296_v35  ;;  %v5345_v34 = vcombine.low %v1249_v20, %v1253_v21  ;;  %v5352_v35 = vcombine.high %v1256_v26, %v1260_v29  ;;  %v1309_v19 = vld [vmem:[#allocation11 + $0x578] sm:$0xff]  ;;  %v5393_v21 = vcombine.low %v1297_v11, %v1301_v12 }
 0x359   : > { %2974 = vmatprep.subr.bf16.mxu0 %v5298_v36  ;;  %v5354_v36 = vcombine.high %v1257_v55, %v1261_v31 }
 0x35b   : > { %2893 = vmatpush1.bf16.msra.mxu1 %v5295_v41  ;;  %v5351_v41 = vcombine.low %v1256_v26, %v1260_v29  ;;  %v1313_v26 = vld [vmem:[#allocation11 + $0x598] sm:$0xff] }
 0x35c   : > { %2975 = vmatpush1.bf16.msra.mxu0 %v5297_v42  ;;  %2894 = vmatprep.subr.bf16.mxu1 %v5304_v43  ;;  %v5353_v42 = vcombine.low %v1257_v55, %v1261_v31  ;;  %v5360_v43 = vcombine.high %v1264_v37, %v1268_v38  ;;  %v1317_v29 = vld [vmem:[#allocation11 + $0x5b8] sm:$0xff]  ;;  %v5401_v31 = vcombine.low %v1305_v49, %v1309_v19 }
 0x35d   : > { %2976 = vmatprep.subr.bf16.mxu0 %v5306_v44  ;;  %v5362_v44 = vcombine.high %v1265_v39, %v1269_v40  ;;  %v1321_v37 = vld [vmem:[#allocation11 + $0x5d8] sm:$0xff] }
 0x35e   : > { %v1325_v38 = vld [vmem:[#allocation11 + $0x5f8] sm:$0xff] }
 0x35f   : > { %2895 = vmatpush1.bf16.msra.mxu1 %v5303_v51  ;;  %v1277_v51 = vld [vmem:[#allocation11 + $0x478] sm:$0xff] }
 0x360   : > { %2977 = vmatpush1.bf16.msra.mxu0 %v5305_v52  ;;  %2896 = vmatprep.subr.bf16.mxu1 %v5312_v53  ;;  %v5361_v52 = vcombine.low %v1265_v39, %v1269_v40  ;;  %v5368_v53 = vcombine.high %v1272_v45, %v1276_v46  ;;  %v5370_v57 = vcombine.high %v1273_v48, %v1277_v51 }
 0x361   : > { %2978 = vmatprep.subr.bf16.mxu0 %v5314_v54  ;;  %v1280_v54 = vld [vmem:[#allocation11 + $0x490] sm:$0xff]  ;;  %v5409_v40 = vcombine.low %v1313_v26, %v1317_v29 }
 0x363   : > { %2897 = vmatpush1.bf16.msra.mxu1 %v5311_v60  ;;  %v5367_v60 = vcombine.low %v1272_v45, %v1276_v46  ;;  %v1329_v45 = vld [vmem:[#allocation11 + $0x618] sm:$0xff] }
 0x364   : > { %2979 = vmatpush1.bf16.msra.mxu0 %v5313_v61  ;;  %2898 = vmatprep.subr.bf16.mxu1 %v5320_v62  ;;  %v5369_v61 = vcombine.low %v1273_v48, %v1277_v51  ;;  %v5376_v62 = vcombine.high %v1280_v54, %v1284_v56  ;;  %v1333_v46 = vld [vmem:[#allocation11 + $0x638] sm:$0xff]  ;;  %v5417_v48 = vcombine.low %v1321_v37, %v1325_v38 }
 0x365   : > { %2980 = vmatprep.subr.bf16.mxu0 %v5322_v63  ;;  %v5378_v63 = vcombine.high %v1281_v8, %v1285_v59 }
 0x367   : > { %2899 = vmatpush1.bf16.msra.mxu1 %v5319_v4  ;;  %v5375_v4 = vcombine.low %v1280_v54, %v1284_v56  ;;  %v1340_v54 = vld [vmem:[#allocation11 + $0x670] sm:$0xff]  ;;  %v1337_v56 = vld [vmem:[#allocation11 + $0x658] sm:$0xff] }
 0x368   : > { %2981 = vmatpush1.bf16.msra.mxu0 %v5321_v5  ;;  %2900 = vmatprep.subr.bf16.mxu1 %v5328_v6  ;;  %v5384_v5 = vcombine.high %v1288_v0, %v1292_v1  ;;  %v5386_v6 = vcombine.high %v1289_v2, %v1293_v3 }
 0x369   : > { %2982 = vmatprep.subr.bf16.mxu0 %v5330_v7  ;;  %v1296_v7 = vld [vmem:[#allocation11 + $0x510] sm:$0xff] }
 0x36a   : > { %v5391_v20 = vcombine.low %v1296_v7, %v1300_v10 }
 0x36b   : > { %2901 = vmatpush1.bf16.msra.mxu1 %v5327_v14  ;;  %v5392_v14 = vcombine.high %v1296_v7, %v1300_v10  ;;  %v1353_v7 = vld [vmem:[#allocation11 + $0x6d8] sm:$0xff] }
 0x36c   : > { %2983 = vmatpush1.bf16.msra.mxu0 %v5329_v15  ;;  %2902 = vmatprep.subr.bf16.mxu1 %v5336_v17  ;;  %v5394_v15 = vcombine.high %v1297_v11, %v1301_v12  ;;  %v1304_v17 = vld [vmem:[#allocation11 + $0x550] sm:$0xff]  ;;  %v1357_v10 = vld [vmem:[#allocation11 + $0x6f8] sm:$0xff] }
 0x36d   : > { %2984 = vmatprep.subr.bf16.mxu0 %v5338_v18  ;;  %v1308_v18 = vld [vmem:[#allocation11 + $0x570] sm:$0xff] }
 0x36e   : > { %v5399_v55 = vcombine.low %v1304_v17, %v1308_v18 }
 0x36f   : > { %2903 = vmatpush1.bf16.msra.mxu1 %v5335_v22  ;;  %v5400_v22 = vcombine.high %v1304_v17, %v1308_v18  ;;  %v1361_v17 = vld [vmem:[#allocation11 + $0x718] sm:$0xff] }
 0x370   : > { %2985 = vmatpush1.bf16.msra.mxu0 %v5337_v23  ;;  %2904 = vmatprep.subr.bf16.mxu1 %v5344_v24  ;;  %v5402_v23 = vcombine.high %v1305_v49, %v1309_v19  ;;  %v1312_v24 = vld [vmem:[#allocation11 + $0x590] sm:$0xff]  ;;  %v1365_v18 = vld [vmem:[#allocation11 + $0x738] sm:$0xff]  ;;  %v5449_v19 = vcombine.low %v1353_v7, %v1357_v10 }
 0x371   : > { %2986 = vmatprep.subr.bf16.mxu0 %v5346_v25  ;;  %v1316_v25 = vld [vmem:[#allocation11 + $0x5b0] sm:$0xff] }
 0x372   : > { %v5407_v39 = vcombine.low %v1312_v24, %v1316_v25 }
 0x373   : > { %2905 = vmatpush1.bf16.msra.mxu1 %v5343_v32  ;;  %v5408_v32 = vcombine.high %v1312_v24, %v1316_v25  ;;  %v1369_v24 = vld [vmem:[#allocation11 + $0x758] sm:$0xff] }
 0x374   : > { %2987 = vmatpush1.bf16.msra.mxu0 %v5345_v34  ;;  %2906 = vmatprep.subr.bf16.mxu1 %v5352_v35  ;;  %v5410_v34 = vcombine.high %v1313_v26, %v1317_v29  ;;  %v1320_v35 = vld [vmem:[#allocation11 + $0x5d0] sm:$0xff]  ;;  %v1373_v25 = vld [vmem:[#allocation11 + $0x778] sm:$0xff]  ;;  %v5457_v29 = vcombine.low %v1361_v17, %v1365_v18 }
 0x375   : > { %2988 = vmatprep.subr.bf16.mxu0 %v5354_v36  ;;  %v1324_v36 = vld [vmem:[#allocation11 + $0x5f0] sm:$0xff] }
 0x377   : > { %2907 = vmatpush1.bf16.msra.mxu1 %v5351_v41  ;;  %v5416_v41 = vcombine.high %v1320_v35, %v1324_v36 }
 0x378   : > { %2989 = vmatpush1.bf16.msra.mxu0 %v5353_v42  ;;  %2917 = vmatprep.subr.bf16.mxu1 %v5360_v43  ;;  %v5418_v42 = vcombine.high %v1321_v37, %v1325_v38  ;;  %v1328_v43 = vld [vmem:[#allocation11 + $0x610] sm:$0xff]  ;;  %v5465_v38 = vcombine.low %v1369_v24, %v1373_v25 }
 0x379   : > { %2999 = vmatprep.subr.bf16.mxu0 %v5362_v44  ;;  %v1332_v44 = vld [vmem:[#allocation11 + $0x630] sm:$0xff] }
 0x37a   : > { %2909 = vmatmul.mubr.bf16.vlgmr.msra.gmra.mrb[8].mxu1 %v7204_v9  ;;  %v5424_v51 = vcombine.high %v1328_v43, %v1332_v44 }
 0x37b   : > { %2991 = vmatmul.mubr.bf16.vlgmr.msra.gmra.mrb[12].mxu0 %v7204_v9  ;;  %2918 = vmatpush1.bf16.msra.mxu1 %v5359_v47  ;;  %v5377_v9 = vcombine.low %v1281_v8, %v1285_v59  ;;  %v5415_v47 = vcombine.low %v1320_v35, %v1324_v36  ;;  %v5423_v8 = vcombine.low %v1328_v43, %v1332_v44  ;;  %v1377_v35 = vld [vmem:[#allocation11 + $0x798] sm:$0xff] }
 0x37c   : > { %2949 = vmatprep.mubr.bf16.mxu1 %v7208_v16  ;;  %3000 = vmatpush1.bf16.msra.mxu0 %v5361_v52  ;;  %v5426_v52 = vcombine.high %v1329_v45, %v1333_v46  ;;  %v5425_v59 = vcombine.low %v1329_v45, %v1333_v46  ;;  %v1381_v36 = vld [vmem:[#allocation11 + $0x7b8] sm:$0xff] }
 0x37d   : > { %3031 = vmatprep.mubr.bf16.mxu0 %v7208_v16  ;;  %2919 = vmatprep.subr.bf16.mxu1 %v5368_v53  ;;  %v5383_v16 = vcombine.low %v1288_v0, %v1292_v1  ;;  %v1336_v53 = vld [vmem:[#allocation11 + $0x650] sm:$0xff]  ;;  %v1345_v0 = vld [vmem:[#allocation11 + $0x698] sm:$0xff]  ;;  %v5473_v46 = vcombine.low %v1377_v35, %v1381_v36 }
 0x37e   : > { %3001 = vmatprep.subr.bf16.mxu0 %v5370_v57  ;;  %v1341_v57 = vld [vmem:[#allocation11 + $0x678] sm:$0xff]  ;;  %v5431_v2 = vcombine.low %v1336_v53, %v1340_v54 }
 0x37f   : > { %2920 = vmatpush1.bf16.msra.mxu1 %v5367_v60  ;;  %v5432_v60 = vcombine.high %v1336_v53, %v1340_v54  ;;  %v1349_v1 = vld [vmem:[#allocation11 + $0x6b8] sm:$0xff]  ;;  %v5433_v3 = vcombine.low %v1337_v56, %v1341_v57  ;;  %v6054_v54 = vld [vmem:[%s7173_s9 + $0xc] ss:$16 sps:$4 sm:$0xff]  }
 0x380   : > { %3002 = vmatpush1.bf16.msra.mxu0 %v5369_v61  ;;  %2921 = vmatprep.subr.bf16.mxu1 %v5376_v62  ;;  %v5434_v61 = vcombine.high %v1337_v56, %v1341_v57  ;;  %v1344_v62 = vld [vmem:[#allocation11 + $0x690] sm:$0xff]  ;;  %v5441_v12 = vcombine.low %v1345_v0, %v1349_v1  ;;  %v1385_v43 = vld [vmem:[#allocation11 + $0x7d8] sm:$0xff] }
 0x381   : > { %3003 = vmatprep.subr.bf16.mxu0 %v5378_v63  ;;  %v1348_v63 = vld [vmem:[#allocation11 + $0x6b0] sm:$0xff]  ;;  %v1389_v44 = vld [vmem:[#allocation11 + $0x7f8] sm:$0xff] }
 0x382   : > { %v5439_v11 = vcombine.low %v1344_v62, %v1348_v63  ;;  %v6051_v53 = vld [vmem:[%s7173_s9 + $0x4] ss:$16 sps:$4 sm:$0xff]   ;;  %v6049_v56 = vld [vmem:[%s7173_s9] ss:$16 sps:$4 sm:$0xff]   ;;  %v6052_v57 = vld [vmem:[%s7173_s9 + $0x8] ss:$16 sps:$4 sm:$0xff]  }
 0x383   : > { %2922 = vmatpush1.bf16.msra.mxu1 %v5375_v4  ;;  %v5440_v4 = vcombine.high %v1344_v62, %v1348_v63  ;;  %v6063_v62 = vld [vmem:[%s7173_s9 + $0x44] ss:$16 sps:$4 sm:$0xff]   ;;  %v6066_v63 = vld [vmem:[%s7173_s9 + $0x4c] ss:$16 sps:$4 sm:$0xff]  }
 0x384   : > { %3004 = vmatpush1.bf16.msra.mxu0 %v5377_v9  ;;  %2923 = vmatprep.subr.bf16.mxu1 %v5384_v5  ;;  %v5442_v9 = vcombine.high %v1345_v0, %v1349_v1  ;;  %v1352_v5 = vld [vmem:[#allocation11 + $0x6d0] sm:$0xff]  ;;  %v6061_v0 = vld [vmem:[%s7173_s9 + $0x40] ss:$16 sps:$4 sm:$0xff]  }
 0x385   : > { %3005 = vmatprep.subr.bf16.mxu0 %v5386_v6  ;;  %v1356_v6 = vld [vmem:[#allocation11 + $0x6f0] sm:$0xff] }
 0x386   : > { %v5447_v49 = vcombine.low %v1352_v5, %v1356_v6  ;;  %v6064_v1 = vld [vmem:[%s7173_s9 + $0x48] ss:$16 sps:$4 sm:$0xff]  }
 0x387   : > { %2924 = vmatpush1.bf16.msra.mxu1 %v5383_v16  ;;  %v5448_v16 = vcombine.high %v1352_v5, %v1356_v6  ;;  %v6078_v5 = vld [vmem:[%s7173_s9 + $0x8c] ss:$16 sps:$4 sm:$0xff]   ;;  %v6073_v6 = vld [vmem:[%s7173_s9 + $0x80] ss:$16 sps:$4 sm:$0xff]  }
 0x388   : > { %3006 = vmatpush1.bf16.msra.mxu0 %v5385_v13  ;;  %2925 = vmatprep.subr.bf16.mxu1 %v5392_v14  ;;  %v5450_v13 = vcombine.high %v1353_v7, %v1357_v10  ;;  %v1360_v14 = vld [vmem:[#allocation11 + $0x710] sm:$0xff]  ;;  %v6081_v10 = vld [vmem:[%s7173_s9 + $0xa4] ss:$16 sps:$4 sm:$0xff]  }
 0x389   : > { %3007 = vmatprep.subr.bf16.mxu0 %v5394_v15  ;;  %v1364_v15 = vld [vmem:[#allocation11 + $0x730] sm:$0xff] }
 0x38a   : > { %v5455_v26 = vcombine.low %v1360_v14, %v1364_v15  ;;  %v6076_v7 = vld [vmem:[%s7173_s9 + $0x88] ss:$16 sps:$4 sm:$0xff]  }
 0x38b   : > { %2926 = vmatpush1.bf16.msra.mxu1 %v5391_v20  ;;  %v5456_v20 = vcombine.high %v1360_v14, %v1364_v15  ;;  %v6090_v14 = vld [vmem:[%s7173_s9 + $0xcc] ss:$16 sps:$4 sm:$0xff]   ;;  %v6085_v15 = vld [vmem:[%s7173_s9 + $0xc0] ss:$16 sps:$4 sm:$0xff]  }
 0x38c   : > { %3008 = vmatpush1.bf16.msra.mxu0 %v5393_v21  ;;  %2927 = vmatprep.subr.bf16.mxu1 %v5400_v22  ;;  %v5458_v21 = vcombine.high %v1361_v17, %v1365_v18  ;;  %v1368_v22 = vld [vmem:[#allocation11 + $0x750] sm:$0xff]  ;;  %v6093_v18 = vld [vmem:[%s7173_s9 + $0xe4] ss:$16 sps:$4 sm:$0xff]  }
 0x38d   : > { %3009 = vmatprep.subr.bf16.mxu0 %v5402_v23  ;;  %v1372_v23 = vld [vmem:[#allocation11 + $0x770] sm:$0xff] }
 0x38e   : > { %v5463_v37 = vcombine.low %v1368_v22, %v1372_v23  ;;  %v6088_v17 = vld [vmem:[%s7173_s9 + $0xc8] ss:$16 sps:$4 sm:$0xff]  }
 0x38f   : > { %2928 = vmatpush1.bf16.msra.mxu1 %v5399_v55  ;;  %v5464_v55 = vcombine.high %v1368_v22, %v1372_v23  ;;  %v6102_v22 = vld [vmem:[%s7173_s9 + $0x10c] ss:$16 sps:$4 sm:$0xff]   ;;  %v6097_v23 = vld [vmem:[%s7173_s9 + $0x100] ss:$16 sps:$4 sm:$0xff]  }
 0x390   : > { %3010 = vmatpush1.bf16.msra.mxu0 %v5401_v31  ;;  %2929 = vmatprep.subr.bf16.mxu1 %v5408_v32  ;;  %v5466_v31 = vcombine.high %v1369_v24, %v1373_v25  ;;  %v1376_v32 = vld [vmem:[#allocation11 + $0x790] sm:$0xff]  ;;  %v6105_v25 = vld [vmem:[%s7173_s9 + $0x124] ss:$16 sps:$4 sm:$0xff]  }
 0x391   : > { %3011 = vmatprep.subr.bf16.mxu0 %v5410_v34  ;;  %v1380_v34 = vld [vmem:[#allocation11 + $0x7b0] sm:$0xff] }
 0x392   : > { %v5471_v45 = vcombine.low %v1376_v32, %v1380_v34  ;;  %v6100_v24 = vld [vmem:[%s7173_s9 + $0x108] ss:$16 sps:$4 sm:$0xff]  }
 0x393   : > { %2930 = vmatpush1.bf16.msra.mxu1 %v5407_v39  ;;  %v5472_v39 = vcombine.high %v1376_v32, %v1380_v34  ;;  %v6114_v32 = vld [vmem:[%s7173_s9 + $0x14c] ss:$16 sps:$4 sm:$0xff]   ;;  %v6109_v34 = vld [vmem:[%s7173_s9 + $0x140] ss:$16 sps:$4 sm:$0xff]  }
 0x394   : > { %3012 = vmatpush1.bf16.msra.mxu0 %v5409_v40  ;;  %2931 = vmatprep.subr.bf16.mxu1 %v5416_v41  ;;  %v5474_v40 = vcombine.high %v1377_v35, %v1381_v36  ;;  %v1384_v41 = vld [vmem:[#allocation11 + $0x7d0] sm:$0xff]  ;;  %v6117_v36 = vld [vmem:[%s7173_s9 + $0x164] ss:$16 sps:$4 sm:$0xff]  }
 0x395   : > { %3013 = vmatprep.subr.bf16.mxu0 %v5418_v42  ;;  %v1388_v42 = vld [vmem:[#allocation11 + $0x7f0] sm:$0xff] }
 0x396   : > { %v6112_v35 = vld [vmem:[%s7173_s9 + $0x148] ss:$16 sps:$4 sm:$0xff]  }
 0x397   : > { %2932 = vmatpush1.bf16.msra.mxu1 %v5415_v47  ;;  %v5480_v47 = vcombine.high %v1384_v41, %v1388_v42 }
 0x398   : > { %3014 = vmatpush1.bf16.msra.mxu0 %v5417_v48  ;;  %2933 = vmatprep.subr.bf16.mxu1 %v5424_v51  ;;  %v5482_v48 = vcombine.high %v1385_v43, %v1389_v44  ;;  %v5479_v51 = vcombine.low %v1384_v41, %v1388_v42  ;;  %v6126_v41 = vld [vmem:[%s7173_s9 + $0x18c] ss:$16 sps:$4 sm:$0xff]   ;;  %v6121_v42 = vld [vmem:[%s7173_s9 + $0x180] ss:$16 sps:$4 sm:$0xff]  }
 0x399   : > { %3015 = vmatprep.subr.bf16.mxu0 %v5426_v52  ;;  %v5481_v52 = vcombine.low %v1385_v43, %v1389_v44  ;;  %v6124_v43 = vld [vmem:[%s7173_s9 + $0x188] ss:$16 sps:$4 sm:$0xff]   ;;  %v6129_v44 = vld [vmem:[%s7173_s9 + $0x1a4] ss:$16 sps:$4 sm:$0xff]  }
 0x39b   : > { %2934 = vmatpush1.bf16.msra.mxu1 %v5423_v8  ;;  %v6057_v8 = vld [vmem:[%s7173_s9 + $0x24] ss:$16 sps:$4 sm:$0xff]  }
 0x39c   : > { %3016 = vmatpush1.bf16.msra.mxu0 %v5425_v59  ;;  %2935 = vmatprep.subr.bf16.mxu1 %v5432_v60  ;;  %v6060_v59 = vld [vmem:[%s7173_s9 + $0x2c] ss:$16 sps:$4 sm:$0xff]   ;;  %v6055_v60 = vld [vmem:[%s7173_s9 + $0x20] ss:$16 sps:$4 sm:$0xff]  }
 0x39d   : > { %3017 = vmatprep.subr.bf16.mxu0 %v5434_v61  ;;  %v6058_v61 = vld [vmem:[%s7173_s9 + $0x28] ss:$16 sps:$4 sm:$0xff]  }
 0x39f   : > { %2936 = vmatpush1.bf16.msra.mxu1 %v5431_v2  ;;  %v6072_v2 = vld [vmem:[%s7173_s9 + $0x6c] ss:$16 sps:$4 sm:$0xff]  }
 0x3a0   : > { %3018 = vmatpush1.bf16.msra.mxu0 %v5433_v3  ;;  %2937 = vmatprep.subr.bf16.mxu1 %v5440_v4  ;;  %v6067_v3 = vld [vmem:[%s7173_s9 + $0x60] ss:$16 sps:$4 sm:$0xff]   ;;  %v6070_v4 = vld [vmem:[%s7173_s9 + $0x68] ss:$16 sps:$4 sm:$0xff]  }
 0x3a1   : > { %3019 = vmatprep.subr.bf16.mxu0 %v5442_v9  ;;  %v6075_v9 = vld [vmem:[%s7173_s9 + $0x84] ss:$16 sps:$4 sm:$0xff]  }
 0x3a3   : > { %2938 = vmatpush1.bf16.msra.mxu1 %v5439_v11  ;;  %v6084_v11 = vld [vmem:[%s7173_s9 + $0xac] ss:$16 sps:$4 sm:$0xff]  }
 0x3a4   : > { %3020 = vmatpush1.bf16.msra.mxu0 %v5441_v12  ;;  %2939 = vmatprep.subr.bf16.mxu1 %v5448_v16  ;;  %v6079_v12 = vld [vmem:[%s7173_s9 + $0xa0] ss:$16 sps:$4 sm:$0xff]   ;;  %v6082_v16 = vld [vmem:[%s7173_s9 + $0xa8] ss:$16 sps:$4 sm:$0xff]  }
 0x3a5   : > { %3021 = vmatprep.subr.bf16.mxu0 %v5450_v13  ;;  %v6087_v13 = vld [vmem:[%s7173_s9 + $0xc4] ss:$16 sps:$4 sm:$0xff]  }
 0x3a7   : > { %2940 = vmatpush1.bf16.msra.mxu1 %v5447_v49  ;;  %v6096_v49 = vld [vmem:[%s7173_s9 + $0xec] ss:$16 sps:$4 sm:$0xff]  }
 0x3a8   : > { %3022 = vmatpush1.bf16.msra.mxu0 %v5449_v19  ;;  %2941 = vmatprep.subr.bf16.mxu1 %v5456_v20  ;;  %v6091_v19 = vld [vmem:[%s7173_s9 + $0xe0] ss:$16 sps:$4 sm:$0xff]   ;;  %v6094_v20 = vld [vmem:[%s7173_s9 + $0xe8] ss:$16 sps:$4 sm:$0xff]  }
 0x3a9   : > { %3023 = vmatprep.subr.bf16.mxu0 %v5458_v21  ;;  %v6099_v21 = vld [vmem:[%s7173_s9 + $0x104] ss:$16 sps:$4 sm:$0xff]  }
 0x3ab   : > { %2942 = vmatpush1.bf16.msra.mxu1 %v5455_v26  ;;  %v6108_v26 = vld [vmem:[%s7173_s9 + $0x12c] ss:$16 sps:$4 sm:$0xff]  }
 0x3ac   : > { %3024 = vmatpush1.bf16.msra.mxu0 %v5457_v29  ;;  %2943 = vmatprep.subr.bf16.mxu1 %v5464_v55  ;;  %v6103_v29 = vld [vmem:[%s7173_s9 + $0x120] ss:$16 sps:$4 sm:$0xff]   ;;  %v6106_v55 = vld [vmem:[%s7173_s9 + $0x128] ss:$16 sps:$4 sm:$0xff]  }
 0x3ad   : > { %3025 = vmatprep.subr.bf16.mxu0 %v5466_v31  ;;  %v6111_v31 = vld [vmem:[%s7173_s9 + $0x144] ss:$16 sps:$4 sm:$0xff]  }
 0x3af   : > { %2944 = vmatpush1.bf16.msra.mxu1 %v5463_v37  ;;  %v6120_v37 = vld [vmem:[%s7173_s9 + $0x16c] ss:$16 sps:$4 sm:$0xff]  }
 0x3b0   : > { %3026 = vmatpush1.bf16.msra.mxu0 %v5465_v38  ;;  %2945 = vmatprep.subr.bf16.mxu1 %v5472_v39  ;;  %v6115_v38 = vld [vmem:[%s7173_s9 + $0x160] ss:$16 sps:$4 sm:$0xff]   ;;  %v6118_v39 = vld [vmem:[%s7173_s9 + $0x168] ss:$16 sps:$4 sm:$0xff]  }
 0x3b1   : > { %3027 = vmatprep.subr.bf16.mxu0 %v5474_v40  ;;  %v6123_v40 = vld [vmem:[%s7173_s9 + $0x184] ss:$16 sps:$4 sm:$0xff]  }
 0x3b3   : > { %2946 = vmatpush1.bf16.msra.mxu1 %v5471_v45  ;;  %v6132_v45 = vld [vmem:[%s7173_s9 + $0x1ac] ss:$16 sps:$4 sm:$0xff]  }
 0x3b4   : > { %3028 = vmatpush1.bf16.msra.mxu0 %v5473_v46  ;;  %2947 = vmatprep.subr.bf16.mxu1 %v5480_v47  ;;  %v6127_v46 = vld [vmem:[%s7173_s9 + $0x1a0] ss:$16 sps:$4 sm:$0xff]   ;;  %v6130_v47 = vld [vmem:[%s7173_s9 + $0x1a8] ss:$16 sps:$4 sm:$0xff]  }
 0x3b5   : > { %3029 = vmatprep.subr.bf16.mxu0 %v5482_v48  ;;  %v6135_v48 = vld [vmem:[%s7173_s9 + $0x1c4] ss:$16 sps:$4 sm:$0xff]  }
 0x3b7   : > { %2948 = vmatpush1.bf16.msra.mxu1 %v5479_v51  ;;  %v6138_v51 = vld [vmem:[%s7173_s9 + $0x1cc] ss:$16 sps:$4 sm:$0xff]  }
 0x3b8   : > { %3030 = vmatpush1.bf16.msra.mxu0 %v5481_v52  ;;  %4614 = vmatprep.subr.bf16.mxu1 %v6051_v53  ;;  %v6133_v52 = vld [vmem:[%s7173_s9 + $0x1c0] ss:$16 sps:$4 sm:$0xff]   ;;  %v6136_v53 = vld [vmem:[%s7173_s9 + $0x1c8] ss:$16 sps:$4 sm:$0xff]  }
 0x3b9   : > { %4778 = vmatprep.subr.bf16.mxu0 %v6054_v54  ;;  %v6141_v54 = vld [vmem:[%s7173_s9 + $0x1e4] ss:$16 sps:$4 sm:$0xff]  }
 0x3ba   : > { %2950 = vmatmul.mubr.bf16.vlgmr.msra.gmra.mrb[8].mxu1 %v7220_v33 }
 0x3bb   : > { %3032 = vmatmul.mubr.bf16.vlgmr.msra.gmra.mrb[12].mxu0 %v7220_v33  ;;  %4615 = vmatpush1.bf16.msra.mxu1 %v6049_v56  ;;  %v6069_v33 = vld [vmem:[%s7173_s9 + $0x64] ss:$16 sps:$4 sm:$0xff]   ;;  %v6144_v56 = vld [vmem:[%s7173_s9 + $0x1ec] ss:$16 sps:$4 sm:$0xff]  }
 0x3bc   : > { %4779 = vmatpush1.bf16.msra.mxu0 %v6052_v57  ;;  %4616 = vmatprep.subr.bf16.mxu1 %v6057_v8  ;;  %v6139_v57 = vld [vmem:[%s7173_s9 + $0x1e0] ss:$16 sps:$4 sm:$0xff]   ;;  %v6142_v8 = vld [vmem:[%s7173_s9 + $0x1e8] ss:$16 sps:$4 sm:$0xff]  }
 0x3bd   : > { %4780 = vmatprep.subr.bf16.mxu0 %v6060_v59  ;;  %v6147_v59 = vld [vmem:[%s7173_s9 + $0x204] ss:$16 sps:$4 sm:$0xff]  }
 0x3bf   : > { %4617 = vmatpush1.bf16.msra.mxu1 %v6055_v60  ;;  %v6150_v60 = vld [vmem:[%s7173_s9 + $0x20c] ss:$16 sps:$4 sm:$0xff]  }
 0x3c0   : > { %4781 = vmatpush1.bf16.msra.mxu0 %v6058_v61  ;;  %4618 = vmatprep.subr.bf16.mxu1 %v6063_v62  ;;  %v7298_v61 = vld [vmem:[#allocation13] sm:$0xff] }
 0x3c1   : > { %4782 = vmatprep.subr.bf16.mxu0 %v6066_v63  ;;  %v1395_v62 = vrot.slane %v7298_v61, %v7182_v28  ;;  %v1399_v63 = vrot.slane %v7298_v61, %v7185_v30 }
 0x3c3   : > { %4619 = vmatpush1.bf16.msra.mxu1 %v6061_v0  ;;  %v1407_v0 = vrot.slane %v7298_v61, %v7192_v50 }
 0x3c4   : > { %4783 = vmatpush1.bf16.msra.mxu0 %v6064_v1  ;;  %4620 = vmatprep.subr.bf16.mxu1 %v6069_v33 }
 0x3c5   : > { %4784 = vmatprep.subr.bf16.mxu0 %v6072_v2 }
 0x3c7   : > { %4621 = vmatpush1.bf16.msra.mxu1 %v6067_v3 }
 0x3c8   : > { %4785 = vmatpush1.bf16.msra.mxu0 %v6070_v4  ;;  %4622 = vmatprep.subr.bf16.mxu1 %v6075_v9 }
 0x3c9   : > { %4786 = vmatprep.subr.bf16.mxu0 %v6078_v5 }
 0x3cb   : > { %4623 = vmatpush1.bf16.msra.mxu1 %v6073_v6 }
 0x3cc   : > { %4787 = vmatpush1.bf16.msra.mxu0 %v6076_v7  ;;  %4624 = vmatprep.subr.bf16.mxu1 %v6081_v10 }
 0x3cd   : > { %4788 = vmatprep.subr.bf16.mxu0 %v6084_v11 }
 0x3cf   : > { %4625 = vmatpush1.bf16.msra.mxu1 %v6079_v12 }
 0x3d0   : > { %4789 = vmatpush1.bf16.msra.mxu0 %v6082_v16  ;;  %4626 = vmatprep.subr.bf16.mxu1 %v6087_v13 }
 0x3d1   : > { %4790 = vmatprep.subr.bf16.mxu0 %v6090_v14 }
 0x3d3   : > { %4627 = vmatpush1.bf16.msra.mxu1 %v6085_v15  ;;  %v6145_v15 = vld [vmem:[%s7173_s9 + $0x200] ss:$16 sps:$4 sm:$0xff]  }
 0x3d4   : > { %4791 = vmatpush1.bf16.msra.mxu0 %v6088_v17  ;;  %4628 = vmatprep.subr.bf16.mxu1 %v6093_v18  ;;  %v6148_v17 = vld [vmem:[%s7173_s9 + $0x208] ss:$16 sps:$4 sm:$0xff]  }
 0x3d5   : > { %4792 = vmatprep.subr.bf16.mxu0 %v6096_v49  ;;  %v6153_v49 = vld [vmem:[%s7173_s9 + $0x224] ss:$16 sps:$4 sm:$0xff]  }
 0x3d7   : > { %4629 = vmatpush1.bf16.msra.mxu1 %v6091_v19  ;;  %v6156_v19 = vld [vmem:[%s7173_s9 + $0x22c] ss:$16 sps:$4 sm:$0xff]  }
 0x3d8   : > { %4793 = vmatpush1.bf16.msra.mxu0 %v6094_v20  ;;  %4630 = vmatprep.subr.bf16.mxu1 %v6099_v21  ;;  %v6151_v21 = vld [vmem:[%s7173_s9 + $0x220] ss:$16 sps:$4 sm:$0xff]  }
 0x3d9   : > { %4794 = vmatprep.subr.bf16.mxu0 %v6102_v22  ;;  %v6154_v22 = vld [vmem:[%s7173_s9 + $0x228] ss:$16 sps:$4 sm:$0xff]  }
 0x3db   : > { %4631 = vmatpush1.bf16.msra.mxu1 %v6097_v23  ;;  %v6159_v23 = vld [vmem:[%s7173_s9 + $0x244] ss:$16 sps:$4 sm:$0xff]  }
 0x3dc   : > { %4795 = vmatpush1.bf16.msra.mxu0 %v6100_v24  ;;  %4632 = vmatprep.subr.bf16.mxu1 %v6105_v25  ;;  %v6162_v24 = vld [vmem:[%s7173_s9 + $0x24c] ss:$16 sps:$4 sm:$0xff]   ;;  %v6157_v25 = vld [vmem:[%s7173_s9 + $0x240] ss:$16 sps:$4 sm:$0xff]  }
 0x3dd   : > { %4796 = vmatprep.subr.bf16.mxu0 %v6108_v26  ;;  %v6160_v26 = vld [vmem:[%s7173_s9 + $0x248] ss:$16 sps:$4 sm:$0xff]  }
 0x3df   : > { %4633 = vmatpush1.bf16.msra.mxu1 %v6103_v29  ;;  %v6165_v29 = vld [vmem:[%s7173_s9 + $0x264] ss:$16 sps:$4 sm:$0xff]  }
 0x3e0   : > { %4797 = vmatpush1.bf16.msra.mxu0 %v6106_v55  ;;  %4634 = vmatprep.subr.bf16.mxu1 %v6111_v31  ;;  %v6168_v55 = vld [vmem:[%s7173_s9 + $0x26c] ss:$16 sps:$4 sm:$0xff]   ;;  %v6163_v31 = vld [vmem:[%s7173_s9 + $0x260] ss:$16 sps:$4 sm:$0xff]  }
 0x3e1   : > { %4798 = vmatprep.subr.bf16.mxu0 %v6114_v32  ;;  %v6166_v32 = vld [vmem:[%s7173_s9 + $0x268] ss:$16 sps:$4 sm:$0xff]  }
 0x3e3   : > { %4635 = vmatpush1.bf16.msra.mxu1 %v6109_v34  ;;  %v6171_v34 = vld [vmem:[%s7173_s9 + $0x284] ss:$16 sps:$4 sm:$0xff]  }
 0x3e4   : > { %4799 = vmatpush1.bf16.msra.mxu0 %v6112_v35  ;;  %4636 = vmatprep.subr.bf16.mxu1 %v6117_v36  ;;  %v6174_v35 = vld [vmem:[%s7173_s9 + $0x28c] ss:$16 sps:$4 sm:$0xff]   ;;  %v6169_v36 = vld [vmem:[%s7173_s9 + $0x280] ss:$16 sps:$4 sm:$0xff]  }
 0x3e5   : > { %4800 = vmatprep.subr.bf16.mxu0 %v6120_v37  ;;  %v6172_v37 = vld [vmem:[%s7173_s9 + $0x288] ss:$16 sps:$4 sm:$0xff]  }
 0x3e7   : > { %4637 = vmatpush1.bf16.msra.mxu1 %v6115_v38  ;;  %v6177_v38 = vld [vmem:[%s7173_s9 + $0x2a4] ss:$16 sps:$4 sm:$0xff]  }
 0x3e8   : > { %4801 = vmatpush1.bf16.msra.mxu0 %v6118_v39  ;;  %4638 = vmatprep.subr.bf16.mxu1 %v6123_v40  ;;  %v6180_v39 = vld [vmem:[%s7173_s9 + $0x2ac] ss:$16 sps:$4 sm:$0xff]   ;;  %v6175_v40 = vld [vmem:[%s7173_s9 + $0x2a0] ss:$16 sps:$4 sm:$0xff]  }
 0x3e9   : > { %4802 = vmatprep.subr.bf16.mxu0 %v6126_v41  ;;  %v6178_v41 = vld [vmem:[%s7173_s9 + $0x2a8] ss:$16 sps:$4 sm:$0xff]  }
 0x3eb   : > { %4639 = vmatpush1.bf16.msra.mxu1 %v6121_v42  ;;  %v6183_v42 = vld [vmem:[%s7173_s9 + $0x2c4] ss:$16 sps:$4 sm:$0xff]  }
 0x3ec   : > { %4803 = vmatpush1.bf16.msra.mxu0 %v6124_v43  ;;  %4640 = vmatprep.subr.bf16.mxu1 %v6129_v44  ;;  %v6186_v43 = vld [vmem:[%s7173_s9 + $0x2cc] ss:$16 sps:$4 sm:$0xff]   ;;  %v6181_v44 = vld [vmem:[%s7173_s9 + $0x2c0] ss:$16 sps:$4 sm:$0xff]  }
 0x3ed   : > { %4804 = vmatprep.subr.bf16.mxu0 %v6132_v45  ;;  %v6184_v45 = vld [vmem:[%s7173_s9 + $0x2c8] ss:$16 sps:$4 sm:$0xff]  }
 0x3ef   : > { %4641 = vmatpush1.bf16.msra.mxu1 %v6127_v46  ;;  %v6189_v46 = vld [vmem:[%s7173_s9 + $0x2e4] ss:$16 sps:$4 sm:$0xff]  }
 0x3f0   : > { %4805 = vmatpush1.bf16.msra.mxu0 %v6130_v47  ;;  %4642 = vmatprep.subr.bf16.mxu1 %v6135_v48  ;;  %v6192_v47 = vld [vmem:[%s7173_s9 + $0x2ec] ss:$16 sps:$4 sm:$0xff]   ;;  %v6187_v48 = vld [vmem:[%s7173_s9 + $0x2e0] ss:$16 sps:$4 sm:$0xff]  }
 0x3f1   : > { %4806 = vmatprep.subr.bf16.mxu0 %v6138_v51  ;;  %v6190_v51 = vld [vmem:[%s7173_s9 + $0x2e8] ss:$16 sps:$4 sm:$0xff]  }
 0x3f3   : > { %4643 = vmatpush1.bf16.msra.mxu1 %v6133_v52  ;;  %v6195_v52 = vld [vmem:[%s7173_s9 + $0x304] ss:$16 sps:$4 sm:$0xff]  }
 0x3f4   : > { %4807 = vmatpush1.bf16.msra.mxu0 %v6136_v53  ;;  %4644 = vmatprep.subr.bf16.mxu1 %v6141_v54  ;;  %v6198_v53 = vld [vmem:[%s7173_s9 + $0x30c] ss:$16 sps:$4 sm:$0xff]   ;;  %v6193_v54 = vld [vmem:[%s7173_s9 + $0x300] ss:$16 sps:$4 sm:$0xff]  }
 0x3f5   : > { %4808 = vmatprep.subr.bf16.mxu0 %v6144_v56  ;;  %v6196_v56 = vld [vmem:[%s7173_s9 + $0x308] ss:$16 sps:$4 sm:$0xff]  }
 0x3f7   : > { %4645 = vmatpush1.bf16.msra.mxu1 %v6139_v57  ;;  %v6201_v57 = vld [vmem:[%s7173_s9 + $0x324] ss:$16 sps:$4 sm:$0xff]  }
 0x3f8   : > { %4809 = vmatpush1.bf16.msra.mxu0 %v6142_v8  ;;  %4655 = vmatprep.subr.bf16.mxu1 %v6147_v59  ;;  %v6204_v8 = vld [vmem:[%s7173_s9 + $0x32c] ss:$16 sps:$4 sm:$0xff]   ;;  %v6199_v59 = vld [vmem:[%s7173_s9 + $0x320] ss:$16 sps:$4 sm:$0xff]  }
 0x3f9   : > { %4819 = vmatprep.subr.bf16.mxu0 %v6150_v60  ;;  %v6202_v60 = vld [vmem:[%s7173_s9 + $0x328] ss:$16 sps:$4 sm:$0xff]  }
 0x40d   : > { %v2787_v1 = vpop.f32.mrb[4].mxu1  ;;  %v7306_v33 = vpop.f32.mrb[8].mxu0 }
 0x40e   : > { %v5747_v2 = vadd.f32 %v2787_v1, %v1395_v62  ;;  %v2789_v3 = vpop.f32.mrb[5].mxu1  ;;  %v2871_v4 = vpop.f32.mrb[9].mxu0  ;;  %v6207_v62 = vld [vmem:[%s7173_s9 + $0x344] ss:$16 sps:$4 sm:$0xff]   ;;  %v6208_v1 = vld [vmem:[%s7173_s9 + $0x348] ss:$16 sps:$4 sm:$0xff]  }
 0x40f   : > { %v5748_v9 = vadd.f32 %v2789_v3, %v1399_v63  ;;  %v5750_v5 = vadd.f32 %v2871_v4, %v1407_v0  ;;  %v2791_v6 = vpop.f32.mrb[6].mxu1  ;;  %v2873_v7 = vpop.f32.mrb[10].mxu0  ;;  %v6210_v63 = vld [vmem:[%s7173_s9 + $0x34c] ss:$16 sps:$4 sm:$0xff]   ;;  %v6205_v0 = vld [vmem:[%s7173_s9 + $0x340] ss:$16 sps:$4 sm:$0xff]  }
 0x410   : > { %v3040_v10 = vmax.f32 %v5747_v2, 0.0  ;;  %v2792_v11 = vpop.f32.mrb[7].mxu1  ;;  %v2874_v12 = vpop.f32.mrb[11].mxu0  ;;  %v6213_v2 = vld [vmem:[%s7173_s9 + $0x364] ss:$16 sps:$4 sm:$0xff]  }
 0x411   : > { %v3041_v16 = vmax.f32 %v5748_v9, 0.0  ;;  %v3043_v13 = vmax.f32 %v5750_v5, 0.0  ;;  %v6216_v3 = vld [vmem:[%s7173_s9 + $0x36c] ss:$16 sps:$4 sm:$0xff]   ;;  %v6211_v4 = vld [vmem:[%s7173_s9 + $0x360] ss:$16 sps:$4 sm:$0xff]  }
 0x412   : > { %v3048_v18 = vpack.c.bf16 %v3040_v10, %v3040_v10  ;;  %v6214_v9 = vld [vmem:[%s7173_s9 + $0x368] ss:$16 sps:$4 sm:$0xff]   ;;  %v6219_v5 = vld [vmem:[%s7173_s9 + $0x384] ss:$16 sps:$4 sm:$0xff]   ;;  %v6222_v6 = vld [vmem:[%s7173_s9 + $0x38c] ss:$16 sps:$4 sm:$0xff]  }
 0x413   : > { %v3049_v14 = vpack.c.bf16 %v3041_v16, %v3041_v16  ;;  %v3051_v20 = vpack.c.bf16 %v3043_v13, %v3043_v13  ;;  %v6217_v7 = vld [vmem:[%s7173_s9 + $0x380] ss:$16 sps:$4 sm:$0xff]   ;;  %v6220_v10 = vld [vmem:[%s7173_s9 + $0x388] ss:$16 sps:$4 sm:$0xff]   ;;  %v6225_v11 = vld [vmem:[%s7173_s9 + $0x3a4] ss:$16 sps:$4 sm:$0xff]  }
 0x414   : > { %v6228_v12 = vld [vmem:[%s7173_s9 + $0x3ac] ss:$16 sps:$4 sm:$0xff]   ;;  %v6223_v16 = vld [vmem:[%s7173_s9 + $0x3a0] ss:$16 sps:$4 sm:$0xff]   ;;  %v6226_v13 = vld [vmem:[%s7173_s9 + $0x3a8] ss:$16 sps:$4 sm:$0xff]  }
 0x415   : > { %4646 = vmatprep.mubr.bf16.mxu1 %v3049_v14  ;;  %4810 = vmatprep.mubr.bf16.mxu0 %v3049_v14  ;;  %v1403_v14 = vrot.slane %v7298_v61, %v7215_v58 }
 0x416   : > { %4647 = vmatmul.mubr.bf16.vlgmr.msra.gmra.mrb[12].mxu1 %v3048_v18  ;;  %4811 = vmatmul.mubr.bf16.vlgmr.msra.gmra.mrb[16].mxu0 %v3048_v18  ;;  %v6229_v18 = vld [vmem:[%s7173_s9 + $0x3c0] ss:$16 sps:$4 sm:$0xff]  }
 0x417   : > { %4656 = vmatpush1.bf16.msra.mxu1 %v6145_v15  ;;  %4820 = vmatpush1.bf16.msra.mxu0 %v6148_v17  ;;  %v6231_v15 = vld [vmem:[%s7173_s9 + $0x3c4] ss:$16 sps:$4 sm:$0xff]   ;;  %v6234_v17 = vld [vmem:[%s7173_s9 + $0x3cc] ss:$16 sps:$4 sm:$0xff]  }
 0x418   : > { %4687 = vmatprep.mubr.bf16.mxu1 %v3051_v20  ;;  %4851 = vmatprep.mubr.bf16.mxu0 %v3051_v20  ;;  %v6237_v20 = vld [vmem:[%s7173_s9 + $0x3e4] ss:$16 sps:$4 sm:$0xff]  }
 0x419   : > { %4657 = vmatprep.subr.bf16.mxu1 %v6153_v49  ;;  %4821 = vmatprep.subr.bf16.mxu0 %v6156_v19  ;;  %v6232_v49 = vld [vmem:[%s7173_s9 + $0x3c8] ss:$16 sps:$4 sm:$0xff]   ;;  %v5749_v19 = vadd.f32 %v7306_v33, %v1403_v14  ;;  %v6241_v33 = vld [vmem:[%s7173_s9 + $0x400] ss:$16 sps:$4 sm:$0xff]  }
 0x41a   : > { %v6307_v14 = vld [vmem:[%s7173_s9 + $0x560] ss:$16 sps:$4 sm:$0xff]  }
 0x41b   : > { %4658 = vmatpush1.bf16.msra.mxu1 %v6151_v21  ;;  %4822 = vmatpush1.bf16.msra.mxu0 %v6154_v22  ;;  %v6240_v21 = vld [vmem:[%s7173_s9 + $0x3ec] ss:$16 sps:$4 sm:$0xff]   ;;  %v6235_v22 = vld [vmem:[%s7173_s9 + $0x3e0] ss:$16 sps:$4 sm:$0xff]  }
 0x41c   : > { %4659 = vmatprep.subr.bf16.mxu1 %v6159_v23  ;;  %4823 = vmatprep.subr.bf16.mxu0 %v6162_v24  ;;  %v6238_v23 = vld [vmem:[%s7173_s9 + $0x3e8] ss:$16 sps:$4 sm:$0xff]   ;;  %v3042_v24 = vmax.f32 %v5749_v19, 0.0 }
 0x41d   : > { %v6316_v19 = vld [vmem:[%s7173_s9 + $0x588] ss:$16 sps:$4 sm:$0xff]  }
 0x41f   : > { %4660 = vmatpush1.bf16.msra.mxu1 %v6157_v25  ;;  %4824 = vmatpush1.bf16.msra.mxu0 %v6160_v26  ;;  %v6243_v25 = vld [vmem:[%s7173_s9 + $0x404] ss:$16 sps:$4 sm:$0xff]   ;;  %v6246_v26 = vld [vmem:[%s7173_s9 + $0x40c] ss:$16 sps:$4 sm:$0xff]  }
 0x420   : > { %4661 = vmatprep.subr.bf16.mxu1 %v6165_v29  ;;  %4825 = vmatprep.subr.bf16.mxu0 %v6168_v55  ;;  %v6244_v29 = vld [vmem:[%s7173_s9 + $0x408] ss:$16 sps:$4 sm:$0xff]   ;;  %v3050_v55 = vpack.c.bf16 %v3042_v24, %v3042_v24 }
 0x421   : > { %v6322_v24 = vld [vmem:[%s7173_s9 + $0x5a8] ss:$16 sps:$4 sm:$0xff]  }
 0x423   : > { %4662 = vmatpush1.bf16.msra.mxu1 %v6163_v31  ;;  %4826 = vmatpush1.bf16.msra.mxu0 %v6166_v32  ;;  %v6249_v31 = vld [vmem:[%s7173_s9 + $0x424] ss:$16 sps:$4 sm:$0xff]   ;;  %v6252_v32 = vld [vmem:[%s7173_s9 + $0x42c] ss:$16 sps:$4 sm:$0xff]  }
 0x424   : > { %4663 = vmatprep.subr.bf16.mxu1 %v6171_v34  ;;  %4827 = vmatprep.subr.bf16.mxu0 %v6174_v35  ;;  %v6247_v34 = vld [vmem:[%s7173_s9 + $0x420] ss:$16 sps:$4 sm:$0xff]   ;;  %v6250_v35 = vld [vmem:[%s7173_s9 + $0x428] ss:$16 sps:$4 sm:$0xff]  }
 0x427   : > { %4664 = vmatpush1.bf16.msra.mxu1 %v6169_v36  ;;  %4828 = vmatpush1.bf16.msra.mxu0 %v6172_v37  ;;  %v6255_v36 = vld [vmem:[%s7173_s9 + $0x444] ss:$16 sps:$4 sm:$0xff]   ;;  %v6258_v37 = vld [vmem:[%s7173_s9 + $0x44c] ss:$16 sps:$4 sm:$0xff]  }
 0x428   : > { %4665 = vmatprep.subr.bf16.mxu1 %v6177_v38  ;;  %4829 = vmatprep.subr.bf16.mxu0 %v6180_v39  ;;  %v6253_v38 = vld [vmem:[%s7173_s9 + $0x440] ss:$16 sps:$4 sm:$0xff]   ;;  %v6256_v39 = vld [vmem:[%s7173_s9 + $0x448] ss:$16 sps:$4 sm:$0xff]  }
 0x42b   : > { %4666 = vmatpush1.bf16.msra.mxu1 %v6175_v40  ;;  %4830 = vmatpush1.bf16.msra.mxu0 %v6178_v41  ;;  %v6261_v40 = vld [vmem:[%s7173_s9 + $0x464] ss:$16 sps:$4 sm:$0xff]   ;;  %v6264_v41 = vld [vmem:[%s7173_s9 + $0x46c] ss:$16 sps:$4 sm:$0xff]  }
 0x42c   : > { %4667 = vmatprep.subr.bf16.mxu1 %v6183_v42  ;;  %4831 = vmatprep.subr.bf16.mxu0 %v6186_v43  ;;  %v6259_v42 = vld [vmem:[%s7173_s9 + $0x460] ss:$16 sps:$4 sm:$0xff]   ;;  %v6262_v43 = vld [vmem:[%s7173_s9 + $0x468] ss:$16 sps:$4 sm:$0xff]  }
 0x42f   : > { %4668 = vmatpush1.bf16.msra.mxu1 %v6181_v44  ;;  %4832 = vmatpush1.bf16.msra.mxu0 %v6184_v45  ;;  %v6267_v44 = vld [vmem:[%s7173_s9 + $0x484] ss:$16 sps:$4 sm:$0xff]   ;;  %v6270_v45 = vld [vmem:[%s7173_s9 + $0x48c] ss:$16 sps:$4 sm:$0xff]  }
 0x430   : > { %4669 = vmatprep.subr.bf16.mxu1 %v6189_v46  ;;  %4833 = vmatprep.subr.bf16.mxu0 %v6192_v47  ;;  %v6265_v46 = vld [vmem:[%s7173_s9 + $0x480] ss:$16 sps:$4 sm:$0xff]   ;;  %v6268_v47 = vld [vmem:[%s7173_s9 + $0x488] ss:$16 sps:$4 sm:$0xff]  }
 0x433   : > { %4670 = vmatpush1.bf16.msra.mxu1 %v6187_v48  ;;  %4834 = vmatpush1.bf16.msra.mxu0 %v6190_v51  ;;  %v6273_v48 = vld [vmem:[%s7173_s9 + $0x4a4] ss:$16 sps:$4 sm:$0xff]   ;;  %v6276_v51 = vld [vmem:[%s7173_s9 + $0x4ac] ss:$16 sps:$4 sm:$0xff]  }
 0x434   : > { %4671 = vmatprep.subr.bf16.mxu1 %v6195_v52  ;;  %4835 = vmatprep.subr.bf16.mxu0 %v6198_v53  ;;  %v6271_v52 = vld [vmem:[%s7173_s9 + $0x4a0] ss:$16 sps:$4 sm:$0xff]   ;;  %v6274_v53 = vld [vmem:[%s7173_s9 + $0x4a8] ss:$16 sps:$4 sm:$0xff]  }
 0x437   : > { %4672 = vmatpush1.bf16.msra.mxu1 %v6193_v54  ;;  %4836 = vmatpush1.bf16.msra.mxu0 %v6196_v56  ;;  %v6279_v54 = vld [vmem:[%s7173_s9 + $0x4c4] ss:$16 sps:$4 sm:$0xff]   ;;  %v6282_v56 = vld [vmem:[%s7173_s9 + $0x4cc] ss:$16 sps:$4 sm:$0xff]  }
 0x438   : > { %4673 = vmatprep.subr.bf16.mxu1 %v6201_v57  ;;  %4837 = vmatprep.subr.bf16.mxu0 %v6204_v8  ;;  %v6277_v57 = vld [vmem:[%s7173_s9 + $0x4c0] ss:$16 sps:$4 sm:$0xff]   ;;  %v6280_v8 = vld [vmem:[%s7173_s9 + $0x4c8] ss:$16 sps:$4 sm:$0xff]  }
 0x43b   : > { %4674 = vmatpush1.bf16.msra.mxu1 %v6199_v59  ;;  %4838 = vmatpush1.bf16.msra.mxu0 %v6202_v60  ;;  %v6285_v59 = vld [vmem:[%s7173_s9 + $0x4e4] ss:$16 sps:$4 sm:$0xff]   ;;  %v6288_v60 = vld [vmem:[%s7173_s9 + $0x4ec] ss:$16 sps:$4 sm:$0xff]  }
 0x43c   : > { %4675 = vmatprep.subr.bf16.mxu1 %v6207_v62  ;;  %4839 = vmatprep.subr.bf16.mxu0 %v6210_v63  ;;  %v6283_v62 = vld [vmem:[%s7173_s9 + $0x4e0] ss:$16 sps:$4 sm:$0xff]   ;;  %v6286_v63 = vld [vmem:[%s7173_s9 + $0x4e8] ss:$16 sps:$4 sm:$0xff]  }
 0x43f   : > { %4676 = vmatpush1.bf16.msra.mxu1 %v6205_v0  ;;  %4840 = vmatpush1.bf16.msra.mxu0 %v6208_v1  ;;  %v6291_v0 = vld [vmem:[%s7173_s9 + $0x504] ss:$16 sps:$4 sm:$0xff]   ;;  %v6294_v1 = vld [vmem:[%s7173_s9 + $0x50c] ss:$16 sps:$4 sm:$0xff]  }
 0x440   : > { %4677 = vmatprep.subr.bf16.mxu1 %v6213_v2  ;;  %4841 = vmatprep.subr.bf16.mxu0 %v6216_v3  ;;  %v6289_v2 = vld [vmem:[%s7173_s9 + $0x500] ss:$16 sps:$4 sm:$0xff]   ;;  %v6292_v3 = vld [vmem:[%s7173_s9 + $0x508] ss:$16 sps:$4 sm:$0xff]  }
 0x443   : > { %4678 = vmatpush1.bf16.msra.mxu1 %v6211_v4  ;;  %4842 = vmatpush1.bf16.msra.mxu0 %v6214_v9  ;;  %v6297_v4 = vld [vmem:[%s7173_s9 + $0x524] ss:$16 sps:$4 sm:$0xff]   ;;  %v6300_v9 = vld [vmem:[%s7173_s9 + $0x52c] ss:$16 sps:$4 sm:$0xff]  }
 0x444   : > { %4679 = vmatprep.subr.bf16.mxu1 %v6219_v5  ;;  %4843 = vmatprep.subr.bf16.mxu0 %v6222_v6  ;;  %v6295_v5 = vld [vmem:[%s7173_s9 + $0x520] ss:$16 sps:$4 sm:$0xff]   ;;  %v6298_v6 = vld [vmem:[%s7173_s9 + $0x528] ss:$16 sps:$4 sm:$0xff]  }
 0x447   : > { %4680 = vmatpush1.bf16.msra.mxu1 %v6217_v7  ;;  %4844 = vmatpush1.bf16.msra.mxu0 %v6220_v10  ;;  %v6303_v7 = vld [vmem:[%s7173_s9 + $0x544] ss:$16 sps:$4 sm:$0xff]   ;;  %v6306_v10 = vld [vmem:[%s7173_s9 + $0x54c] ss:$16 sps:$4 sm:$0xff]  }
 0x448   : > { %4681 = vmatprep.subr.bf16.mxu1 %v6225_v11  ;;  %4845 = vmatprep.subr.bf16.mxu0 %v6228_v12  ;;  %v6301_v11 = vld [vmem:[%s7173_s9 + $0x540] ss:$16 sps:$4 sm:$0xff]   ;;  %v6304_v12 = vld [vmem:[%s7173_s9 + $0x548] ss:$16 sps:$4 sm:$0xff]  }
 0x44b   : > { %4682 = vmatpush1.bf16.msra.mxu1 %v6223_v16  ;;  %4846 = vmatpush1.bf16.msra.mxu0 %v6226_v13  ;;  %v6309_v16 = vld [vmem:[%s7173_s9 + $0x564] ss:$16 sps:$4 sm:$0xff]   ;;  %v6312_v13 = vld [vmem:[%s7173_s9 + $0x56c] ss:$16 sps:$4 sm:$0xff]  }
 0x44c   : > { %4683 = vmatprep.subr.bf16.mxu1 %v6231_v15  ;;  %4847 = vmatprep.subr.bf16.mxu0 %v6234_v17  ;;  %v6310_v15 = vld [vmem:[%s7173_s9 + $0x568] ss:$16 sps:$4 sm:$0xff]   ;;  %v6315_v17 = vld [vmem:[%s7173_s9 + $0x584] ss:$16 sps:$4 sm:$0xff]  }
 0x44f   : > { %4684 = vmatpush1.bf16.msra.mxu1 %v6229_v18  ;;  %4848 = vmatpush1.bf16.msra.mxu0 %v6232_v49  ;;  %v6318_v18 = vld [vmem:[%s7173_s9 + $0x58c] ss:$16 sps:$4 sm:$0xff]   ;;  %v6313_v49 = vld [vmem:[%s7173_s9 + $0x580] ss:$16 sps:$4 sm:$0xff]  }
 0x450   : > { %4685 = vmatprep.subr.bf16.mxu1 %v6237_v20  ;;  %4849 = vmatprep.subr.bf16.mxu0 %v6240_v21  ;;  %v6321_v20 = vld [vmem:[%s7173_s9 + $0x5a4] ss:$16 sps:$4 sm:$0xff]   ;;  %v6324_v21 = vld [vmem:[%s7173_s9 + $0x5ac] ss:$16 sps:$4 sm:$0xff]  }
 0x453   : > { %4686 = vmatpush1.bf16.msra.mxu1 %v6235_v22  ;;  %4850 = vmatpush1.bf16.msra.mxu0 %v6238_v23  ;;  %v1410_v22 = vsub.s32 4, %v7179_v27  ;;  %v6319_v23 = vld [vmem:[%s7173_s9 + $0x5a0] ss:$16 sps:$4 sm:$0xff]  }
 0x454   : > { %4696 = vmatprep.subr.bf16.mxu1 %v6243_v25  ;;  %4860 = vmatprep.subr.bf16.mxu0 %v6246_v26  ;;  %v1414_v25 = vsub.s32 5, %v7179_v27  ;;  %v6327_v26 = vld [vmem:[%s7173_s9 + $0x5c4] ss:$16 sps:$4 sm:$0xff]  }
 0x456   : > { %4688 = vmatmul.mubr.bf16.vlgmr.msra.gmra.mrb[12].mxu1 %v3050_v55  ;;  %4852 = vmatmul.mubr.bf16.vlgmr.msra.gmra.mrb[16].mxu0 %v3050_v55  ;;  %v1411_v55 = vrot.slane %v7298_v61, %v1410_v22  ;;  %v6378_v22 = vld [vmem:[%s7173_s9 + $0x6cc] ss:$16 sps:$4 sm:$0xff]  }
 0x457   : > { %4697 = vmatpush1.bf16.msra.mxu1 %v6241_v33  ;;  %4861 = vmatpush1.bf16.msra.mxu0 %v6244_v29  ;;  %v6330_v33 = vld [vmem:[%s7173_s9 + $0x5cc] ss:$16 sps:$4 sm:$0xff]   ;;  %v1422_v29 = vsub.s32 7, %v7179_v27 }
 0x458   : > { %4698 = vmatprep.subr.bf16.mxu1 %v6249_v31  ;;  %4862 = vmatprep.subr.bf16.mxu0 %v6252_v32  ;;  %v6325_v31 = vld [vmem:[%s7173_s9 + $0x5c0] ss:$16 sps:$4 sm:$0xff]   ;;  %v6328_v32 = vld [vmem:[%s7173_s9 + $0x5c8] ss:$16 sps:$4 sm:$0xff]  }
 0x45b   : > { %4699 = vmatpush1.bf16.msra.mxu1 %v6247_v34  ;;  %4863 = vmatpush1.bf16.msra.mxu0 %v6250_v35  ;;  %v1415_v34 = vrot.slane %v7298_v61, %v1414_v25  ;;  %v1423_v35 = vrot.slane %v7298_v61, %v1422_v29  ;;  %v6381_v25 = vld [vmem:[%s7173_s9 + $0x6e4] ss:$16 sps:$4 sm:$0xff]   ;;  %v6382_v29 = vld [vmem:[%s7173_s9 + $0x6e8] ss:$16 sps:$4 sm:$0xff]  }
 0x45c   : > { %4700 = vmatprep.subr.bf16.mxu1 %v6255_v36  ;;  %4864 = vmatprep.subr.bf16.mxu0 %v6258_v37  ;;  %v6333_v36 = vld [vmem:[%s7173_s9 + $0x5e4] ss:$16 sps:$4 sm:$0xff]   ;;  %v6336_v37 = vld [vmem:[%s7173_s9 + $0x5ec] ss:$16 sps:$4 sm:$0xff]  }
 0x45f   : > { %4701 = vmatpush1.bf16.msra.mxu1 %v6253_v38  ;;  %4865 = vmatpush1.bf16.msra.mxu0 %v6256_v39 }
 0x460   : > { %4702 = vmatprep.subr.bf16.mxu1 %v6261_v40  ;;  %4866 = vmatprep.subr.bf16.mxu0 %v6264_v41 }
 0x463   : > { %4703 = vmatpush1.bf16.msra.mxu1 %v6259_v42  ;;  %4867 = vmatpush1.bf16.msra.mxu0 %v6262_v43  ;;  %v6331_v42 = vld [vmem:[%s7173_s9 + $0x5e0] ss:$16 sps:$4 sm:$0xff]  }
 0x464   : > { %4704 = vmatprep.subr.bf16.mxu1 %v6267_v44  ;;  %4868 = vmatprep.subr.bf16.mxu0 %v6270_v45 }
 0x467   : > { %4705 = vmatpush1.bf16.msra.mxu1 %v6265_v46  ;;  %4869 = vmatpush1.bf16.msra.mxu0 %v6268_v47  ;;  %v6334_v46 = vld [vmem:[%s7173_s9 + $0x5e8] ss:$16 sps:$4 sm:$0xff]   ;;  %v6339_v47 = vld [vmem:[%s7173_s9 + $0x604] ss:$16 sps:$4 sm:$0xff]  }
 0x468   : > { %4706 = vmatprep.subr.bf16.mxu1 %v6273_v48  ;;  %4870 = vmatprep.subr.bf16.mxu0 %v6276_v51 }
 0x46b   : > { %4707 = vmatpush1.bf16.msra.mxu1 %v6271_v52  ;;  %4871 = vmatpush1.bf16.msra.mxu0 %v6274_v53 }
 0x46c   : > { %4708 = vmatprep.subr.bf16.mxu1 %v6279_v54  ;;  %4872 = vmatprep.subr.bf16.mxu0 %v6282_v56  ;;  %v6342_v54 = vld [vmem:[%s7173_s9 + $0x60c] ss:$16 sps:$4 sm:$0xff]  }
 0x46f   : > { %4709 = vmatpush1.bf16.msra.mxu1 %v6277_v57  ;;  %4873 = vmatpush1.bf16.msra.mxu0 %v6280_v8 }
 0x470   : > { %4710 = vmatprep.subr.bf16.mxu1 %v6285_v59  ;;  %4874 = vmatprep.subr.bf16.mxu0 %v6288_v60  ;;  %v6337_v60 = vld [vmem:[%s7173_s9 + $0x600] ss:$16 sps:$4 sm:$0xff]  }
 0x473   : > { %4711 = vmatpush1.bf16.msra.mxu1 %v6283_v62  ;;  %4875 = vmatpush1.bf16.msra.mxu0 %v6286_v63  ;;  %v6340_v62 = vld [vmem:[%s7173_s9 + $0x608] ss:$16 sps:$4 sm:$0xff]  }
 0x474   : > { %4712 = vmatprep.subr.bf16.mxu1 %v6291_v0  ;;  %4876 = vmatprep.subr.bf16.mxu0 %v6294_v1  ;;  %v6345_v0 = vld [vmem:[%s7173_s9 + $0x624] ss:$16 sps:$4 sm:$0xff]   ;;  %v6348_v1 = vld [vmem:[%s7173_s9 + $0x62c] ss:$16 sps:$4 sm:$0xff]  }
 0x477   : > { %4713 = vmatpush1.bf16.msra.mxu1 %v6289_v2  ;;  %4877 = vmatpush1.bf16.msra.mxu0 %v6292_v3  ;;  %v6343_v3 = vld [vmem:[%s7173_s9 + $0x620] ss:$16 sps:$4 sm:$0xff]  }
 0x478   : > { %4714 = vmatprep.subr.bf16.mxu1 %v6297_v4  ;;  %4878 = vmatprep.subr.bf16.mxu0 %v6300_v9  ;;  %v6346_v4 = vld [vmem:[%s7173_s9 + $0x628] ss:$16 sps:$4 sm:$0xff]   ;;  %v6351_v9 = vld [vmem:[%s7173_s9 + $0x644] ss:$16 sps:$4 sm:$0xff]  }
 0x47b   : > { %4715 = vmatpush1.bf16.msra.mxu1 %v6295_v5  ;;  %4879 = vmatpush1.bf16.msra.mxu0 %v6298_v6  ;;  %v6354_v5 = vld [vmem:[%s7173_s9 + $0x64c] ss:$16 sps:$4 sm:$0xff]   ;;  %v6349_v6 = vld [vmem:[%s7173_s9 + $0x640] ss:$16 sps:$4 sm:$0xff]  }
 0x47c   : > { %4716 = vmatprep.subr.bf16.mxu1 %v6303_v7  ;;  %4880 = vmatprep.subr.bf16.mxu0 %v6306_v10  ;;  %v6352_v7 = vld [vmem:[%s7173_s9 + $0x648] ss:$16 sps:$4 sm:$0xff]   ;;  %v6357_v10 = vld [vmem:[%s7173_s9 + $0x664] ss:$16 sps:$4 sm:$0xff]  }
 0x47f   : > { %4717 = vmatpush1.bf16.msra.mxu1 %v6301_v11  ;;  %4881 = vmatpush1.bf16.msra.mxu0 %v6304_v12  ;;  %v6360_v11 = vld [vmem:[%s7173_s9 + $0x66c] ss:$16 sps:$4 sm:$0xff]   ;;  %v6355_v12 = vld [vmem:[%s7173_s9 + $0x660] ss:$16 sps:$4 sm:$0xff]  }
 0x480   : > { %4718 = vmatprep.subr.bf16.mxu1 %v6309_v16  ;;  %4882 = vmatprep.subr.bf16.mxu0 %v6312_v13  ;;  %v6358_v16 = vld [vmem:[%s7173_s9 + $0x668] ss:$16 sps:$4 sm:$0xff]   ;;  %v6363_v13 = vld [vmem:[%s7173_s9 + $0x684] ss:$16 sps:$4 sm:$0xff]  }
 0x483   : > { %4719 = vmatpush1.bf16.msra.mxu1 %v6307_v14  ;;  %4883 = vmatpush1.bf16.msra.mxu0 %v6310_v15  ;;  %v6366_v14 = vld [vmem:[%s7173_s9 + $0x68c] ss:$16 sps:$4 sm:$0xff]   ;;  %v6361_v15 = vld [vmem:[%s7173_s9 + $0x680] ss:$16 sps:$4 sm:$0xff]  }
 0x484   : > { %4720 = vmatprep.subr.bf16.mxu1 %v6315_v17  ;;  %4884 = vmatprep.subr.bf16.mxu0 %v6318_v18  ;;  %v6364_v17 = vld [vmem:[%s7173_s9 + $0x688] ss:$16 sps:$4 sm:$0xff]   ;;  %v6369_v18 = vld [vmem:[%s7173_s9 + $0x6a4] ss:$16 sps:$4 sm:$0xff]  }
 0x487   : > { %4721 = vmatpush1.bf16.msra.mxu1 %v6313_v49  ;;  %4885 = vmatpush1.bf16.msra.mxu0 %v6316_v19  ;;  %v6372_v49 = vld [vmem:[%s7173_s9 + $0x6ac] ss:$16 sps:$4 sm:$0xff]   ;;  %v6367_v19 = vld [vmem:[%s7173_s9 + $0x6a0] ss:$16 sps:$4 sm:$0xff]  }
 0x488   : > { %4722 = vmatprep.subr.bf16.mxu1 %v6321_v20  ;;  %4886 = vmatprep.subr.bf16.mxu0 %v6324_v21  ;;  %v6370_v20 = vld [vmem:[%s7173_s9 + $0x6a8] ss:$16 sps:$4 sm:$0xff]   ;;  %v6375_v21 = vld [vmem:[%s7173_s9 + $0x6c4] ss:$16 sps:$4 sm:$0xff]  }
 0x48b   : > { %4723 = vmatpush1.bf16.msra.mxu1 %v6319_v23  ;;  %4887 = vmatpush1.bf16.msra.mxu0 %v6322_v24  ;;  %v6373_v23 = vld [vmem:[%s7173_s9 + $0x6c0] ss:$16 sps:$4 sm:$0xff]   ;;  %v6376_v24 = vld [vmem:[%s7173_s9 + $0x6c8] ss:$16 sps:$4 sm:$0xff]  }
 0x48c   : > { %4724 = vmatprep.subr.bf16.mxu1 %v6327_v26  ;;  %4888 = vmatprep.subr.bf16.mxu0 %v6330_v33  ;;  %v6384_v26 = vld [vmem:[%s7173_s9 + $0x6ec] ss:$16 sps:$4 sm:$0xff]   ;;  %v6379_v33 = vld [vmem:[%s7173_s9 + $0x6e0] ss:$16 sps:$4 sm:$0xff]  }
 0x48d   : > { %v2951_v38 = vpop.f32.mrb[8].mxu1 }
 0x48e   : > { %v5751_v39 = vadd.f32 %v2951_v38, %v1411_v55  ;;  %v7441_v40 = vpop.f32.mrb[12].mxu0  ;;  %v2953_v41 = vpop.f32.mrb[9].mxu1  ;;  %v6387_v55 = vld [vmem:[%s7173_s9 + $0x704] ss:$16 sps:$4 sm:$0xff]   ;;  %v6394_v38 = vld [vmem:[%s7173_s9 + $0x728] ss:$16 sps:$4 sm:$0xff]  }
 0x48f   : > { %v5752_v43 = vadd.f32 %v2953_v41, %v1415_v34  ;;  %v3035_v44 = vpop.f32.mrb[13].mxu0  ;;  %4725 = vmatpush1.bf16.msra.mxu1 %v6325_v31  ;;  %4889 = vmatpush1.bf16.msra.mxu0 %v6328_v32  ;;  %v2955_v45 = vpop.f32.mrb[10].mxu1  ;;  %v6390_v31 = vld [vmem:[%s7173_s9 + $0x70c] ss:$16 sps:$4 sm:$0xff]   ;;  %v6385_v32 = vld [vmem:[%s7173_s9 + $0x700] ss:$16 sps:$4 sm:$0xff]  }
 0x490   : > { %v3044_v48 = vmax.f32 %v5751_v39, 0.0  ;;  %v5754_v51 = vadd.f32 %v3035_v44, %v1423_v35  ;;  %v3037_v52 = vpop.f32.mrb[14].mxu0  ;;  %v2956_v53 = vpop.f32.mrb[11].mxu1  ;;  %4726 = vmatprep.subr.bf16.mxu1 %v6333_v36  ;;  %4890 = vmatprep.subr.bf16.mxu0 %v6336_v37  ;;  %v6388_v34 = vld [vmem:[%s7173_s9 + $0x708] ss:$16 sps:$4 sm:$0xff]  }
 0x491   : > { %v3045_v56 = vmax.f32 %v5752_v43, 0.0  ;;  %v3038_v57 = vpop.f32.mrb[15].mxu0  ;;  %v6393_v35 = vld [vmem:[%s7173_s9 + $0x724] ss:$16 sps:$4 sm:$0xff]   ;;  %v6396_v36 = vld [vmem:[%s7173_s9 + $0x72c] ss:$16 sps:$4 sm:$0xff]  }
 0x492   : > { %v3047_v8 = vmax.f32 %v5754_v51, 0.0  ;;  %v3052_v63 = vpack.c.bf16 %v3044_v48, %v3044_v48  ;;  %v6391_v37 = vld [vmem:[%s7173_s9 + $0x720] ss:$16 sps:$4 sm:$0xff]   ;;  %v6399_v39 = vld [vmem:[%s7173_s9 + $0x744] ss:$16 sps:$4 sm:$0xff]  }
 0x493   : > { %v3053_v59 = vpack.c.bf16 %v3045_v56, %v3045_v56  ;;  %4727 = vmatpush1.bf16.msra.mxu1 %v6331_v42  ;;  %4891 = vmatpush1.bf16.msra.mxu0 %v6334_v46  ;;  %v6402_v41 = vld [vmem:[%s7173_s9 + $0x74c] ss:$16 sps:$4 sm:$0xff]   ;;  %v6397_v42 = vld [vmem:[%s7173_s9 + $0x740] ss:$16 sps:$4 sm:$0xff]   ;;  %v6400_v43 = vld [vmem:[%s7173_s9 + $0x748] ss:$16 sps:$4 sm:$0xff]  }
 0x494   : > { %4737 = vmatprep.subr.bf16.mxu1 %v6339_v47  ;;  %4901 = vmatprep.subr.bf16.mxu0 %v6342_v54  ;;  %v3055_v2 = vpack.c.bf16 %v3047_v8, %v3047_v8  ;;  %v6405_v44 = vld [vmem:[%s7173_s9 + $0x764] ss:$16 sps:$4 sm:$0xff]   ;;  %v6408_v45 = vld [vmem:[%s7173_s9 + $0x76c] ss:$16 sps:$4 sm:$0xff]   ;;  %v6403_v46 = vld [vmem:[%s7173_s9 + $0x760] ss:$16 sps:$4 sm:$0xff]  }
 0x495   : > { %4728 = vmatprep.mubr.bf16.mxu1 %v3053_v59  ;;  %4892 = vmatprep.mubr.bf16.mxu0 %v3053_v59  ;;  %v6406_v47 = vld [vmem:[%s7173_s9 + $0x768] ss:$16 sps:$4 sm:$0xff]   ;;  %v6411_v48 = vld [vmem:[%s7173_s9 + $0x784] ss:$16 sps:$4 sm:$0xff]   ;;  %v6414_v51 = vld [vmem:[%s7173_s9 + $0x78c] ss:$16 sps:$4 sm:$0xff]  }
 0x496   : > { %4729 = vmatmul.mubr.bf16.vlgmr.msra.gmra.mrb[12].mxu1 %v3052_v63  ;;  %4893 = vmatmul.mubr.bf16.vlgmr.msra.gmra.mrb[16].mxu0 %v3052_v63  ;;  %v6409_v52 = vld [vmem:[%s7173_s9 + $0x780] ss:$16 sps:$4 sm:$0xff]   ;;  %v6412_v53 = vld [vmem:[%s7173_s9 + $0x788] ss:$16 sps:$4 sm:$0xff]   ;;  %v1418_v54 = vsub.s32 6, %v7179_v27 }
 0x497   : > { %4738 = vmatpush1.bf16.msra.mxu1 %v6337_v60  ;;  %4902 = vmatpush1.bf16.msra.mxu0 %v6340_v62  ;;  %v6417_v56 = vld [vmem:[%s7173_s9 + $0x7a4] ss:$16 sps:$4 sm:$0xff]   ;;  %v6420_v57 = vld [vmem:[%s7173_s9 + $0x7ac] ss:$16 sps:$4 sm:$0xff]   ;;  %v6415_v8 = vld [vmem:[%s7173_s9 + $0x7a0] ss:$16 sps:$4 sm:$0xff]  }
 0x498   : > { %4769 = vmatprep.mubr.bf16.mxu1 %v3055_v2  ;;  %4933 = vmatprep.mubr.bf16.mxu0 %v3055_v2  ;;  %v6418_v59 = vld [vmem:[%s7173_s9 + $0x7a8] ss:$16 sps:$4 sm:$0xff]   ;;  %v1419_v60 = vrot.slane %v7298_v61, %v1418_v54  ;;  %v6423_v62 = vld [vmem:[%s7173_s9 + $0x7c4] ss:$16 sps:$4 sm:$0xff]   ;;  %v6426_v27 = vld [vmem:[%s7173_s9 + $0x7cc] ss:$16 sps:$4 sm:$0xff]  }
 0x499   : > { %4739 = vmatprep.subr.bf16.mxu1 %v6345_v0  ;;  %4903 = vmatprep.subr.bf16.mxu0 %v6348_v1  ;;  %v6421_v63 = vld [vmem:[%s7173_s9 + $0x7c0] ss:$16 sps:$4 sm:$0xff]   ;;  %v6424_v0 = vld [vmem:[%s7173_s9 + $0x7c8] ss:$16 sps:$4 sm:$0xff]   ;;  %v6429_v2 = vld [vmem:[%s7173_s9 + $0x7e4] ss:$16 sps:$4 sm:$0xff]  }
 0x49a   : > { %v5753_v1 = vadd.f32 %v7441_v40, %v1419_v60  ;;  %v6427_v61 = vld [vmem:[%s7173_s9 + $0x7e0] ss:$16 sps:$4 sm:$0xff]  }
 0x49b   : > { %4740 = vmatpush1.bf16.msra.mxu1 %v6343_v3  ;;  %4904 = vmatpush1.bf16.msra.mxu0 %v6346_v4  ;;  %v6432_v3 = vld [vmem:[%s7173_s9 + $0x7ec] ss:$16 sps:$4 sm:$0xff]   ;;  %v6430_v4 = vld [vmem:[%s7173_s9 + $0x7e8] ss:$16 sps:$4 sm:$0xff]   ;;  %v3312_v40 = vld [vmem:[%s440_s23] sm:$0xf] }
 0x49c   : > { %4741 = vmatprep.subr.bf16.mxu1 %v6351_v9  ;;  %4905 = vmatprep.subr.bf16.mxu0 %v6354_v5  ;;  %v3046_v9 = vmax.f32 %v5753_v1, 0.0 }
 0x49e   : > { %v3054_v5 = vpack.c.bf16 %v3046_v9, %v3046_v9 }
 0x49f   : > { %4742 = vmatpush1.bf16.msra.mxu1 %v6349_v6  ;;  %4906 = vmatpush1.bf16.msra.mxu0 %v6352_v7  ;;  %v3317_v6 = vrot.slane %v3312_v40, %v7182_v28  ;;  %v3325_v7 = vrot.slane %v3312_v40, %v7215_v58 }
 0x4a0   : > { %4743 = vmatprep.subr.bf16.mxu1 %v6357_v10  ;;  %4907 = vmatprep.subr.bf16.mxu0 %v6360_v11  ;;  %v3321_v10 = vrot.slane %v3312_v40, %v7185_v30  ;;  %v3329_v11 = vrot.slane %v3312_v40, %v7192_v50 }
 0x4a3   : > { %4744 = vmatpush1.bf16.msra.mxu1 %v6355_v12  ;;  %4908 = vmatpush1.bf16.msra.mxu0 %v6358_v16 }
 0x4a4   : > { %4745 = vmatprep.subr.bf16.mxu1 %v6363_v13  ;;  %4909 = vmatprep.subr.bf16.mxu0 %v6366_v14 }
 0x4a7   : > { %4746 = vmatpush1.bf16.msra.mxu1 %v6361_v15  ;;  %4910 = vmatpush1.bf16.msra.mxu0 %v6364_v17 }
 0x4a8   : > { %4747 = vmatprep.subr.bf16.mxu1 %v6369_v18  ;;  %4911 = vmatprep.subr.bf16.mxu0 %v6372_v49 }
 0x4ab   : > { %4748 = vmatpush1.bf16.msra.mxu1 %v6367_v19  ;;  %4912 = vmatpush1.bf16.msra.mxu0 %v6370_v20 }
 0x4ac   : > { %4749 = vmatprep.subr.bf16.mxu1 %v6375_v21  ;;  %4913 = vmatprep.subr.bf16.mxu0 %v6378_v22 }
 0x4af   : > { %4750 = vmatpush1.bf16.msra.mxu1 %v6373_v23  ;;  %4914 = vmatpush1.bf16.msra.mxu0 %v6376_v24 }
 0x4b0   : > { %4751 = vmatprep.subr.bf16.mxu1 %v6381_v25  ;;  %4915 = vmatprep.subr.bf16.mxu0 %v6384_v26 }
 0x4b3   : > { %4752 = vmatpush1.bf16.msra.mxu1 %v6379_v33  ;;  %4916 = vmatpush1.bf16.msra.mxu0 %v6382_v29 }
 0x4b4   : > { %4753 = vmatprep.subr.bf16.mxu1 %v6387_v55  ;;  %4917 = vmatprep.subr.bf16.mxu0 %v6390_v31 }
 0x4b7   : > { %4754 = vmatpush1.bf16.msra.mxu1 %v6385_v32  ;;  %4918 = vmatpush1.bf16.msra.mxu0 %v6388_v34 }
 0x4b8   : > { %4755 = vmatprep.subr.bf16.mxu1 %v6393_v35  ;;  %4919 = vmatprep.subr.bf16.mxu0 %v6396_v36 }
 0x4bb   : > { %4756 = vmatpush1.bf16.msra.mxu1 %v6391_v37  ;;  %4920 = vmatpush1.bf16.msra.mxu0 %v6394_v38 }
 0x4bc   : > { %4757 = vmatprep.subr.bf16.mxu1 %v6399_v39  ;;  %4921 = vmatprep.subr.bf16.mxu0 %v6402_v41 }
 0x4bf   : > { %4758 = vmatpush1.bf16.msra.mxu1 %v6397_v42  ;;  %4922 = vmatpush1.bf16.msra.mxu0 %v6400_v43 }
 0x4c0   : > { %4759 = vmatprep.subr.bf16.mxu1 %v6405_v44  ;;  %4923 = vmatprep.subr.bf16.mxu0 %v6408_v45 }
 0x4c3   : > { %4760 = vmatpush1.bf16.msra.mxu1 %v6403_v46  ;;  %4924 = vmatpush1.bf16.msra.mxu0 %v6406_v47 }
 0x4c4   : > { %4761 = vmatprep.subr.bf16.mxu1 %v6411_v48  ;;  %4925 = vmatprep.subr.bf16.mxu0 %v6414_v51 }
 0x4c7   : > { %4762 = vmatpush1.bf16.msra.mxu1 %v6409_v52  ;;  %4926 = vmatpush1.bf16.msra.mxu0 %v6412_v53 }
 0x4c8   : > { %4763 = vmatprep.subr.bf16.mxu1 %v6417_v56  ;;  %4927 = vmatprep.subr.bf16.mxu0 %v6420_v57 }
 0x4cb   : > { %4764 = vmatpush1.bf16.msra.mxu1 %v6415_v8  ;;  %4928 = vmatpush1.bf16.msra.mxu0 %v6418_v59 }
 0x4cc   : > { %4765 = vmatprep.subr.bf16.mxu1 %v6423_v62  ;;  %4929 = vmatprep.subr.bf16.mxu0 %v6426_v27 }
 0x4cf   : > { %4766 = vmatpush1.bf16.msra.mxu1 %v6421_v63  ;;  %4930 = vmatpush1.bf16.msra.mxu0 %v6424_v0 }
 0x4d0   : > { %4767 = vmatprep.subr.bf16.mxu1 %v6429_v2  ;;  %4931 = vmatprep.subr.bf16.mxu0 %v6432_v3 }
 0x4d3   : > { %4768 = vmatpush1.bf16.msra.mxu1 %v6427_v61  ;;  %4932 = vmatpush1.bf16.msra.mxu0 %v6430_v4 }
 0x4d6   : > { %4770 = vmatmul.mubr.bf16.vlgmr.msra.gmra.mrb[12].mxu1 %v3054_v5  ;;  %4934 = vmatmul.mubr.bf16.vlgmr.msra.gmra.mrb[16].mxu0 %v3054_v5 }
 0x5a9   : > { %v4771_v12 = vpop.f32.mrb[12].mxu1  ;;  %v4935_v16 = vpop.f32.mrb[16].mxu0 }
 0x5aa   : > { %v5755_v13 = vadd.f32 %v4771_v12, %v3317_v6  ;;  %v5757_v14 = vadd.f32 %v4935_v16, %v3325_v7  ;;  %v4773_v15 = vpop.f32.mrb[13].mxu1  ;;  %v4937_v17 = vpop.f32.mrb[17].mxu0 }
 0x5ab   : > { %v5756_v18 = vadd.f32 %v4773_v15, %v3321_v10  ;;  %v5758_v49 = vadd.f32 %v4937_v17, %v3329_v11  ;;  %v4775_v28 = vpop.f32.mrb[14].mxu1  ;;  %v4939_v19 = vpop.f32.mrb[18].mxu0 }
 0x5ac   : > { %4942 = vst [vmem:[%s479_s19] sm:$0xff] %v5755_v13  ;;  %4944 = vst [vmem:[%s479_s19 + $0x10] sm:$0xff] %v5757_v14  ;;  %v4776_v30 = vpop.f32.mrb[15].mxu1  ;;  %v4940_v50 = vpop.f32.mrb[19].mxu0 }
 0x5ad   : > { %4943 = vst [vmem:[%s479_s19 + $0x8] sm:$0xff] %v5756_v18  ;;  %4945 = vst [vmem:[%s479_s19 + $0x18] sm:$0xff] %v5758_v49 }
 0x5ae   : > { %6702 = shalt.err (!%p6699_p12)
}
 0x5af   : > { %s6703_s7 = scalar_lea.hbm %s7522_s29, 512  ;;  %s6707_s24 = scalar_lea.hbm %s7631_s3, 4096 }
 0x5b0   : > { %p6704_p0 = scmp.ne.s32.totalorder %s7522_s29, %s6703_s7  ;;  %p6708_p8 = scmp.lt.u32.totalorder %s7522_s29, %s7631_s3 }
 0x5b1   : > { %p6709_p4 = scmp.lt.u32.totalorder %s6707_s24, %s6703_s7  ;;  %p6711_p10 = scmp.lt.u32.totalorder %s6703_s7, %s7522_s29 }
 0x5b2   : > { %p6705_p2 = pnand %p6704_p0, %p7632_p5 }
 0x5b3   : > { %p6710_p7 = por %p6709_p4, %p6708_p8 }
 0x5b4   : > { %p6706_p6 = pneg %p6705_p2 }
 0x5b5   : > { %p6712_p1 = por %p6711_p10, %p6710_p7 }
 0x5b7   : > { %p6713_p13 = pnand %p6712_p1, %p6706_p6 }
 0x5b9   : > { %6716 = shalt.err (!%p6713_p13)
}
 0x5ba   : > { %5831 = dma.vmem_to_hbm [thread:$0]  (%p7632_p5), %s7524_s1, 512, %s7522_s29, %s4947_s15  }
 0x5bb PF: > { %s7633_s21 = sld [smem:[#allocation24_spill]]  ;;  %s7634_s28 = sld [smem:[#allocation27_spill]] }
 0x5bc   : > { %p5881_p11 = scmp.ge.s32.totalorder %s6771_s12, 2 }
 0x5c1   : > { %s4973_s23 = sand.u32 1, %s7633_s21   ;;  %p7635_p9 = scmp.ne.s32.totalorder %s7634_s28, 0 }
 0x5c2   : > { %s4974_s5 = scalar_lea.sflag [#allocation4], %s4973_s23 }
 0x5c3   : > { %p5863_p3 = pnand %p5881_p11, %p7635_p9 }
 0x5c5   : > { %6754 = dma.done.wait (!%p5863_p3), %s4974_s5, 512  }
 0x5c6   : > { %6756 = vsyncadd (!%p5863_p3), %s4974_s5, 4294966784  ;;  %s7636_s12 = sld [smem:[#allocation25_spill]]  ;;  %s7637_s19 = sld [smem:[#allocation26_spill]] }
 0x5c7   : > { %s7638_s30 = smov %s6763_s10  ;;  %s7639_s10 = smov %s6767_s11 }
 0x5cc   : > { %p26_p12 = scmp.ge.s32.totalorder %s7636_s12, 10   ;;  %s7640_s11 = smov %s7637_s19 }
 0x5ce   :  { %28 = sbr.rel (!%p26_p12) target bundleno = 15 (0xf), region = 141 }
 0x5d5   :  { %4979 = vsyncpa [#allocation3], 1 }
 0x5d6   :  { %4981 = vsyncpa [#allocation3 + $0x1], 1 }
 0x5d7   :  { %4982 = vsyncpa [#allocation6], 1 }
 0x5d8   :  { %4983 = vsyncpa [#allocation9], 1 }
 0x5d9   :  { %4984 = vsyncpa [#allocation12], 1 }
 0x5da   :  { %4985 = vsyncpa [#allocation15], 1 }
 0x5db   :  { %4987 = vsyncpa [#allocation15 + $0x1], 1 }
 0x5dc   :  { %4988 = vsyncpa [#allocation4], 1 }
 0x5dd   :  { %4990 = vsyncpa [#allocation4 + $0x1], 1 }

</bundles_post_ra>
